<compile_context>
chip_gen: v6e
topology: v6e:2x2x1
jax: 0.10.0
libtpu: 0.0.40
codegen_flags: <defaults>
</compile_context>

<pallas_src>
import functools

import jax
import jax.numpy as jnp
import numpy as np
from jax import lax
from jax.experimental import pallas as pl
from jax.experimental.pallas import tpu as pltpu

BN_EPS = 1e-5
LANES = 128
SUBLANES = 8


def _round_up(v, m):
    return (v + m - 1) // m * m


def _build_patches(x_ref, *, k, Wp, Lp, C_in):
    """[B, Lp_ext, C_in] bf16 ref -> [B*Lp, k*k*C_in] bf16 patch matrix (built in VMEM).

    Tap (dy, dx) is the input shifted by dy*Wp + dx rows; concatenating the k*k shifted
    slices along lanes turns the k x k convolution into a single MXU matmul.
    """
    B = x_ref.shape[0]
    taps = [x_ref[:, pl.ds(dy * Wp + dx, Lp), :]
            for dy in range(k) for dx in range(k)]           # k*k x [B, Lp, C_in] bf16
    patches = jnp.concatenate(taps, axis=-1)                 # [B, Lp, k*k*C_in]
    return patches.reshape(B * Lp, k * k * C_in)


def _stats_kernel(x_ref, w_ref, mask_ref, sum_ref, ssq_ref,
                  *, k, Wp, Lp, C_in, C_pad):
    """Per image-block partial BN statistics (sublane-partial sums; no XLU reduce)."""
    patches = _build_patches(x_ref, k=k, Wp=Wp, Lp=Lp, C_in=C_in)
    y = jnp.dot(patches, w_ref[...], preferred_element_type=jnp.float32)  # [B*Lp, C_pad]
    ym = y * mask_ref[...]                                    # zero halo / padded rows
    # Sublane-partial reduction: plain VALU adds over groups of 8 rows; the final
    # 8-row + cross-block reduce happens in tiny JAX ops outside the kernel.
    sum_ref[0] = jnp.sum(ym.reshape(-1, SUBLANES, C_pad), axis=0)
    ssq_ref[0] = jnp.sum((ym * y).reshape(-1, SUBLANES, C_pad), axis=0)


def _apply_kernel(x_ref, w_ref, scale_ref, bias_ref, o_ref,
                  *, k, Wp, Lp, C_in, C_out):
    """Recompute the cheap conv and apply the folded BN scale/bias (one FMA/element)."""
    B = x_ref.shape[0]
    patches = _build_patches(x_ref, k=k, Wp=Wp, Lp=Lp, C_in=C_in)
    y = jnp.dot(patches, w_ref[...], preferred_element_type=jnp.float32)  # [B*Lp, C_pad]
    out = y[:, :C_out] * scale_ref[...] + bias_ref[...]       # [B*Lp, C_out]
    o_ref[...] = out.reshape(B, Lp, C_out)


def conv_bn_2d(x, weight, gamma, beta, *, kernel_size, padding, img_block=None):
    """x: [N, C_in, H, W] (NCHW), weight: [C_out, C_in, k, k].  Returns NCHW float32."""
    N, C_in, H, W = x.shape
    C_out = weight.shape[0]
    k = kernel_size
    Hp, Wp = H + 2 * padding, W + 2 * padding
    H_out, W_out = Hp - k + 1, Wp - k + 1
    C_pad = _round_up(C_out, LANES)                      # lane-dense weight / partials
    L = Hp * Wp
    Lp = _round_up(L, SUBLANES)                          # sublane-aligned output rows
    max_shift = (k - 1) * Wp + (k - 1)
    Lp_ext = _round_up(Lp + max_shift, SUBLANES)         # extra zero rows for input-side shift

    # Images per grid step. Per batched image: ~Lp*128*4B f32 matmul result + the
    # (double-buffered) output block -> budget ~0.7 MB/image; B <= ~16 keeps us well
    # under the 32 MiB scoped VMEM default (v7x has only 64 MiB physical VMEM).
    if img_block is None:
        img_block = min(N, 8)
    B = max(1, min(img_block, N))
    N_pad = _round_up(N, B)
    n_blocks = N_pad // B

    # Activations: NCHW -> zero-padded, channels-last, spatially flattened bf16 slab.
    # Rows >= L are zero, so the in-kernel shifted reads never touch real data they
    # should not (padded batch images are all-zero and contribute nothing to BN stats).
    xp = jnp.pad(x, ((0, N_pad - N), (0, 0), (padding, padding), (padding, padding)))
    x_flat = jnp.transpose(xp, (0, 2, 3, 1)).reshape(N_pad, L, C_in)
    x_flat = jnp.pad(x_flat, ((0, 0), (0, Lp_ext - L), (0, 0))).astype(jnp.bfloat16)

    # Weights: [C_out, C_in, k, k] -> [k*k*C_in, C_pad] bf16 (tap-major, matches patches).
    w_mat = jnp.transpose(weight, (2, 3, 1, 0)).reshape(k * k * C_in, C_out)
    w_mat = jnp.pad(w_mat, ((0, 0), (0, C_pad - C_out))).astype(jnp.bfloat16)

    # Mask of flattened padded positions corresponding to a real output pixel, tiled
    # across the B images of a grid step.
    ii = jnp.arange(Lp)
    valid = (ii // Wp < H_out) & (ii % Wp < W_out) & (ii < L)
    mask = jnp.tile(valid.astype(jnp.float32).reshape(Lp, 1), (B, 1))     # [B*Lp, 1]

    common = dict(k=k, Wp=Wp, Lp=Lp, C_in=C_in)

    # ---- pass 1: per-block partial BN statistics (parallel over image blocks) --------
    sum_parts, ssq_parts = pl.pallas_call(
        functools.partial(_stats_kernel, C_pad=C_pad, **common),
        out_shape=(jax.ShapeDtypeStruct((n_blocks, SUBLANES, C_pad), jnp.float32),
                   jax.ShapeDtypeStruct((n_blocks, SUBLANES, C_pad), jnp.float32)),
        grid=(n_blocks,),
        in_specs=[
            pl.BlockSpec((B, Lp_ext, C_in), lambda i: (i, 0, 0)),          # activations
            pl.BlockSpec((k * k * C_in, C_pad), lambda i: (0, 0)),         # weights (resident)
            pl.BlockSpec((B * Lp, 1), lambda i: (0, 0)),                   # validity mask
        ],
        out_specs=(pl.BlockSpec((1, SUBLANES, C_pad), lambda i: (i, 0, 0)),
                   pl.BlockSpec((1, SUBLANES, C_pad), lambda i: (i, 0, 0))),
        compiler_params=pltpu.CompilerParams(
            dimension_semantics=("parallel",),
            vmem_limit_bytes=32 * 1024 * 1024),
    )(x_flat, w_mat, mask)

    # ---- tiny JAX reduce + BN fold into one per-channel scale & bias ------------------
    inv_m = 1.0 / float(N * H_out * W_out)       # padded images contribute only zeros
    s = jnp.sum(sum_parts, axis=(0, 1))[:C_out]
    ss = jnp.sum(ssq_parts, axis=(0, 1))[:C_out]
    mean = s * inv_m
    # TODO(synk): E[y^2] - mean^2 can lose precision for very large N*H*W; use a
    # shifted / Welford-style combine of the per-block partials for production shapes.
    var = ss * inv_m - mean * mean               # biased batch variance (train-mode BN)
    scale = gamma.astype(jnp.float32) * lax.rsqrt(var + BN_EPS)
    bias = beta.astype(jnp.float32) - mean * scale
    scale = scale.reshape(1, C_out)
    bias = bias.reshape(1, C_out)

    # ---- pass 2: recompute conv, apply folded BN, store unpadded-channel output ------
    out_flat = pl.pallas_call(
        functools.partial(_apply_kernel, C_out=C_out, **common),
        out_shape=jax.ShapeDtypeStruct((N_pad, Lp, C_out), jnp.float32),
        grid=(n_blocks,),
        in_specs=[
            pl.BlockSpec((B, Lp_ext, C_in), lambda i: (i, 0, 0)),          # activations
            pl.BlockSpec((k * k * C_in, C_pad), lambda i: (0, 0)),         # weights (resident)
            pl.BlockSpec((1, C_out), lambda i: (0, 0)),                    # folded scale
            pl.BlockSpec((1, C_out), lambda i: (0, 0)),                    # folded bias
        ],
        out_specs=pl.BlockSpec((B, Lp, C_out), lambda i: (i, 0, 0)),
        compiler_params=pltpu.CompilerParams(
            dimension_semantics=("parallel",),
            vmem_limit_bytes=32 * 1024 * 1024),
    )(x_flat, w_mat, scale, bias)

    # Flat-NHWC (unpadded channels) -> NCHW.
    out = out_flat[:N, :L, :].reshape(N, Hp, Wp, C_out)[:, :H_out, :W_out, :]
    return jnp.transpose(out, (0, 3, 1, 2))


def reference(x, weight, gamma, beta, *, padding, operand_dtype=jnp.float32):
    y = lax.conv_general_dilated(
        x.astype(operand_dtype), weight.astype(operand_dtype),
        window_strides=(1, 1),
        padding=[(padding, padding), (padding, padding)],
        dimension_numbers=("NCHW", "OIHW", "NCHW"),
        preferred_element_type=jnp.float32).astype(jnp.float32)
    mean = jnp.mean(y, axis=(0, 2, 3), keepdims=True)
    var = jnp.mean((y - mean) ** 2, axis=(0, 2, 3), keepdims=True)
    g = gamma.reshape(1, -1, 1, 1).astype(jnp.float32)
    b = beta.reshape(1, -1, 1, 1).astype(jnp.float32)
    return (y - mean) * lax.rsqrt(var + BN_EPS) * g + b


if __name__ == "__main__":
    # Module config: Conv_BN_2d(in_planes=4, out_planes=8, kernel_size=3, padding=1)
    in_planes, out_planes, kernel_size, padding = 4, 8, 3, 1
    N, H, W = 2, 16, 16

    key = jax.random.PRNGKey(0)
    kx, kw = jax.random.split(key)
    x = jax.random.normal(kx, (N, in_planes, H, W), dtype=jnp.float32)
    weight = 0.1 * jax.random.normal(
        kw, (out_planes, in_planes, kernel_size, kernel_size), dtype=jnp.float32)
    gamma = jnp.ones((out_planes,), dtype=jnp.float32)   # BN affine defaults
    beta = jnp.zeros((out_planes,), dtype=jnp.float32)

    out = conv_bn_2d(x, weight, gamma, beta, kernel_size=kernel_size, padding=padding)
    out = jax.block_until_ready(out)
    assert out.shape == (N, out_planes, H, W), out.shape

    # (1) Tight check vs. a reference fed the same bf16-quantized matmul operands.
    ref_bf16 = jax.block_until_ready(reference(
        x, weight, gamma, beta, padding=padding, operand_dtype=jnp.bfloat16))
    np.testing.assert_allclose(np.asarray(out), np.asarray(ref_bf16), rtol=1e-3, atol=1e-3)

    # (2) Loose check vs. exact f32 module semantics (difference = bf16 operand rounding).
    ref_f32 = jax.block_until_ready(reference(x, weight, gamma, beta, padding=padding))
    np.testing.assert_allclose(np.asarray(out), np.asarray(ref_f32), rtol=3e-2, atol=3e-2)

    print("KERNEL_OK")
</pallas_src>

<mosaic_0001>
module attributes {stable_mosaic.version = 11 : i64} {
  func.func @_stats_kernel(%arg0: i32, %arg1: memref<2x368x4xbf16, #tpu.memory_space<vmem>>, %arg2: memref<36x128xbf16, #tpu.memory_space<vmem>>, %arg3: memref<656x1xf32, #tpu.memory_space<vmem>>, %arg4: memref<1x8x128xf32, #tpu.memory_space<vmem>>, %arg5: memref<1x8x128xf32, #tpu.memory_space<vmem>>) attributes {dimension_semantics = [#tpu.dimension_semantics<parallel>], iteration_bounds = array<i64: 1>, scalar_prefetch = 0 : i64, scratch_operands = 0 : i64, tpu.core_type = #tpu.core_type<tc>, window_params = [{transform_indices = @transform_0, window_bounds = array<i64: 2, 368, 4>}, {pipeline_mode = #tpu.pipeline_mode<synchronous>, transform_indices = @transform_1, window_bounds = array<i64: 36, 128>}, {pipeline_mode = #tpu.pipeline_mode<synchronous>, transform_indices = @transform_2, window_bounds = array<i64: 656, 1>}, {transform_indices = @transform_3, window_bounds = array<i64: 1, 8, 128>}, {transform_indices = @transform_4, window_bounds = array<i64: 1, 8, 128>}]} {
    %c0 = arith.constant 0 : index
    %c0_0 = arith.constant 0 : index
    %c0_1 = arith.constant 0 : index
    %0 = vector.load %arg1[%c0, %c0_0, %c0_1] : memref<2x368x4xbf16, #tpu.memory_space<vmem>>, vector<2x328x4xbf16>
    %c0_2 = arith.constant 0 : index
    %c1 = arith.constant 1 : index
    %c0_3 = arith.constant 0 : index
    %1 = vector.load %arg1[%c0_2, %c1, %c0_3] : memref<2x368x4xbf16, #tpu.memory_space<vmem>>, vector<2x328x4xbf16>
    %c0_4 = arith.constant 0 : index
    %c2 = arith.constant 2 : index
    %c0_5 = arith.constant 0 : index
    %2 = vector.load %arg1[%c0_4, %c2, %c0_5] : memref<2x368x4xbf16, #tpu.memory_space<vmem>>, vector<2x328x4xbf16>
    %c0_6 = arith.constant 0 : index
    %c18 = arith.constant 18 : index
    %c0_7 = arith.constant 0 : index
    %3 = vector.load %arg1[%c0_6, %c18, %c0_7] : memref<2x368x4xbf16, #tpu.memory_space<vmem>>, vector<2x328x4xbf16>
    %c0_8 = arith.constant 0 : index
    %c19 = arith.constant 19 : index
    %c0_9 = arith.constant 0 : index
    %4 = vector.load %arg1[%c0_8, %c19, %c0_9] : memref<2x368x4xbf16, #tpu.memory_space<vmem>>, vector<2x328x4xbf16>
    %c0_10 = arith.constant 0 : index
    %c20 = arith.constant 20 : index
    %c0_11 = arith.constant 0 : index
    %5 = vector.load %arg1[%c0_10, %c20, %c0_11] : memref<2x368x4xbf16, #tpu.memory_space<vmem>>, vector<2x328x4xbf16>
    %c0_12 = arith.constant 0 : index
    %c36 = arith.constant 36 : index
    %c0_13 = arith.constant 0 : index
    %6 = vector.load %arg1[%c0_12, %c36, %c0_13] : memref<2x368x4xbf16, #tpu.memory_space<vmem>>, vector<2x328x4xbf16>
    %c0_14 = arith.constant 0 : index
    %c37 = arith.constant 37 : index
    %c0_15 = arith.constant 0 : index
    %7 = vector.load %arg1[%c0_14, %c37, %c0_15] : memref<2x368x4xbf16, #tpu.memory_space<vmem>>, vector<2x328x4xbf16>
    %c0_16 = arith.constant 0 : index
    %c38 = arith.constant 38 : index
    %c0_17 = arith.constant 0 : index
    %8 = vector.load %arg1[%c0_16, %c38, %c0_17] : memref<2x368x4xbf16, #tpu.memory_space<vmem>>, vector<2x328x4xbf16>
    %9 = tpu.concatenate %0, %1, %2, %3, %4, %5, %6, %7, %8 in 2 : vector<2x328x4xbf16>, vector<2x328x4xbf16>, vector<2x328x4xbf16>, vector<2x328x4xbf16>, vector<2x328x4xbf16>, vector<2x328x4xbf16>, vector<2x328x4xbf16>, vector<2x328x4xbf16>, vector<2x328x4xbf16> -> vector<2x328x36xbf16>
    %10 = vector.shape_cast %9 : vector<2x328x36xbf16> to vector<656x36xbf16>
    %c0_18 = arith.constant 0 : index
    %c0_19 = arith.constant 0 : index
    %11 = vector.load %arg2[%c0_18, %c0_19] : memref<36x128xbf16, #tpu.memory_space<vmem>>, vector<36x128xbf16>
    %cst = arith.constant dense<0.000000e+00> : vector<656x128xf32>
    %12 = tpu.matmul %10, %11, %cst {dimension_numbers = #tpu.dot_dimension_numbers<[1], [0], [0], [1], [0, 0, 1, 1], [], []>} : vector<656x36xbf16>, vector<36x128xbf16>, vector<656x128xf32> -> vector<656x128xf32>
    %c0_20 = arith.constant 0 : index
    %c0_21 = arith.constant 0 : index
    %13 = vector.load %arg3[%c0_20, %c0_21] : memref<656x1xf32, #tpu.memory_space<vmem>>, vector<656x1xf32>
    %14 = vector.broadcast %13 : vector<656x1xf32> to vector<656x128xf32>
    %15 = arith.mulf %12, %14 : vector<656x128xf32>
    %16 = vector.shape_cast %15 : vector<656x128xf32> to vector<82x8x128xf32>
    %cst_22 = arith.constant dense<0.000000e+00> : vector<8x128xf32>
    %17 = vector.multi_reduction <add>, %16, %cst_22 [0] : vector<82x8x128xf32> to vector<8x128xf32>
    %c0_23 = arith.constant 0 : index
    %c0_24 = arith.constant 0 : index
    %c0_25 = arith.constant 0 : index
    %18 = vector.load %arg4[%c0_23, %c0_24, %c0_25] : memref<1x8x128xf32, #tpu.memory_space<vmem>>, vector<1x8x128xf32>
    %19 = vector.shape_cast %18 : vector<1x8x128xf32> to vector<8x128xf32>
    %20 = vector.shape_cast %17 : vector<8x128xf32> to vector<1x8x128xf32>
    tpu.vector_store %arg4[%c0_23, %c0_24, %c0_25], %20 {strides = array<i32>} : memref<1x8x128xf32, #tpu.memory_space<vmem>>, vector<1x8x128xf32>,
    %21 = arith.mulf %15, %12 : vector<656x128xf32>
    %22 = vector.shape_cast %21 : vector<656x128xf32> to vector<82x8x128xf32>
    %cst_26 = arith.constant dense<0.000000e+00> : vector<8x128xf32>
    %23 = vector.multi_reduction <add>, %22, %cst_26 [0] : vector<82x8x128xf32> to vector<8x128xf32>
    %c0_27 = arith.constant 0 : index
    %c0_28 = arith.constant 0 : index
    %c0_29 = arith.constant 0 : index
    %24 = vector.load %arg5[%c0_27, %c0_28, %c0_29] : memref<1x8x128xf32, #tpu.memory_space<vmem>>, vector<1x8x128xf32>
    %25 = vector.shape_cast %24 : vector<1x8x128xf32> to vector<8x128xf32>
    %26 = vector.shape_cast %23 : vector<8x128xf32> to vector<1x8x128xf32>
    tpu.vector_store %arg5[%c0_27, %c0_28, %c0_29], %26 {strides = array<i32>} : memref<1x8x128xf32, #tpu.memory_space<vmem>>, vector<1x8x128xf32>,
    return
  }
  func.func @transform_0(%arg0: i32) -> (i32, i32, i32) {
    %c0_i32 = arith.constant 0 : i32
    %c0_i32_0 = arith.constant 0 : i32
    %c0_i32_1 = arith.constant 0 : i32
    return %arg0, %c0_i32, %c0_i32_0 : i32, i32, i32
  }
  func.func @transform_1(%arg0: i32) -> (i32, i32) {
    %c0_i32 = arith.constant 0 : i32
    %c0_i32_0 = arith.constant 0 : i32
    %c0_i32_1 = arith.constant 0 : i32
    return %c0_i32, %c0_i32_0 : i32, i32
  }
  func.func @transform_2(%arg0: i32) -> (i32, i32) {
    %c0_i32 = arith.constant 0 : i32
    %c0_i32_0 = arith.constant 0 : i32
    %c0_i32_1 = arith.constant 0 : i32
    return %c0_i32, %c0_i32_0 : i32, i32
  }
  func.func @transform_3(%arg0: i32) -> (i32, i32, i32) {
    %c0_i32 = arith.constant 0 : i32
    %c0_i32_0 = arith.constant 0 : i32
    %c0_i32_1 = arith.constant 0 : i32
    return %arg0, %c0_i32, %c0_i32_0 : i32, i32, i32
  }
  func.func @transform_4(%arg0: i32) -> (i32, i32, i32) {
    %c0_i32 = arith.constant 0 : i32
    %c0_i32_0 = arith.constant 0 : i32
    %c0_i32_1 = arith.constant 0 : i32
    return %arg0, %c0_i32, %c0_i32_0 : i32, i32, i32
  }
}

</mosaic_0001>

<bundles_post_ra>
// kernel: tpu_custom_call.1
= control target key start
LH: loop header
LB: loop body
LE: loop exit
PB: predicated region body
PF: predicated region fallthrough
CT: control target
= control target key end

     0   :  { %10 = vsyncpa [#allocation3], 0  ;;  %vm341_vm0 = vsmask.f32 7424  ;;  %s4842_s11 = smov 4   ;;  %s9064_s0 = inlined_call_operand.vmem [shape: bf16[2,368,4], index: 0, kind: input, shape index: {}]   ;;  %s9065_s1 = inlined_call_operand.vmem [shape: bf16[36,128], index: 1, kind: input, shape index: {}]   ;;  %s9066_s2 = inlined_call_operand.vmem [shape: f32[656,1], index: 2, kind: input, shape index: {}]   ;;  %s9067_s3 = inlined_call_operand.hbm [shape: f32[1,8,128], index: 3, kind: output, shape index: {0}]   ;;  %s9068_s4 = inlined_call_operand.hbm [shape: f32[1,8,128], index: 4, kind: output, shape index: {1}]  }
   0x1   :  { %v23_v0 = vld [vmem:[%s9064_s0 + $0x10] sm:$0xf]  ;;  %v24_v1 = vld [vmem:[%s9064_s0 + $0x14] sm:$0xf]  ;;  %v4891_v3 = vld [vmem:[%s9064_s0 + $0x18] sm:$0xff]  }
   0x2   :  { %v4886_v2 = vcombine.low %v23_v0, %v24_v1  ;;  %v19_v4 = vld [vmem:[%s9064_s0] sm:$0xf]  ;;  %v4899_v5 = vld [vmem:[%s9064_s0 + $0x4] sm:$0xf]  ;;  %v21_v6 = vld [vmem:[%s9064_s0 + $0x8] sm:$0xf] }
   0x3   :  { %v4907_v9 = vshll.u32 %v4891_v3, 16  ;;  %v4912_v10 = vld [vmem:[%s9064_s0 + $0xc] sm:$0xf]  ;;  %v4915_v11 = vcombine.low %v19_v4, %v4899_v5  ;;  %v4920_v12 = vld [vmem:[%s9064_s0 + $0x20] sm:$0xff]   ;;  %v4926_v14 = vshrl.u32 %v4891_v3, 16  ;;  %v4949_v25 = vld [vmem:[%s9064_s0 + $0x30] sm:$0xff]  }
   0x4   :  { %9234 = vst [vmem:[#allocation8_spill] sm:$0xff] %v4886_v2  ;;  %v9069_v7 = vshll.u32 %v4886_v2, 16  ;;  %v9070_v8 = vshrl.u32 %v4886_v2, 16  ;;  %v4923_v13 = vcombine.low %v21_v6, %v4912_v10  ;;  %v4931_v15 = vld [vmem:[%s9064_s0 + $0x28] sm:$0xff]   ;;  %v4940_v21 = vshll.u32 %v4920_v12, 16  ;;  %v4969_v35 = vld [vmem:[%s9064_s0 + $0x38] sm:$0xff]  }
   0x5   :  { %9235 = vst [vmem:[#allocation9_spill] sm:$0xff] %v4907_v9  ;;  %9236 = vst [vmem:[#allocation10_spill] sm:$0xff] %v4915_v11  ;;  %v368_v17 = vrot.slane %v4907_v9, 1  ;;  %v343_v18 = vshrl.u32 %v4915_v11, 16  ;;  %v345_v19 = vshll.u32 %v4915_v11, 16  ;;  %v4952_v26 = vshll.u32 %v4931_v15, 16 }
   0x6   :  { %9237 = vst [vmem:[#allocation11_spill] sm:$0xff] %v4923_v13  ;;  %9238 = vst [vmem:[#allocation12_spill] sm:$0xff] %v4926_v14  ;;  %v360_v16 = vrot.slane %v9069_v7, 1  ;;  %v350_v20 = vshll.u32 %v4923_v13, 16  ;;  %v354_v22 = vshrl.u32 %v4923_v13, 16  ;;  %v376_v29 = vrot.slane %v4940_v21, 1 }
   0x7   :  { %9239 = vst [vmem:[#allocation13_spill] sm:$0xff] %v4940_v21  ;;  %v372_v24 = vor.u32 %v4926_v14, %v368_v17  ;;  %9240 = vst [vmem:[#allocation14_spill] sm:$0xff] %v4952_v26  ;;  %v347_v27 = vrot.slane %v345_v19, 1  ;;  %v4956_v30 = vshrl.u32 %v4931_v15, 16  ;;  %v384_v32 = vrot.slane %v4952_v26, 1  ;;  %v4975_v38 = vld [vmem:[%s9064_s0 + $0x40] sm:$0xff]  }
   0x8   :  { %v364_v23 = vor.u32 %v9070_v8, %v360_v16  ;;  %v352_v28 = vrot.slane %v350_v20, 1  ;;  %v4961_v33 = vshll.u32 %v4949_v25, 16  ;;  %v4964_v34 = vshrl.u32 %v4920_v12, 16  ;;  %v4996_v48 = vld [vmem:[%s9064_s0 + $0x48] sm:$0xff]   ;;  %v5001_v49 = vld [vmem:[%s9064_s0 + $0x50] sm:$0xff]   ;;  %v5020_v57 = vld [vmem:[%s9064_s0 + $0x58] sm:$0xff]  }
   0x9   :  { %9241 = vst [vmem:[#allocation15_spill] sm:$0xff] %v4956_v30  ;;  %v348_v36 = vor.u32 %v347_v27, %v343_v18  ;;  %v377_v39 = vsel %vm341_vm0, %v372_v24, %v376_v29  ;;  %v388_v40 = vor.u32 %v4956_v30, %v384_v32  ;;  %v4981_v42 = vshll.u32 %v4969_v35, 16  ;;  %v5025_v58 = vld [vmem:[%s9064_s0 + $0x60] sm:$0xff]   ;;  %v5042_v0 = vld [vmem:[%s9064_s0 + $0x68] sm:$0xff]   ;;  %v5070_v24 = vld [vmem:[%s9064_s0 + $0x78] sm:$0xff]  }
   0xa   :  { %v369_v31 = vsel %vm341_vm0, %v364_v23, %v368_v17  ;;  %9242 = vst [vmem:[#allocation16_spill] sm:$0xff] %v4961_v33  ;;  %9243 = vst [vmem:[#allocation17_spill] sm:$0xff] %v4964_v34  ;;  %v356_v37 = vor.u32 %v354_v22, %v352_v28  ;;  %v392_v41 = vrot.slane %v4961_v33, 1  ;;  %v4985_v44 = vshrl.u32 %v4969_v35, 16  ;;  %v5056_v17 = vld [vmem:[%s9064_s0 + $0x70] sm:$0xff]  }
   0xb   :  { %680 = vrot.lane.b32.xlu1 %v369_v31, %s4842_s11  ;;  %9244 = vst [vmem:[#allocation18_spill] sm:$0xff] %v4981_v42  ;;  %v353_v43 = vsel %vm341_vm0, %v348_v36, %v352_v28  ;;  %v4988_v45 = vshll.u32 %v4975_v38, 16  ;;  %v380_v46 = vor.u32 %v4964_v34, %v376_v29  ;;  %v400_v47 = vrot.slane %v4981_v42, 1  ;;  %v5080_v29 = vld [vmem:[%s9064_s0 + $0x80] sm:$0xff]   ;;  %v60_v8 = vld [vmem:[%s9064_s0 + $0xb8] sm:$0xf] }
   0xc   :  { %9245 = vst [vmem:[#allocation19_spill] sm:$0xff] %v4985_v44  ;;  %676 = vrot.lane.b32.xlu0 %v353_v43, %s4842_s11  ;;  %v361_v50 = vsel %vm341_vm0, %v356_v37, %v360_v16  ;;  %v5007_v52 = vshrl.u32 %v4949_v25, 16  ;;  %v393_v53 = vsel %vm341_vm0, %v388_v40, %v392_v41  ;;  %v5012_v55 = vshll.u32 %v4996_v48, 16  ;;  %v5091_v37 = vld [vmem:[%s9064_s0 + $0x88] sm:$0xff]   ;;  %v5147_v11 = vld [vmem:[%s9064_s0 + $0xbc] sm:$0xf] }
   0xd   :  { %9246 = vst [vmem:[#allocation20_spill] sm:$0xff] %v4988_v45  ;;  %v408_v51 = vrot.slane %v4988_v45, 1  ;;  %v404_v54 = vor.u32 %v4985_v44, %v400_v47  ;;  %v5015_v56 = vshrl.u32 %v4996_v48, 16  ;;  %v5028_v59 = vshll.u32 %v5001_v49, 16 }
   0xe   :  { %9247 = vst [vmem:[#allocation21_spill] sm:$0xff] %v5007_v52  ;;  %9248 = vst [vmem:[#allocation22_spill] sm:$0xff] %v5012_v55  ;;  %v385_v60 = vsel %vm341_vm0, %v380_v46, %v384_v32  ;;  %v416_v61 = vrot.slane %v5012_v55, 1  ;;  %v5034_v62 = vshrl.u32 %v4975_v38, 16  ;;  %v5037_v63 = vshll.u32 %v5020_v57, 16 }
   0xf   :  { %682 = vrot.lane.b32.xlu1 %v377_v39, %s4842_s11  ;;  %9249 = vst [vmem:[#allocation23_spill] sm:$0xff] %v5015_v56  ;;  %9250 = vst [vmem:[#allocation24_spill] sm:$0xff] %v5028_v59  ;;  %v396_v1 = vor.u32 %v5007_v52, %v392_v41  ;;  %v424_v4 = vrot.slane %v5028_v59, 1  ;;  %v5048_v6 = vshrl.u32 %v5020_v57, 16  ;;  %v5051_v16 = vshll.u32 %v5025_v58, 16 }
  0x10   :  { %678 = vrot.lane.b32.xlu0 %v361_v50, %s4842_s11  ;;  %9251 = vst [vmem:[#allocation25_spill] sm:$0xff] %v5034_v62  ;;  %9252 = vst [vmem:[#allocation26_spill] sm:$0xff] %v5037_v63  ;;  %v409_v18 = vsel %vm341_vm0, %v404_v54, %v408_v51  ;;  %v420_v19 = vor.u32 %v5015_v56, %v416_v61  ;;  %v432_v20 = vrot.slane %v5037_v63, 1  ;;  %v5062_v22 = vshll.u32 %v5042_v0, 16  ;;  %v5114_v54 = vld [vmem:[%s9064_s0 + $0x90] sm:$0xff]  }
  0x11   :  { %9253 = vst [vmem:[#allocation27_spill] sm:$0xff] %v5048_v6  ;;  %9254 = vst [vmem:[#allocation28_spill] sm:$0xff] %v5051_v16  ;;  %v5065_v23 = vshrl.u32 %v5001_v49, 16  ;;  %v440_v27 = vrot.slane %v5051_v16, 1  ;;  %v5075_v28 = vshrl.u32 %v5042_v0, 16  ;;  %v401_v31 = vsel %vm341_vm0, %v396_v1, %v400_v47 }
  0x12   :  { %9255 = vst [vmem:[#allocation29_spill] sm:$0xff] %v5062_v22  ;;  %v412_v32 = vor.u32 %v5034_v62, %v408_v51  ;;  %v5086_v36 = vshll.u32 %v5070_v24, 16  ;;  %v425_v39 = vsel %vm341_vm0, %v420_v19, %v424_v4  ;;  %v436_v40 = vor.u32 %v5048_v6, %v432_v20  ;;  %v5132_v19 = vld [vmem:[%s9064_s0 + $0x98] sm:$0xff]   ;;  %v5323_v62 = vld [vmem:[%s9064_s0 + $0x110] sm:$0xff]  }
  0x13   :  { %686 = vrot.lane.b32.xlu1 %v393_v53, %s4842_s11  ;;  %9256 = vst [vmem:[#allocation30_spill] sm:$0xff] %v5065_v23  ;;  %9257 = vst [vmem:[#allocation31_spill] sm:$0xff] %v5075_v28  ;;  %v448_v41 = vrot.slane %v5062_v22, 1  ;;  %v5097_v43 = vshll.u32 %v5056_v17, 16  ;;  %v428_v46 = vor.u32 %v5065_v23, %v424_v4  ;;  %v5101_v47 = vshrl.u32 %v5025_v58, 16 }
  0x14   :  { %684 = vrot.lane.b32.xlu0 %v385_v60, %s4842_s11  ;;  %9258 = vst [vmem:[#allocation32_spill] sm:$0xff] %v5086_v36  ;;  %v464_v50 = vrot.slane %v5086_v36, 1  ;;  %v5106_v51 = vshrl.u32 %v5070_v24, 16  ;;  %v5109_v53 = vshll.u32 %v5080_v29, 16  ;;  %v417_v60 = vsel %vm341_vm0, %v412_v32, %v416_v61  ;;  %v5124_v4 = vld [vmem:[%s9064_s0 + $0xa0] sm:$0xf] }
  0x15   :  { %9259 = vst [vmem:[#allocation33_spill] sm:$0xff] %v5097_v43  ;;  %9260 = vst [vmem:[#allocation34_spill] sm:$0xff] %v5101_v47  ;;  %v5119_v1 = vshll.u32 %v5091_v37, 16  ;;  %v452_v61 = vor.u32 %v5075_v28, %v448_v41  ;;  %v456_v32 = vrot.slane %v5097_v43, 1  ;;  %v5139_v7 = vshrl.u32 %v5056_v17, 16 }
  0x16   :  { %9261 = vst [vmem:[#allocation35_spill] sm:$0xff] %v5106_v51  ;;  %9262 = vst [vmem:[#allocation36_spill] sm:$0xff] %v5109_v53  ;;  %v472_v36 = vrot.slane %v5109_v53, 1  ;;  %v468_v43 = vor.u32 %v5106_v51, %v464_v50  ;;  %v5162_v28 = vshll.u32 %v5114_v54, 16  ;;  %v65_v51 = vld [vmem:[%s9064_s0 + $0xcc] sm:$0xf] }
  0x17   :  { %690 = vrot.lane.b32.xlu1 %v409_v18, %s4842_s11  ;;  %9263 = vst [vmem:[#allocation37_spill] sm:$0xff] %v5119_v1  ;;  %9264 = vst [vmem:[#allocation38_spill] sm:$0xff] %v5124_v4  ;;  %v101_v18 = vld [vmem:[%s9064_s0 + $0xa4] sm:$0x1]  ;;  %v480_v22 = vrot.slane %v5119_v1, 1  ;;  %v457_v53 = vsel %vm341_vm0, %v452_v61, %v456_v32  ;;  %v460_v16 = vor.u32 %v5139_v7, %v456_v32  ;;  %v5196_v59 = vshrl.u32 %v5132_v19, 16 }
  0x18   :  { %688 = vrot.lane.b32.xlu0 %v401_v31, %s4842_s11  ;;  %v441_v31 = vsel %vm341_vm0, %v436_v40, %v440_v27  ;;  %9265 = vst [vmem:[#allocation39_spill] sm:$0xff] %v5139_v7  ;;  %v444_v40 = vor.u32 %v5101_v47, %v440_v27  ;;  %9267 = vst [vmem:[#allocation41_spill] sm:$0xff] %v5162_v28  ;;  %v62_v27 = vld [vmem:[%s9064_s0 + $0xc0] sm:$0xf]  ;;  %v64_v1 = vld [vmem:[%s9064_s0 + $0xc8] sm:$0xf]  ;;  %v473_v63 = vsel %vm341_vm0, %v468_v43, %v472_v36 }
  0x19   :  { %v5189_v47 = vshrl.u32 %v5080_v29, 16  ;;  %9272 = vst [vmem:[#allocation46_spill] sm:$0xff] %v5196_v59  ;;  %v488_v32 = vrot.slane %v5162_v28, 1  ;;  %v5204_v7 = vcombine.low %v64_v1, %v65_v51  ;;  %v5209_v43 = vld [vmem:[%s9064_s0 + $0xd0] sm:$0xff]   ;;  %v5219_v28 = vshrl.u32 %v5114_v54, 16 }
  0x1a   :  { %v449_v61 = vsel %vm341_vm0, %v444_v40, %v448_v41  ;;  %v465_v51 = vsel %vm341_vm0, %v460_v16, %v464_v50  ;;  %v5352_v33 = vshll.u32 %v5323_v62, 16 }
  0x1b   :  { %694 = vrot.lane.b32.xlu1 %v425_v39, %s4842_s11  ;;  %v433_v39 = vsel %vm341_vm0, %v428_v46, %v432_v20  ;;  %v5153_v20 = vshrl.u32 %v5091_v37, 16  ;;  %v5156_v46 = vcombine.low %v5124_v4, %v101_v18  ;;  %v5174_v18 = vld [vmem:[%s9064_s0 + $0xc4] sm:$0xf]  ;;  %9271 = vst [vmem:[#allocation45_spill] sm:$0xff] %v5189_v47  ;;  %9274 = vst [vmem:[#allocation48_spill] sm:$0xff] %v5204_v7 }
  0x1c   :  { %692 = vrot.lane.b32.xlu0 %v417_v60, %s4842_s11  ;;  %v5165_v60 = vshll.u32 %v5132_v19, 16  ;;  %9269 = vst [vmem:[#allocation43_spill] sm:$0xff] %v5174_v18  ;;  %9275 = vst [vmem:[#allocation49_spill] sm:$0xff] %v5219_v28  ;;  %v492_v50 = vor.u32 %v5219_v28, %v488_v32 }
  0x1d   :  { %9266 = vst [vmem:[#allocation40_spill] sm:$0xff] %v5153_v20  ;;  %v484_v41 = vor.u32 %v5153_v20, %v480_v22  ;;  %9291 = vst [vmem:[#allocation65_spill] sm:$0xff] %v5352_v33 }
  0x1e   :  { %9268 = vst [vmem:[#allocation42_spill] sm:$0xff] %v5165_v60  ;;  %v496_v6 = vrot.slane %v5165_v60, 1 }
  0x1f   :  { %698 = vrot.lane.b32.xlu1 %v441_v31, %s4842_s11  ;;  %v5177_v31 = vcombine.low %v60_v8, %v5147_v11  ;;  %v502_v8 = vshll.u32 %v5156_v46, 16  ;;  %v489_v55 = vsel %vm341_vm0, %v484_v41, %v488_v32  ;;  %v506_v32 = vshrl.u32 %v5156_v46, 16 }
  0x20   :  { %696 = vrot.lane.b32.xlu0 %v433_v39, %s4842_s11  ;;  %v5199_v39 = vcombine.low %v62_v27, %v5174_v18  ;;  %v476_v27 = vor.u32 %v5189_v47, %v472_v36  ;;  %v500_v1 = vor.u32 %v5196_v59, %v496_v6  ;;  %v5274_v47 = vld [vmem:[%s9064_s0 + $0xf0] sm:$0xff]  }
  0x21   :  { %9270 = vst [vmem:[#allocation44_spill] sm:$0xff] %v5177_v31  ;;  %v512_v40 = vshll.u32 %v5177_v31, 16  ;;  %v504_v60 = vrot.slane %v502_v8, 1  ;;  %v510_v20 = vshrl.u32 %v5177_v31, 16  ;;  %v5239_v8 = vshll.u32 %v5209_v43, 16 }
  0x22   :  { %9273 = vst [vmem:[#allocation47_spill] sm:$0xff] %v5199_v39  ;;  %v517_v23 = vshll.u32 %v5199_v39, 16  ;;  %v481_v36 = vsel %vm341_vm0, %v476_v27, %v480_v22  ;;  %v5247_v22 = vld [vmem:[%s9064_s0 + $0xe8] sm:$0xff]  }
  0x23   :  { %702 = vrot.lane.b32.xlu1 %v457_v53, %s4842_s11  ;;  %v5214_v53 = vld [vmem:[%s9064_s0 + $0xd8] sm:$0xff]   ;;  %v514_v56 = vrot.slane %v512_v40, 1  ;;  %v505_v16 = vsel %vm341_vm0, %v500_v1, %v504_v60  ;;  %9276 = vst [vmem:[#allocation50_spill] sm:$0xff] %v5239_v8  ;;  %v521_v1 = vshrl.u32 %v5199_v39, 16  ;;  %v535_v28 = vrot.slane %v5239_v8, 1 }
  0x24   :  { %700 = vrot.lane.b32.xlu0 %v449_v61, %s4842_s11  ;;  %v9113_v61 = vshll.u32 %v5204_v7, 16  ;;  %v5242_v41 = vshll.u32 %v5214_v53, 16  ;;  %v519_v27 = vrot.slane %v517_v23, 1  ;;  %v5256_v31 = vshrl.u32 %v5214_v53, 16 }
  0x25   :  { %v515_v40 = vor.u32 %v514_v56, %v510_v20  ;;  %v497_v56 = vsel %vm341_vm0, %v492_v50, %v496_v6  ;;  %v5265_v20 = vshll.u32 %v5247_v22, 16  ;;  %v5279_v6 = vld [vmem:[%s9064_s0 + $0xf8] sm:$0xff]  }
  0x26   :  { %9277 = vst [vmem:[#allocation51_spill] sm:$0xff] %v5242_v41  ;;  %9278 = vst [vmem:[#allocation52_spill] sm:$0xff] %v5256_v31  ;;  %v543_v23 = vrot.slane %v5242_v41, 1  ;;  %v523_v50 = vor.u32 %v521_v1, %v519_v27  ;;  %v5307_v1 = vshll.u32 %v5279_v6, 16 }
  0x27   :  { %706 = vrot.lane.b32.xlu1 %v473_v63, %s4842_s11  ;;  %v5233_v63 = vld [vmem:[%s9064_s0 + $0xe0] sm:$0xff]   ;;  %9280 = vst [vmem:[#allocation54_spill] sm:$0xff] %v5265_v20  ;;  %v559_v45 = vrot.slane %v5265_v20, 1 }
  0x28   :  { %704 = vrot.lane.b32.xlu0 %v465_v51, %s4842_s11  ;;  %v9118_v51 = vshrl.u32 %v5204_v7, 16  ;;  %v5259_v59 = vshll.u32 %v5233_v63, 16  ;;  %v547_v41 = vor.u32 %v5256_v31, %v543_v23  ;;  %9284 = vst [vmem:[#allocation58_spill] sm:$0xff] %v5307_v1 }
  0x2a   :  { %9279 = vst [vmem:[#allocation53_spill] sm:$0xff] %v5259_v59  ;;  %v551_v8 = vrot.slane %v5259_v59, 1 }
  0x2b   :  { %710 = vrot.lane.b32.xlu1 %v489_v55, %s4842_s11  ;;  %v527_v55 = vrot.slane %v9113_v61, 1 }
  0x2c   :  { %708 = vrot.lane.b32.xlu0 %v481_v36, %s4842_s11  ;;  %v520_v36 = vsel %vm341_vm0, %v515_v40, %v519_v27  ;;  %v5283_v40 = vshrl.u32 %v5209_v43, 16 }
  0x2d   :  { %v531_v61 = vor.u32 %v9118_v51, %v527_v55  ;;  %v5288_v51 = vld [vmem:[%s9064_s0 + $0x100] sm:$0xff]   ;;  %v528_v59 = vsel %vm341_vm0, %v523_v50, %v527_v55  ;;  %v5332_v55 = vshrl.u32 %v5279_v6, 16 }
  0x2e   :  { %9281 = vst [vmem:[#allocation55_spill] sm:$0xff] %v5283_v40  ;;  %v5314_v20 = vshll.u32 %v5288_v51, 16  ;;  %v539_v31 = vor.u32 %v5283_v40, %v535_v28 }
  0x2f   :  { %714 = vrot.lane.b32.xlu1 %v505_v16, %s4842_s11  ;;  %v508_v16 = vor.u32 %v506_v32, %v504_v60  ;;  %v5300_v60 = vld [vmem:[%s9064_s0 + $0x108] sm:$0xff]   ;;  %v536_v27 = vsel %vm341_vm0, %v531_v61, %v535_v28  ;;  %v5304_v32 = vshll.u32 %v5274_v47, 16  ;;  %v552_v61 = vsel %vm341_vm0, %v547_v41, %v551_v8  ;;  %9288 = vst [vmem:[#allocation62_spill] sm:$0xff] %v5332_v55  ;;  %v5337_v28 = vld [vmem:[%s9064_s0 + $0x118] sm:$0xff]  }
  0x30   :  { %712 = vrot.lane.b32.xlu0 %v497_v56, %s4842_s11  ;;  %v5295_v56 = vshrl.u32 %v5247_v22, 16  ;;  %9286 = vst [vmem:[#allocation60_spill] sm:$0xff] %v5314_v20  ;;  %v583_v50 = vrot.slane %v5314_v20, 1  ;;  %v5349_v40 = vshrl.u32 %v5300_v60, 16 }
  0x31   :  { %9283 = vst [vmem:[#allocation57_spill] sm:$0xff] %v5304_v32  ;;  %v567_v44 = vrot.slane %v5304_v32, 1 }
  0x32   :  { %9282 = vst [vmem:[#allocation56_spill] sm:$0xff] %v5295_v56  ;;  %v563_v42 = vor.u32 %v5295_v56, %v559_v45  ;;  %v5343_v56 = vshrl.u32 %v5274_v47, 16  ;;  %9290 = vst [vmem:[#allocation64_spill] sm:$0xff] %v5349_v40 }
  0x33   :  { %718 = vrot.lane.b32.xlu1 %v520_v36, %s4842_s11  ;;  %v5311_v36 = vshrl.u32 %v5233_v63, 16 }
  0x34   :  { %716 = vrot.lane.b32.xlu0 %v508_v16, %s4842_s11  ;;  %v5326_v16 = vshll.u32 %v5300_v60, 16  ;;  %9289 = vst [vmem:[#allocation63_spill] sm:$0xff] %v5343_v56 }
  0x35   :  { %9285 = vst [vmem:[#allocation59_spill] sm:$0xff] %v5311_v36  ;;  %v555_v41 = vor.u32 %v5311_v36, %v551_v8  ;;  %v568_v8 = vsel %vm341_vm0, %v563_v42, %v567_v44 }
  0x36   :  { %9287 = vst [vmem:[#allocation61_spill] sm:$0xff] %v5326_v16  ;;  %v591_v32 = vrot.slane %v5326_v16, 1  ;;  %v5372_v16 = vshrl.u32 %v5288_v51, 16 }
  0x37   :  { %722 = vrot.lane.b32.xlu1 %v536_v27, %s4842_s11  ;;  %v575_v27 = vrot.slane %v5307_v1, 1  ;;  %v544_v1 = vsel %vm341_vm0, %v539_v31, %v543_v23  ;;  %v5367_v31 = vld [vmem:[%s9064_s0 + $0x128] sm:$0xff]   ;;  %v560_v23 = vsel %vm341_vm0, %v555_v41, %v559_v45 }
  0x38   :  { %720 = vrot.lane.b32.xlu0 %v528_v59, %s4842_s11  ;;  %v5357_v59 = vld [vmem:[%s9064_s0 + $0x120] sm:$0xff]   ;;  %9293 = vst [vmem:[#allocation67_spill] sm:$0xff] %v5372_v16 }
  0x39   :  { %v579_v20 = vor.u32 %v5332_v55, %v575_v27 }
  0x3b   :  { %726 = vrot.lane.b32.xlu1 %v552_v61, %s4842_s11  ;;  %v5362_v61 = vshll.u32 %v5337_v28, 16 }
  0x3c   :  { %724 = vrot.lane.b32.xlu0 %v544_v1, %s4842_s11 }
  0x3d   :  { %9292 = vst [vmem:[#allocation66_spill] sm:$0xff] %v5362_v61 }
  0x3e   :  { %11 = vsyncpa [#allocation5], 0  ;;  %v571_v42 = vor.u32 %v5343_v56, %v567_v44  ;;  %v595_v55 = vor.u32 %v5349_v40, %v591_v32  ;;  %v599_v36 = vrot.slane %v5352_v33, 1  ;;  %v5379_v52 = vshll.u32 %v5357_v59, 16  ;;  %v5384_v1 = vld [vmem:[%s9064_s0 + $0x130] sm:$0xff]   ;;  %v5397_v33 = vld [vmem:[%s9064_s0 + $0x138] sm:$0xff]  }
  0x3f   :  { %730 = vrot.lane.b32.xlu1 %v568_v8, %s4842_s11  ;;  %v584_v45 = vsel %vm341_vm0, %v579_v20, %v583_v50  ;;  %v607_v41 = vrot.slane %v5362_v61, 1  ;;  %v5389_v8 = vshrl.u32 %v5337_v28, 16  ;;  %v5392_v44 = vshll.u32 %v5367_v31, 16  ;;  %s4843_s17 = smov 8   ;;  %s4844_s21 = smov 12  }
  0x40   :  { %9294 = vst [vmem:[#allocation68_spill] sm:$0xff] %v5379_v52  ;;  %728 = vrot.lane.b32.xlu0 %v560_v23, %s4842_s11  ;;  %v587_v40 = vor.u32 %v5372_v16, %v583_v50  ;;  %v5402_v56 = vshrl.u32 %v5323_v62, 16  ;;  %v576_v20 = vsel %vm341_vm0, %v571_v42, %v575_v27  ;;  %v600_v61 = vsel %vm341_vm0, %v595_v55, %v599_v36  ;;  %v5414_v23 = vld [vmem:[%s9064_s0 + $0x140] sm:$0xff]   ;;  %v5427_v55 = vld [vmem:[%s9064_s0 + $0x148] sm:$0xff]   ;;  %s4845_s10 = smov 16   ;;  %s4846_s25 = smov 20  }
  0x41   :  { %9295 = vst [vmem:[#allocation69_spill] sm:$0xff] %v5389_v8  ;;  %9296 = vst [vmem:[#allocation70_spill] sm:$0xff] %v5392_v44  ;;  %v615_v26 = vrot.slane %v5379_v52, 1  ;;  %v5409_v30 = vshll.u32 %v5384_v1, 16  ;;  %v611_v50 = vor.u32 %v5389_v8, %v607_v41  ;;  %v623_v16 = vrot.slane %v5392_v44, 1  ;;  %s4847_s20 = smov 24  }
  0x42   :  { %9297 = vst [vmem:[#allocation71_spill] sm:$0xff] %v5402_v56  ;;  %v5422_v27 = vshll.u32 %v5397_v33, 16  ;;  %v592_v42 = vsel %vm341_vm0, %v587_v40, %v591_v32  ;;  %v603_v52 = vor.u32 %v5402_v56, %v599_v36  ;;  %v5435_v8 = vshrl.u32 %v5357_v59, 16  ;;  %v102_v56 = vld [vmem:[%s9064_s0 + $0x15c] sm:$0x1]  ;;  %s4850_s18 = smov 32  }
  0x43   :  { %734 = vrot.lane.b32.xlu1 %v584_v45, %s4842_s11  ;;  %9298 = vst [vmem:[#allocation72_spill] sm:$0xff] %v5409_v30  ;;  %v5419_v45 = vshrl.u32 %v5367_v31, 16  ;;  %v631_v44 = vrot.slane %v5409_v30, 1  ;;  %v5438_v21 = vshrl.u32 %v5397_v33, 16  ;;  %v5441_v34 = vshll.u32 %v5414_v23, 16  ;;  %s4851_s23 = smov 28  }
  0x44   :  { %9300 = vst [vmem:[#allocation74_spill] sm:$0xff] %v5422_v27  ;;  %732 = vrot.lane.b32.xlu0 %v576_v20, %s4842_s11  ;;  %9301 = vst [vmem:[#allocation75_spill] sm:$0xff] %v5435_v8  ;;  %v5446_v20 = vld [vmem:[%s9064_s0 + $0x150] sm:$0xff]   ;;  %v616_v40 = vsel %vm341_vm0, %v611_v50, %v615_v26  ;;  %v639_v36 = vrot.slane %v5422_v27, 1  ;;  %v5457_v30 = vld [vmem:[%s9064_s0 + $0x158] sm:$0xf]  ;;  %v608_v50 = vsel %vm341_vm0, %v603_v52, %v607_v41 }
  0x45   :  { %9299 = vst [vmem:[#allocation73_spill] sm:$0xff] %v5419_v45  ;;  %9302 = vst [vmem:[#allocation76_spill] sm:$0xff] %v5438_v21  ;;  %v627_v32 = vor.u32 %v5419_v45, %v623_v16  ;;  %v5465_v45 = vshrl.u32 %v5384_v1, 16  ;;  %v619_v27 = vor.u32 %v5435_v8, %v615_v26  ;;  %v5470_v9 = vshrl.u32 %v5427_v55, 16 }
  0x46   :  { %9303 = vst [vmem:[#allocation77_spill] sm:$0xff] %v5441_v34  ;;  %v5473_v14 = vshll.u32 %v5446_v20, 16  ;;  %v5476_v18 = vcombine.low %v5457_v30, %v102_v56  ;;  %v643_v52 = vor.u32 %v5438_v21, %v639_v36  ;;  %v647_v41 = vrot.slane %v5441_v34, 1 }
  0x47   :  { %738 = vrot.lane.b32.xlu1 %v600_v61, %s4842_s11  ;;  %v5452_v61 = vshll.u32 %v5427_v55, 16  ;;  %9305 = vst [vmem:[#allocation79_spill] sm:$0xff] %v5465_v45  ;;  %9306 = vst [vmem:[#allocation80_spill] sm:$0xff] %v5470_v9  ;;  %v635_v26 = vor.u32 %v5465_v45, %v631_v44  ;;  %v5487_v8 = vshrl.u32 %v5414_v23, 16  ;;  %vm766_vm1 = vcmask 1046528  }
  0x48   :  { %736 = vrot.lane.b32.xlu0 %v592_v42, %s4842_s11  ;;  %9307 = vst [vmem:[#allocation81_spill] sm:$0xff] %v5473_v14  ;;  %v632_v42 = vsel %vm341_vm0, %v627_v32, %v631_v44  ;;  %v669_v56 = vshll.u32 %v5476_v18, 16  ;;  %v648_v32 = vsel %vm341_vm0, %v643_v52, %v647_v41  ;;  %v663_v34 = vrot.slane %v5473_v14, 1  ;;  %v103_v14 = vld [vmem:[%s9064_s0] sm:$0xe] }
  0x49   :  { %9304 = vst [vmem:[#allocation78_spill] sm:$0xff] %v5452_v61  ;;  %v655_v4 = vrot.slane %v5452_v61, 1  ;;  %9308 = vst [vmem:[#allocation82_spill] sm:$0xff] %v5487_v8  ;;  %v651_v44 = vor.u32 %v5487_v8, %v647_v41  ;;  %vm1057_vm2 = vsmask.f32 6400  ;;  %vm1344_vm3 = vcmask 1045504  }
  0x4a   :  { %vm3080_vm4 = vcmask 1041408   ;;  %vm4849_vm5 = vmmov 0   ;;  %vm1922_vm6 = vcmask 1044480   ;;  %vm1635_vm7 = vsmask.f32 5376 }
  0x4b   :  { %742 = vrot.lane.b32.xlu1 %v616_v40, %s4842_s11  ;;  %v624_v40 = vsel %vm341_vm0, %v619_v27, %v623_v16  ;;  %v659_v21 = vor.u32 %v5470_v9, %v655_v4  ;;  %v671_v16 = vrot.slane %v669_v56, 1  ;;  %v673_v27 = vshrl.u32 %v5476_v18, 16 }
  0x4c   :  { %740 = vrot.lane.b32.xlu0 %v608_v50, %s4842_s11  ;;  %v640_v50 = vsel %vm341_vm0, %v635_v26, %v639_v36  ;;  %v656_v36 = vsel %vm341_vm0, %v651_v44, %v655_v4  ;;  %v768_v56 = vrot.slane %v4923_v13, 1  ;;  %vm2089_vm8 = vcmask 31744  }
  0x4d   :  { %v664_v52 = vsel %vm341_vm0, %v659_v21, %v663_v34  ;;  %v675_v26 = vor.u32 %v673_v27, %v671_v16  ;;  %v778_v27 = vrot.slane %v4949_v25, 1  ;;  %vm2176_vm9 = vcmask 64512  }
  0x4e   :  { %vm2261_vm10 = vcmask 97280   ;;  %vm2346_vm11 = vcmask 130048   ;;  %vm2431_vm12 = vcmask 162816   ;;  %vm2516_vm13 = vcmask 195584  }
  0x4f   :  { %746 = vrot.lane.b32.xlu1 %v632_v42, %s4842_s11  ;;  %v5499_v42 = vshrl.u32 %v5446_v20, 16  ;;  %vm2601_vm14 = vcmask 228352   ;;  %vm2686_vm15 = vcmask 261120  }
  0x50   :  { %744 = vrot.lane.b32.xlu0 %v624_v40, %s4842_s11  ;;  %v4337_v40 = vcombine.low %v103_v14, %v4899_v5  ;;  %v774_v5 = vrot.slane %v4920_v12, 1 }
  0x51   :  { %9309 = vst [vmem:[#allocation83_spill] sm:$0xff] %v5499_v42  ;;  %v667_v41 = vor.u32 %v5499_v42, %v663_v34  ;;  %v772_v34 = vrot.slane %v4891_v3, 1 }
  0x53   :  { %750 = vrot.lane.b32.xlu1 %v648_v32, %s4842_s11  ;;  %v5512_v32 = vrot.slane %v4886_v2, 1  ;;  %v672_v21 = vsel %vm341_vm0, %v667_v41, %v671_v16  ;;  %v5525_v44 = vsel %vm766_vm1, %v772_v34, %v774_v5  ;;  %v776_v16 = vrot.slane %v4931_v15, 1 }
  0x54   :  { %748 = vrot.lane.b32.xlu0 %v640_v50, %s4842_s11  ;;  %v767_v50 = vrot.slane %v4337_v40, 1  ;;  %v786_v41 = vrot.slane %v5001_v49, 1  ;;  %v788_v40 = vrot.slane %v5020_v57, 1  ;;  %vm2956_vm0 = vcmask 293888  }
  0x55   :  { %v771_v4 = vsel %vm766_vm1, %v768_v56, %v5512_v32  ;;  %v5534_v3 = vsel %vm766_vm1, %v5512_v32, %v772_v34  ;;  %v5537_v12 = vsel %vm766_vm1, %v776_v16, %v778_v27  ;;  %v5546_v15 = vsel %vm766_vm1, %v774_v5, %v776_v16 }
  0x56   :  { %v769_v14 = vsel %vm766_vm1, %v767_v50, %v768_v56  ;;  %v790_v56 = vrot.slane %v5025_v58, 1  ;;  %v794_v50 = vrot.slane %v5056_v17, 1  ;;  %v5582_v57 = vsel %vm766_vm1, %v786_v41, %v788_v40 }
  0x57   :  { %754 = vrot.lane.b32.xlu1 %v664_v52, %s4842_s11  ;;  %v780_v52 = vrot.slane %v4969_v35, 1  ;;  %v798_v34 = vrot.slane %v5080_v29, 1  ;;  %v800_v5 = vrot.slane %v5091_v37, 1  ;;  %v5615_v37 = vrot.slane %v5132_v19, 1 }
  0x58   :  { %752 = vrot.lane.b32.xlu0 %v656_v36, %s4842_s11  ;;  %v782_v36 = vrot.slane %v4975_v38, 1  ;;  %v5573_v49 = vsel %vm766_vm1, %v788_v40, %v790_v56 }
  0x59   :  { %v5558_v35 = vsel %vm766_vm1, %v778_v27, %v780_v52 }
  0x5a   :  { %v5549_v25 = vsel %vm766_vm1, %v780_v52, %v782_v36 }
  0x5b   :  { %758 = vrot.lane.b32.xlu1 %v675_v26, %s4842_s11  ;;  %v784_v26 = vrot.slane %v4996_v48, 1 }
  0x5c   :  { %756 = vrot.lane.b32.xlu0 %v672_v21, %s4842_s11  ;;  %v792_v21 = vrot.slane %v5042_v0, 1 }
  0x5d   :  { %v5561_v38 = vsel %vm766_vm1, %v784_v26, %v786_v41  ;;  %v5570_v48 = vsel %vm766_vm1, %v782_v36, %v784_v26  ;;  %v105_v36 = vld [vmem:[%s9064_s0 + $0x8] sm:$0xe]  ;;  %v5629_v26 = vsel %vm766_vm1, %v798_v34, %v800_v5  ;;  %v809_v41 = vrot.slane %v5199_v39, 1 }
  0x5e   :  { %v5585_v58 = vsel %vm766_vm1, %v792_v21, %v794_v50  ;;  %v5594_v0 = vsel %vm766_vm1, %v790_v56, %v792_v21  ;;  %v5639_v56 = vcombine.low %v105_v36, %v4912_v10  ;;  %v9313_v21 = vshrl.u32 %v4886_v2, 16 }
  0x5f   :  { %851 = vrot.lane.b32.xlu1 %v771_v4, %s4843_s17  ;;  %v796_v4 = vrot.slane %v5070_v24, 1  ;;  %v104_v24 = vld [vmem:[%s9064_s0 + $0xb8] sm:$0xe]  ;;  %v813_v36 = vrot.slane %v5209_v43, 1  ;;  %v815_v43 = vrot.slane %v5214_v53, 1 }
  0x60   :  { %849 = vrot.lane.b32.xlu0 %v769_v14, %s4843_s17  ;;  %v802_v14 = vrot.slane %v5114_v54, 1  ;;  %v806_v54 = vrot.slane %v5156_v46, 1  ;;  %v4338_v27 = vcombine.low %v104_v24, %v5147_v11 }
  0x61   :  { %v5597_v17 = vsel %vm766_vm1, %v796_v4, %v798_v34  ;;  %v5609_v29 = vsel %vm766_vm1, %v794_v50, %v796_v4  ;;  %v1066_v50 = vrot.slane %v9313_v21, 1  ;;  %v1059_v34 = vshrl.u32 %v5639_v56, 16 }
  0x62   :  { %v5612_v16 = vsel %vm766_vm1, %v800_v5, %v802_v14  ;;  %v807_v11 = vsel %vm766_vm1, %v5615_v37, %v806_v54  ;;  %v808_v46 = vrot.slane %v4338_v27, 1  ;;  %v5648_v4 = vsel %vm766_vm1, %v802_v14, %v5615_v37 }
  0x63   :  { %855 = vrot.lane.b32.xlu1 %v5525_v44, %s4843_s17  ;;  %v1062_v5 = vshll.u32 %v5639_v56, 16  ;;  %v5656_v27 = vrot.slane %v5204_v7, 1 }
  0x64   :  { %853 = vrot.lane.b32.xlu0 %v5534_v3, %s4843_s17  ;;  %v810_v10 = vsel %vm766_vm1, %v808_v46, %v809_v41 }
  0x65   :  { %v5672_v13 = vsel %vm766_vm1, %v5656_v27, %v813_v36 }
  0x67   :  { %859 = vrot.lane.b32.xlu1 %v5537_v12, %s4843_s17 }
  0x68   :  { %857 = vrot.lane.b32.xlu0 %v5546_v15, %s4843_s17 }
  0x6b   :  { %863 = vrot.lane.b32.xlu1 %v5549_v25, %s4843_s17 }
  0x6c   :  { %861 = vrot.lane.b32.xlu0 %v5558_v35, %s4843_s17 }
  0x6f   :  { %867 = vrot.lane.b32.xlu1 %v5561_v38, %s4843_s17 }
  0x70   :  { %865 = vrot.lane.b32.xlu0 %v5570_v48, %s4843_s17 }
  0x73   :  { %871 = vrot.lane.b32.xlu1 %v5573_v49, %s4843_s17 }
  0x74   :  { %869 = vrot.lane.b32.xlu0 %v5582_v57, %s4843_s17 }
  0x77   :  { %875 = vrot.lane.b32.xlu1 %v5585_v58, %s4843_s17 }
  0x78   :  { %873 = vrot.lane.b32.xlu0 %v5594_v0, %s4843_s17 }
  0x7b   :  { %879 = vrot.lane.b32.xlu1 %v5597_v17, %s4843_s17 }
  0x7c   :  { %877 = vrot.lane.b32.xlu0 %v5609_v29, %s4843_s17 }
  0x7d   :  { %v5619_v52 = vpop.permute.xlu1 %680 }
  0x7e   :  { %9310 = vst [vmem:[#allocation84_spill] sm:$0xff] %v5619_v52  ;;  %v5631_v19 = vpop.permute.xlu0 %676  ;;  %v1064_v52 = vrot.slane %v1062_v5, 2 }
  0x7f   :  { %883 = vrot.lane.b32.xlu1 %v5612_v16, %s4843_s17  ;;  %9311 = vst [vmem:[#allocation85_spill] sm:$0xff] %v5631_v19 }
  0x80   :  { %881 = vrot.lane.b32.xlu0 %v5629_v26, %s4843_s17 }
  0x81   :  { %v5636_v40 = vpop.permute.xlu1 %682 }
  0x82   :  { %9312 = vst [vmem:[#allocation86_spill] sm:$0xff] %v5636_v40  ;;  %v5652_v24 = vpop.permute.xlu0 %678  ;;  %v1061_v40 = vrot.slane %v1059_v34, 1 }
  0x83   :  { %887 = vrot.lane.b32.xlu1 %v807_v11, %s4843_s17  ;;  %9314 = vst [vmem:[#allocation87_spill] sm:$0xff] %v5652_v24  ;;  %v9316_v11 = vshll.u32 %v4886_v2, 16 }
  0x84   :  { %885 = vrot.lane.b32.xlu0 %v5648_v4, %s4843_s17  ;;  %v1065_v24 = vor.u32 %v1064_v52, %v1061_v40  ;;  %v821_v52 = vrot.slane %v5274_v47, 1 }
  0x85   :  { %v5659_v21 = vpop.permute.xlu1 %686  ;;  %v1067_v39 = vrot.slane %v9316_v11, 2 }
  0x86   :  { %9315 = vst [vmem:[#allocation88_spill] sm:$0xff] %v5659_v21  ;;  %v5668_v46 = vpop.permute.xlu0 %684  ;;  %v817_v21 = vrot.slane %v5233_v63, 1  ;;  %v819_v63 = vrot.slane %v5247_v22, 1  ;;  %v825_v22 = vrot.slane %v5288_v51, 1  ;;  %v829_v51 = vrot.slane %v5323_v62, 1 }
  0x87   :  { %891 = vrot.lane.b32.xlu1 %v810_v10, %s4843_s17  ;;  %v5666_v14 = vor.u32 %v1067_v39, %v1066_v50  ;;  %9317 = vst [vmem:[#allocation89_spill] sm:$0xff] %v5668_v46  ;;  %v812_v39 = vsel %vm766_vm1, %v809_v41, %v5656_v27  ;;  %v5700_v41 = vsel %vm766_vm1, %v813_v36, %v815_v43  ;;  %v833_v62 = vrot.slane %v5357_v59, 1 }
  0x88   :  { %889 = vrot.lane.b32.xlu0 %v806_v54, %s4843_s17  ;;  %v5690_v53 = vsel %vm766_vm1, %v815_v43, %v817_v21  ;;  %v5705_v5 = vsel %vm766_vm1, %v819_v63, %v821_v52  ;;  %v5716_v10 = vsel %vm766_vm1, %v817_v21, %v819_v63  ;;  %v837_v59 = vrot.slane %v5384_v1, 1 }
  0x89   :  { %v5676_v11 = vpop.permute.xlu1 %690  ;;  %v5685_v50 = vsel %vm1057_vm2, %v1065_v24, %v5666_v14  ;;  %v823_v24 = vrot.slane %v5279_v6, 1  ;;  %v827_v6 = vrot.slane %v5300_v60, 1  ;;  %v831_v60 = vrot.slane %v5337_v28, 1 }
  0x8a   :  { %9318 = vst [vmem:[#allocation90_spill] sm:$0xff] %v5676_v11  ;;  %v5687_v34 = vpop.permute.xlu0 %688  ;;  %v835_v28 = vrot.slane %v5367_v31, 1  ;;  %v839_v31 = vrot.slane %v5397_v33, 1  ;;  %v841_v1 = vrot.slane %v5414_v23, 1  ;;  %v843_v33 = vrot.slane %v5427_v55, 1 }
  0x8b   :  { %895 = vrot.lane.b32.xlu1 %v5672_v13, %s4843_s17  ;;  %9319 = vst [vmem:[#allocation91_spill] sm:$0xff] %v5687_v34  ;;  %v5721_v43 = vsel %vm766_vm1, %v823_v24, %v825_v22  ;;  %v5732_v21 = vsel %vm766_vm1, %v821_v52, %v823_v24  ;;  %v5748_v52 = vsel %vm766_vm1, %v825_v22, %v827_v6  ;;  %v5789_v23 = vrot.slane %v5446_v20, 1 }
  0x8c   :  { %893 = vrot.lane.b32.xlu0 %v812_v39, %s4843_s17  ;;  %v5764_v22 = vsel %vm766_vm1, %v829_v51, %v831_v60  ;;  %v5813_v20 = vsel %vm766_vm1, %v841_v1, %v843_v33 }
  0x8d   :  { %v5694_v54 = vpop.permute.xlu1 %694 }
  0x8e   :  { %9320 = vst [vmem:[#allocation92_spill] sm:$0xff] %v5694_v54  ;;  %v5702_v40 = vpop.permute.xlu0 %692 }
  0x8f   :  { %899 = vrot.lane.b32.xlu1 %v5690_v53, %s4843_s17  ;;  %9321 = vst [vmem:[#allocation93_spill] sm:$0xff] %v5702_v40 }
  0x90   :  { %897 = vrot.lane.b32.xlu0 %v5700_v41, %s4843_s17 }
  0x91   :  { %v5709_v47 = vpop.permute.xlu1 %698 }
  0x92   :  { %9322 = vst [vmem:[#allocation94_spill] sm:$0xff] %v5709_v47  ;;  %v5718_v36 = vpop.permute.xlu0 %696  ;;  %v5737_v47 = vsel %vm766_vm1, %v827_v6, %v829_v51  ;;  %v5780_v51 = vsel %vm766_vm1, %v833_v62, %v835_v28 }
  0x93   :  { %903 = vrot.lane.b32.xlu1 %v5705_v5, %s4843_s17  ;;  %9323 = vst [vmem:[#allocation95_spill] sm:$0xff] %v5718_v36 }
  0x94   :  { %901 = vrot.lane.b32.xlu0 %v5716_v10, %s4843_s17 }
  0x95   :  { %v5725_v39 = vpop.permute.xlu1 %702 }
  0x96   :  { %9324 = vst [vmem:[#allocation96_spill] sm:$0xff] %v5725_v39  ;;  %v5734_v63 = vpop.permute.xlu0 %700  ;;  %v5753_v39 = vsel %vm766_vm1, %v831_v60, %v833_v62  ;;  %v5798_v62 = vsel %vm766_vm1, %v837_v59, %v839_v31 }
  0x97   :  { %907 = vrot.lane.b32.xlu1 %v5721_v43, %s4843_s17  ;;  %9325 = vst [vmem:[#allocation97_spill] sm:$0xff] %v5734_v63 }
  0x98   :  { %905 = vrot.lane.b32.xlu0 %v5732_v21, %s4843_s17 }
  0x99   :  { %v5741_v36 = vpop.permute.xlu1 %706 }
  0x9a   :  { %9326 = vst [vmem:[#allocation98_spill] sm:$0xff] %v5741_v36  ;;  %v5750_v24 = vpop.permute.xlu0 %704  ;;  %v5769_v36 = vsel %vm766_vm1, %v835_v28, %v837_v59  ;;  %v847_v59 = vrot.slane %v5476_v18, 1 }
  0x9b   :  { %911 = vrot.lane.b32.xlu1 %v5737_v47, %s4843_s17  ;;  %9327 = vst [vmem:[#allocation99_spill] sm:$0xff] %v5750_v24 }
  0x9c   :  { %909 = vrot.lane.b32.xlu0 %v5748_v52, %s4843_s17 }
  0x9d   :  { %v5757_v63 = vpop.permute.xlu1 %710 }
  0x9e   :  { %9328 = vst [vmem:[#allocation100_spill] sm:$0xff] %v5757_v63  ;;  %v5766_v6 = vpop.permute.xlu0 %708  ;;  %v5785_v63 = vsel %vm766_vm1, %v839_v31, %v841_v1 }
  0x9f   :  { %915 = vrot.lane.b32.xlu1 %v5753_v39, %s4843_s17  ;;  %9329 = vst [vmem:[#allocation101_spill] sm:$0xff] %v5766_v6  ;;  %v848_v6 = vsel %vm766_vm1, %v5789_v23, %v847_v59 }
  0xa0   :  { %913 = vrot.lane.b32.xlu0 %v5764_v22, %s4843_s17 }
  0xa1   :  { %v5773_v24 = vpop.permute.xlu1 %714 }
  0xa2   :  { %9330 = vst [vmem:[#allocation102_spill] sm:$0xff] %v5773_v24  ;;  %v5782_v60 = vpop.permute.xlu0 %712 }
  0xa3   :  { %919 = vrot.lane.b32.xlu1 %v5769_v36, %s4843_s17  ;;  %9331 = vst [vmem:[#allocation103_spill] sm:$0xff] %v5782_v60  ;;  %v5804_v60 = vsel %vm766_vm1, %v843_v33, %v5789_v23 }
  0xa4   :  { %917 = vrot.lane.b32.xlu0 %v5780_v51, %s4843_s17 }
  0xa5   :  { %v5791_v24 = vpop.permute.xlu1 %718 }
  0xa6   :  { %9332 = vst [vmem:[#allocation104_spill] sm:$0xff] %v5791_v24  ;;  %v5800_v28 = vpop.permute.xlu0 %716 }
  0xa7   :  { %923 = vrot.lane.b32.xlu1 %v5785_v63, %s4843_s17  ;;  %9333 = vst [vmem:[#allocation105_spill] sm:$0xff] %v5800_v28 }
  0xa8   :  { %921 = vrot.lane.b32.xlu0 %v5798_v62, %s4843_s17 }
  0xa9   :  { %v5806_v55 = vpop.permute.xlu1 %722 }
  0xaa   :  { %9334 = vst [vmem:[#allocation106_spill] sm:$0xff] %v5806_v55  ;;  %v5816_v31 = vpop.permute.xlu0 %720  ;;  %v955_v55 = vrot.slane %v5639_v56, 1 }
  0xab   :  { %927 = vrot.lane.b32.xlu1 %v5804_v60, %s4843_s17  ;;  %9335 = vst [vmem:[#allocation107_spill] sm:$0xff] %v5816_v31  ;;  %v9396_v31 = vld [vmem:[#allocation20_spill] sm:$0xff] }
  0xac   :  { %925 = vrot.lane.b32.xlu0 %v5813_v20, %s4843_s17  ;;  %v956_v18 = vsel %vm766_vm1, %v955_v55, %v5512_v32 }
  0xad   :  { %v5818_v28 = vpop.permute.xlu1 %726 }
  0xae   :  { %9336 = vst [vmem:[#allocation108_spill] sm:$0xff] %v5818_v28  ;;  %v5826_v24 = vpop.permute.xlu0 %724 }
  0xaf   :  { %931 = vrot.lane.b32.xlu1 %v847_v59, %s4843_s17  ;;  %9337 = vst [vmem:[#allocation109_spill] sm:$0xff] %v5826_v24 }
  0xb0   :  { %929 = vrot.lane.b32.xlu0 %v848_v6, %s4843_s17 }
  0xb1   :  { %v5828_v1 = vpop.permute.xlu1 %730 }
  0xb2   :  { %9338 = vst [vmem:[#allocation110_spill] sm:$0xff] %v5828_v1  ;;  %v5835_v33 = vpop.permute.xlu0 %728  ;;  %v9392_v1 = vld [vmem:[#allocation18_spill] sm:$0xff] }
  0xb3   :  { %969 = vrot.lane.b32.xlu1 %v5534_v3, %s4844_s21  ;;  %9339 = vst [vmem:[#allocation111_spill] sm:$0xff] %v5835_v33 }
  0xb4   :  { %967 = vrot.lane.b32.xlu0 %v956_v18, %s4844_s21 }
  0xb5   :  { %v5837_v28 = vpop.permute.xlu1 %734 }
  0xb6   :  { %9340 = vst [vmem:[#allocation112_spill] sm:$0xff] %v5837_v28  ;;  %v5842_v56 = vpop.permute.xlu0 %732  ;;  %v9386_v28 = vld [vmem:[#allocation15_spill] sm:$0xff] }
  0xb7   :  { %973 = vrot.lane.b32.xlu1 %v5546_v15, %s4844_s21  ;;  %9341 = vst [vmem:[#allocation113_spill] sm:$0xff] %v5842_v56 }
  0xb8   :  { %971 = vrot.lane.b32.xlu0 %v5525_v44, %s4844_s21 }
  0xb9   :  { %v5844_v59 = vpop.permute.xlu1 %738 }
  0xba   :  { %9342 = vst [vmem:[#allocation114_spill] sm:$0xff] %v5844_v59  ;;  %v5850_v32 = vpop.permute.xlu0 %736 }
  0xbb   :  { %977 = vrot.lane.b32.xlu1 %v5558_v35, %s4844_s21  ;;  %9343 = vst [vmem:[#allocation115_spill] sm:$0xff] %v5850_v32 }
  0xbc   :  { %975 = vrot.lane.b32.xlu0 %v5537_v12, %s4844_s21 }
  0xbd   :  { %v5852_v3 = vpop.permute.xlu1 %742 }
  0xbe   :  { %9344 = vst [vmem:[#allocation116_spill] sm:$0xff] %v5852_v3  ;;  %v5858_v15 = vpop.permute.xlu0 %740 }
  0xbf   :  { %981 = vrot.lane.b32.xlu1 %v5570_v48, %s4844_s21  ;;  %9345 = vst [vmem:[#allocation117_spill] sm:$0xff] %v5858_v15  ;;  %v106_v48 = vld [vmem:[%s9064_s0 + $0xa4] sm:$0xf] }
  0xc0   :  { %979 = vrot.lane.b32.xlu0 %v5549_v25, %s4844_s21 }
  0xc1   :  { %v5860_v6 = vpop.permute.xlu1 %746 }
  0xc2   :  { %9346 = vst [vmem:[#allocation118_spill] sm:$0xff] %v5860_v6  ;;  %v5866_v44 = vpop.permute.xlu0 %744 }
  0xc3   :  { %985 = vrot.lane.b32.xlu1 %v5582_v57, %s4844_s21  ;;  %9347 = vst [vmem:[#allocation119_spill] sm:$0xff] %v5866_v44  ;;  %v5884_v57 = vld [vmem:[%s9064_s0 + $0xa8] sm:$0xf] }
  0xc4   :  { %983 = vrot.lane.b32.xlu0 %v5561_v38, %s4844_s21  ;;  %v108_v38 = vld [vmem:[%s9064_s0 + $0xac] sm:$0x1] }
  0xc5   :  { %v5868_v35 = vpop.permute.xlu1 %750 }
  0xc6   :  { %9348 = vst [vmem:[#allocation120_spill] sm:$0xff] %v5868_v35  ;;  %v5874_v12 = vpop.permute.xlu0 %748 }
  0xc7   :  { %989 = vrot.lane.b32.xlu1 %v5594_v0, %s4844_s21  ;;  %9349 = vst [vmem:[#allocation121_spill] sm:$0xff] %v5874_v12  ;;  %v9351_v0 = vld [vmem:[#allocation38_spill] sm:$0xff] }
  0xc8   :  { %987 = vrot.lane.b32.xlu0 %v5573_v49, %s4844_s21  ;;  %v5894_v55 = vcombine.low %v9351_v0, %v106_v48  ;;  %v109_v12 = vld [vmem:[%s9064_s0 + $0xc0] sm:$0xe]  ;;  %v9356_v0 = vld [vmem:[#allocation43_spill] sm:$0xff] }
  0xc9   :  { %v5879_v25 = vpop.permute.xlu1 %754 }
  0xca   :  { %9350 = vst [vmem:[#allocation122_spill] sm:$0xff] %v5879_v25  ;;  %9352 = vst [vmem:[#allocation38_spill] sm:$0xff] %v5894_v55  ;;  %v5896_v18 = vpop.permute.xlu0 %752  ;;  %v4341_v25 = vcombine.low %v5884_v57, %v108_v38 }
  0xcb   :  { %993 = vrot.lane.b32.xlu1 %v5609_v29, %s4844_s21  ;;  %9353 = vst [vmem:[#allocation123_spill] sm:$0xff] %v5896_v18  ;;  %v957_v29 = vrot.slane %v5894_v55, 1  ;;  %v5912_v18 = vcombine.low %v109_v12, %v9356_v0 }
  0xcc   :  { %991 = vrot.lane.b32.xlu0 %v5585_v58, %s4844_s21  ;;  %v959_v48 = vrot.slane %v4341_v25, 1 }
  0xcd   :  { %v5899_v35 = vpop.permute.xlu1 %758  ;;  %v958_v12 = vsel %vm766_vm1, %v5615_v37, %v957_v29 }
  0xce   :  { %9354 = vst [vmem:[#allocation124_spill] sm:$0xff] %v5899_v35  ;;  %v5908_v49 = vpop.permute.xlu0 %756  ;;  %v9385_v35 = vld [vmem:[#allocation13_spill] sm:$0xff] }
  0xcf   :  { %997 = vrot.lane.b32.xlu1 %v5629_v26, %s4844_s21  ;;  %9355 = vst [vmem:[#allocation125_spill] sm:$0xff] %v5908_v49  ;;  %v960_v26 = vsel %vm766_vm1, %v957_v29, %v959_v48  ;;  %v961_v49 = vrot.slane %v5912_v18, 1 }
  0xd0   :  { %995 = vrot.lane.b32.xlu0 %v5597_v17, %s4844_s21 }
  0xd1   :  { %v5914_v38 = vpop.permute.xlu1 %851 }
  0xd2   :  { %9357 = vst [vmem:[#allocation43_spill] sm:$0xff] %v5914_v38  ;;  %v5920_v58 = vpop.permute.xlu0 %849 }
  0xd3   :  { %1001 = vrot.lane.b32.xlu1 %v5648_v4, %s4844_s21  ;;  %9358 = vst [vmem:[#allocation126_spill] sm:$0xff] %v5920_v58  ;;  %v962_v4 = vsel %vm766_vm1, %v961_v49, %v5656_v27 }
  0xd4   :  { %999 = vrot.lane.b32.xlu0 %v5612_v16, %s4844_s21 }
  0xd5   :  { %v5924_v6 = vpop.permute.xlu1 %855 }
  0xd6   :  { %9359 = vst [vmem:[#allocation127_spill] sm:$0xff] %v5924_v6  ;;  %v5931_v17 = vpop.permute.xlu0 %853  ;;  %v9421_v6 = vld [vmem:[#allocation36_spill] sm:$0xff] }
  0xd7   :  { %1005 = vrot.lane.b32.xlu1 %v960_v26, %s4844_s21  ;;  %9360 = vst [vmem:[#allocation128_spill] sm:$0xff] %v5931_v17  ;;  %v1123_v17 = vrot.slane %v9421_v6, 2  ;;  %v9432_v6 = vshll.u32 %v5894_v55, 16 }
  0xd8   :  { %1003 = vrot.lane.b32.xlu0 %v958_v12, %s4844_s21 }
  0xd9   :  { %v5935_v25 = vpop.permute.xlu1 %859 }
  0xda   :  { %9361 = vst [vmem:[#allocation129_spill] sm:$0xff] %v5935_v25  ;;  %v5939_v0 = vpop.permute.xlu0 %857 }
  0xdb   :  { %1009 = vrot.lane.b32.xlu1 %v962_v4, %s4844_s21  ;;  %9362 = vst [vmem:[#allocation130_spill] sm:$0xff] %v5939_v0  ;;  %v9380_v4 = vld [vmem:[#allocation9_spill] sm:$0xff] }
  0xdc   :  { %1007 = vrot.lane.b32.xlu0 %v959_v48, %s4844_s21 }
  0xdd   :  { %v5941_v44 = vpop.permute.xlu1 %863 }
  0xde   :  { %9363 = vst [vmem:[#allocation131_spill] sm:$0xff] %v5941_v44  ;;  %v5946_v16 = vpop.permute.xlu0 %861 }
  0xdf   :  { %1013 = vrot.lane.b32.xlu1 %v5700_v41, %s4844_s21  ;;  %9364 = vst [vmem:[#allocation132_spill] sm:$0xff] %v5946_v16 }
  0xe0   :  { %1011 = vrot.lane.b32.xlu0 %v5672_v13, %s4844_s21 }
  0xe1   :  { %v5948_v37 = vpop.permute.xlu1 %867 }
  0xe2   :  { %9365 = vst [vmem:[#allocation133_spill] sm:$0xff] %v5948_v37  ;;  %v5954_v27 = vpop.permute.xlu0 %865 }
  0xe3   :  { %1017 = vrot.lane.b32.xlu1 %v5716_v10, %s4844_s21  ;;  %9366 = vst [vmem:[#allocation134_spill] sm:$0xff] %v5954_v27 }
  0xe4   :  { %1015 = vrot.lane.b32.xlu0 %v5690_v53, %s4844_s21 }
  0xe5   :  { %v5956_v49 = vpop.permute.xlu1 %871 }
  0xe6   :  { %9367 = vst [vmem:[#allocation135_spill] sm:$0xff] %v5956_v49  ;;  %v5962_v41 = vpop.permute.xlu0 %869 }
  0xe7   :  { %1021 = vrot.lane.b32.xlu1 %v5732_v21, %s4844_s21  ;;  %9368 = vst [vmem:[#allocation136_spill] sm:$0xff] %v5962_v41  ;;  %v110_v21 = vld [vmem:[%s9064_s0 + $0x15c] sm:$0xf] }
  0xe8   :  { %1019 = vrot.lane.b32.xlu0 %v5705_v5, %s4844_s21 }
  0xe9   :  { %v5964_v29 = vpop.permute.xlu1 %875 }
  0xea   :  { %9369 = vst [vmem:[#allocation137_spill] sm:$0xff] %v5964_v29  ;;  %v5970_v13 = vpop.permute.xlu0 %873 }
  0xeb   :  { %1025 = vrot.lane.b32.xlu1 %v5748_v52, %s4844_s21  ;;  %9370 = vst [vmem:[#allocation138_spill] sm:$0xff] %v5970_v13  ;;  %v5990_v52 = vcombine.low %v5457_v30, %v110_v21  ;;  %v112_v30 = vld [vmem:[%s9064_s0 + $0x164] sm:$0x1]  ;;  %v1071_v21 = vrot.slane %v9380_v4, 2 }
  0xec   :  { %1023 = vrot.lane.b32.xlu0 %v5721_v43, %s4844_s21 }
  0xed   :  { %v5972_v10 = vpop.permute.xlu1 %879  ;;  %9374 = vst [vmem:[#allocation142_spill] sm:$0xff] %v5990_v52 }
  0xee   :  { %9371 = vst [vmem:[#allocation139_spill] sm:$0xff] %v5972_v10  ;;  %v5978_v53 = vpop.permute.xlu0 %877  ;;  %v1087_v10 = vrot.slane %v9392_v1, 2 }
  0xef   :  { %1029 = vrot.lane.b32.xlu1 %v5764_v22, %s4844_s21  ;;  %9372 = vst [vmem:[#allocation140_spill] sm:$0xff] %v5978_v53 }
  0xf0   :  { %1027 = vrot.lane.b32.xlu0 %v5737_v47, %s4844_s21  ;;  %v963_v47 = vrot.slane %v5990_v52, 1 }
  0xf1   :  { %v5983_v5 = vpop.permute.xlu1 %883 }
  0xf2   :  { %9373 = vst [vmem:[#allocation141_spill] sm:$0xff] %v5983_v5  ;;  %v5992_v43 = vpop.permute.xlu0 %881  ;;  %v964_v15 = vsel %vm766_vm1, %v5789_v23, %v963_v47  ;;  %v9387_v5 = vld [vmem:[#allocation14_spill] sm:$0xff] }
  0xf3   :  { %1033 = vrot.lane.b32.xlu1 %v5780_v51, %s4844_s21  ;;  %9375 = vst [vmem:[#allocation143_spill] sm:$0xff] %v5992_v43  ;;  %v6006_v51 = vld [vmem:[%s9064_s0 + $0x160] sm:$0xf]  ;;  %v1079_v56 = vrot.slane %v9387_v5, 2 }
  0xf4   :  { %1031 = vrot.lane.b32.xlu0 %v5753_v39, %s4844_s21  ;;  %v4344_v39 = vcombine.low %v6006_v51, %v112_v30  ;;  %v9384_v30 = vld [vmem:[#allocation17_spill] sm:$0xff] }
  0xf5   :  { %v5994_v22 = vpop.permute.xlu1 %887  ;;  %v1074_v32 = vrot.slane %v9384_v30, 1 }
  0xf6   :  { %9376 = vst [vmem:[#allocation144_spill] sm:$0xff] %v5994_v22  ;;  %v6000_v48 = vpop.permute.xlu0 %885 }
  0xf7   :  { %1037 = vrot.lane.b32.xlu1 %v5798_v62, %s4844_s21  ;;  %9377 = vst [vmem:[#allocation145_spill] sm:$0xff] %v6000_v48  ;;  %v9379_v62 = vld [vmem:[#allocation12_spill] sm:$0xff]  ;;  %v1075_v48 = vrot.slane %v9385_v35, 2 }
  0xf8   :  { %1035 = vrot.lane.b32.xlu0 %v5769_v36, %s4844_s21  ;;  %v1070_v12 = vrot.slane %v9379_v62, 1  ;;  %v965_v36 = vrot.slane %v4344_v39, 1 }
  0xf9   :  { %v6011_v26 = vpop.permute.xlu1 %891  ;;  %v1076_v29 = vor.u32 %v1075_v48, %v1074_v32 }
  0xfa   :  { %9378 = vst [vmem:[#allocation146_spill] sm:$0xff] %v6011_v26  ;;  %v6020_v3 = vpop.permute.xlu0 %889  ;;  %v966_v33 = vsel %vm766_vm1, %v963_v47, %v965_v36  ;;  %v1091_v47 = vrot.slane %v9396_v31, 2  ;;  %v9398_v26 = vld [vmem:[#allocation22_spill] sm:$0xff] }
  0xfb   :  { %1041 = vrot.lane.b32.xlu1 %v5813_v20, %s4844_s21  ;;  %9381 = vst [vmem:[#allocation12_spill] sm:$0xff] %v6020_v3  ;;  %v1072_v20 = vor.u32 %v1071_v21, %v1070_v12  ;;  %v1078_v3 = vrot.slane %v9386_v28, 1  ;;  %v9391_v12 = vld [vmem:[#allocation19_spill] sm:$0xff]  ;;  %v1095_v41 = vrot.slane %v9398_v26, 2 }
  0xfc   :  { %1039 = vrot.lane.b32.xlu0 %v5785_v63, %s4844_s21  ;;  %v9389_v63 = vld [vmem:[#allocation21_spill] sm:$0xff]  ;;  %v1086_v21 = vrot.slane %v9391_v12, 1 }
  0xfd   :  { %v6024_v59 = vpop.permute.xlu1 %895  ;;  %v1082_v43 = vrot.slane %v9389_v63, 1  ;;  %v1080_v24 = vor.u32 %v1079_v56, %v1078_v3 }
  0xfe   :  { %9382 = vst [vmem:[#allocation9_spill] sm:$0xff] %v6024_v59  ;;  %v6029_v22 = vpop.permute.xlu0 %893  ;;  %v1088_v59 = vor.u32 %v1087_v10, %v1086_v21  ;;  %v9403_v21 = vld [vmem:[#allocation24_spill] sm:$0xff] }
  0xff   :  { %1045 = vrot.lane.b32.xlu1 %v964_v15, %s4844_s21  ;;  %9383 = vst [vmem:[#allocation147_spill] sm:$0xff] %v6029_v22  ;;  %v9390_v15 = vld [vmem:[#allocation16_spill] sm:$0xff]  ;;  %v9395_v22 = vld [vmem:[#allocation25_spill] sm:$0xff]  ;;  %v1081_v56 = vsel %vm1057_vm2, %v1076_v29, %v1080_v24 }
 0x100   :  { %1043 = vrot.lane.b32.xlu0 %v5804_v60, %s4844_s21  ;;  %v1083_v39 = vrot.slane %v9390_v15, 2  ;;  %v1090_v49 = vrot.slane %v9395_v22, 1 }
 0x101   :  { %v6035_v23 = vpop.permute.xlu1 %899 }
 0x102   :  { %9388 = vst [vmem:[#allocation17_spill] sm:$0xff] %v6035_v23  ;;  %v6045_v53 = vpop.permute.xlu0 %897  ;;  %v1073_v23 = vsel %vm1057_vm2, %v5666_v14, %v1072_v20  ;;  %v1084_v13 = vor.u32 %v1083_v39, %v1082_v43  ;;  %v1092_v10 = vor.u32 %v1091_v47, %v1090_v49  ;;  %v9409_v49 = vld [vmem:[#allocation31_spill] sm:$0xff] }
 0x103   :  { %1049 = vrot.lane.b32.xlu1 %v965_v36, %s4844_s21  ;;  %9393 = vst [vmem:[#allocation13_spill] sm:$0xff] %v6045_v53  ;;  %v9397_v36 = vld [vmem:[#allocation23_spill] sm:$0xff] }
 0x104   :  { %1047 = vrot.lane.b32.xlu0 %v966_v33, %s4844_s21  ;;  %v1094_v53 = vrot.slane %v9397_v36, 1  ;;  %v1077_v33 = vsel %vm1057_vm2, %v1072_v20, %v1076_v29  ;;  %v1089_v3 = vsel %vm1057_vm2, %v1084_v13, %v1088_v59  ;;  %v9408_v20 = vld [vmem:[#allocation28_spill] sm:$0xff] }
 0x105   :  { %v6049_v60 = vpop.permute.xlu1 %903 }
 0x106   :  { %9394 = vst [vmem:[#allocation15_spill] sm:$0xff] %v6049_v60  ;;  %v6057_v14 = vpop.permute.xlu0 %901  ;;  %v1096_v43 = vor.u32 %v1095_v41, %v1094_v53  ;;  %v1099_v60 = vrot.slane %v9403_v21, 2  ;;  %v1110_v41 = vrot.slane %v9409_v49, 1  ;;  %v9410_v53 = vld [vmem:[#allocation29_spill] sm:$0xff] }
 0x107   :  { %1256 = vrot.lane.b32.xlu1 %v1073_v23, %s4845_s10  ;;  %9399 = vst [vmem:[#allocation14_spill] sm:$0xff] %v6057_v14  ;;  %v9402_v23 = vld [vmem:[#allocation30_spill] sm:$0xff]  ;;  %v9404_v14 = vld [vmem:[#allocation27_spill] sm:$0xff]  ;;  %v1111_v47 = vrot.slane %v9410_v53, 2 }
 0x108   :  { %1254 = vrot.lane.b32.xlu0 %v5685_v50, %s4845_s10  ;;  %v1098_v39 = vrot.slane %v9402_v23, 1  ;;  %v1102_v37 = vrot.slane %v9404_v14, 1  ;;  %v9407_v50 = vld [vmem:[#allocation34_spill] sm:$0xff]  ;;  %v1097_v44 = vsel %vm1057_vm2, %v1092_v10, %v1096_v43 }
 0x109   :  { %v6060_v32 = vpop.permute.xlu1 %907  ;;  %v1106_v29 = vrot.slane %v9407_v50, 1  ;;  %v1112_v25 = vor.u32 %v1111_v47, %v1110_v41 }
 0x10a   :  { %9400 = vst [vmem:[#allocation21_spill] sm:$0xff] %v6060_v32  ;;  %v6067_v48 = vpop.permute.xlu0 %905  ;;  %v9405_v32 = vld [vmem:[#allocation26_spill] sm:$0xff]  ;;  %v1100_v11 = vor.u32 %v1099_v60, %v1098_v39  ;;  %v9415_v60 = vld [vmem:[#allocation35_spill] sm:$0xff] }
 0x10b   :  { %1260 = vrot.lane.b32.xlu1 %v1081_v56, %s4845_s10  ;;  %9401 = vst [vmem:[#allocation16_spill] sm:$0xff] %v6067_v48  ;;  %v1103_v54 = vrot.slane %v9405_v32, 2  ;;  %v1107_v56 = vrot.slane %v9408_v20, 2  ;;  %v1085_v48 = vsel %vm1057_vm2, %v1080_v24, %v1084_v13  ;;  %v9413_v24 = vld [vmem:[#allocation39_spill] sm:$0xff] }
 0x10c   :  { %1258 = vrot.lane.b32.xlu0 %v1077_v33, %s4845_s10  ;;  %v1093_v33 = vsel %vm1057_vm2, %v1088_v59, %v1092_v10  ;;  %v1114_v13 = vrot.slane %v9413_v24, 1 }
 0x10d   :  { %v6073_v27 = vpop.permute.xlu1 %911  ;;  %v1108_v34 = vor.u32 %v1107_v56, %v1106_v29 }
 0x10e   :  { %9406 = vst [vmem:[#allocation19_spill] sm:$0xff] %v6073_v27  ;;  %v6082_v40 = vpop.permute.xlu0 %909  ;;  %v1104_v27 = vor.u32 %v1103_v54, %v1102_v37  ;;  %v1118_v54 = vrot.slane %v9415_v60, 1  ;;  %v9416_v37 = vld [vmem:[#allocation32_spill] sm:$0xff] }
 0x10f   :  { %1264 = vrot.lane.b32.xlu1 %v1089_v3, %s4845_s10  ;;  %9411 = vst [vmem:[#allocation18_spill] sm:$0xff] %v6082_v40  ;;  %v113_v3 = vld [vmem:[%s9064_s0 + $0xac] sm:$0x3]  ;;  %v9414_v40 = vld [vmem:[#allocation33_spill] sm:$0xff]  ;;  %v1119_v39 = vrot.slane %v9416_v37, 2  ;;  %v1113_v29 = vsel %vm1057_vm2, %v1108_v34, %v1112_v25  ;;  %v6603_v60 = vld [vmem:[%s9064_s0 + $0xf0] sm:$0xff]  }
 0x110   :  { %1262 = vrot.lane.b32.xlu0 %v1085_v48, %s4845_s10  ;;  %v1115_v0 = vrot.slane %v9414_v40, 2  ;;  %v1105_v59 = vsel %vm1057_vm2, %v1100_v11, %v1104_v27  ;;  %v6103_v48 = vcombine.low %v5884_v57, %v113_v3  ;;  %v9423_v57 = vld [vmem:[#allocation37_spill] sm:$0xff]  ;;  %9532 = vst [vmem:[#allocation219_spill] sm:$0xff] %v6603_v60  ;;  %v4733_v40 = vld [vmem:[%s9064_s0 + $0x100] sm:$0xff]  }
 0x111   :  { %v6085_v16 = vpop.permute.xlu1 %915  ;;  %v1120_v41 = vor.u32 %v1119_v39, %v1118_v54  ;;  %v1127_v3 = vrot.slane %v9423_v57, 2  ;;  %v9427_v54 = vld [vmem:[#allocation46_spill] sm:$0xff]  ;;  %v9431_v57 = vshrl.u32 %v5894_v55, 16 }
 0x112   :  { %9412 = vst [vmem:[#allocation25_spill] sm:$0xff] %v6085_v16  ;;  %v6097_v16 = vpop.permute.xlu0 %913  ;;  %v1116_v56 = vor.u32 %v1115_v0, %v1114_v13  ;;  %v9426_v0 = vld [vmem:[#allocation41_spill] sm:$0xff]  ;;  %v1134_v39 = vrot.slane %v9427_v54, 1 }
 0x113   :  { %1268 = vrot.lane.b32.xlu1 %v1097_v44, %s4845_s10  ;;  %9417 = vst [vmem:[#allocation20_spill] sm:$0xff] %v6097_v16  ;;  %v1101_v44 = vsel %vm1057_vm2, %v1096_v43, %v1100_v11  ;;  %v9420_v16 = vld [vmem:[#allocation45_spill] sm:$0xff]  ;;  %v1131_v13 = vrot.slane %v9426_v0, 2  ;;  %v1141_v54 = vrot.slane %v9431_v57, 1 }
 0x114   :  { %1266 = vrot.lane.b32.xlu0 %v1093_v33, %s4845_s10  ;;  %v1122_v46 = vrot.slane %v9420_v16, 1  ;;  %v1109_v33 = vsel %vm1057_vm2, %v1104_v27, %v1108_v34  ;;  %v9425_v11 = vld [vmem:[#allocation49_spill] sm:$0xff]  ;;  %v1151_v34 = vshll.u32 %v6103_v48, 16 }
 0x115   :  { %v6100_v10 = vpop.permute.xlu1 %919  ;;  %v1130_v43 = vrot.slane %v9425_v11, 1 }
 0x116   :  { %9418 = vst [vmem:[#allocation148_spill] sm:$0xff] %v6100_v10  ;;  %v6109_v47 = vpop.permute.xlu0 %917  ;;  %v9422_v10 = vld [vmem:[#allocation40_spill] sm:$0xff]  ;;  %v1124_v11 = vor.u32 %v1123_v17, %v1122_v46  ;;  %v1153_v37 = vrot.slane %v1151_v34, 2  ;;  %v1157_v17 = vshrl.u32 %v5912_v18, 16 }
 0x117   :  { %1272 = vrot.lane.b32.xlu1 %v1105_v59, %s4845_s10  ;;  %9419 = vst [vmem:[#allocation149_spill] sm:$0xff] %v6109_v47  ;;  %v1126_v38 = vrot.slane %v9422_v10, 1  ;;  %v9428_v59 = vld [vmem:[#allocation42_spill] sm:$0xff] }
 0x118   :  { %1270 = vrot.lane.b32.xlu0 %v1101_v44, %s4845_s10  ;;  %v1135_v47 = vrot.slane %v9428_v59, 2  ;;  %v1121_v44 = vsel %vm1057_vm2, %v1116_v56, %v1120_v41  ;;  %v1132_v59 = vor.u32 %v1131_v13, %v1130_v43  ;;  %v9436_v13 = vshrl.u32 %v5204_v7, 16 }
 0x119   :  { %v6115_v58 = vpop.permute.xlu1 %923  ;;  %v1128_v0 = vor.u32 %v1127_v3, %v1126_v38 }
 0x11a   :  { %9424 = vst [vmem:[#allocation150_spill] sm:$0xff] %v6115_v58  ;;  %v1148_v58 = vshrl.u32 %v6103_v48, 16  ;;  %v6128_v27 = vpop.permute.xlu0 %921  ;;  %v1136_v19 = vor.u32 %v1135_v47, %v1134_v39  ;;  %v1125_v47 = vsel %vm1057_vm2, %v1120_v41, %v1124_v11  ;;  %v1164_v39 = vrot.slane %v9436_v13, 1 }
 0x11b   :  { %1276 = vrot.lane.b32.xlu1 %v1113_v29, %s4845_s10  ;;  %9429 = vst [vmem:[#allocation151_spill] sm:$0xff] %v6128_v27  ;;  %v1117_v29 = vsel %vm1057_vm2, %v1112_v25, %v1116_v56  ;;  %v1144_v27 = vrot.slane %v9432_v6, 2  ;;  %v1129_v38 = vsel %vm1057_vm2, %v1124_v11, %v1128_v0  ;;  %v1160_v25 = vshll.u32 %v5912_v18, 16  ;;  %v9440_v11 = vld [vmem:[#allocation50_spill] sm:$0xff] }
 0x11c   :  { %1274 = vrot.lane.b32.xlu0 %v1109_v33, %s4845_s10  ;;  %v1150_v16 = vrot.slane %v1148_v58, 1  ;;  %v1137_v6 = vsel %vm1057_vm2, %v1132_v59, %v1136_v19  ;;  %v1159_v33 = vrot.slane %v1157_v17, 1  ;;  %v9437_v18 = vshll.u32 %v5204_v7, 16 }
 0x11d   :  { %v6131_v10 = vpop.permute.xlu1 %927  ;;  %v1145_v58 = vor.u32 %v1144_v27, %v1141_v54  ;;  %v1162_v43 = vrot.slane %v1160_v25, 2  ;;  %v9441_v54 = vld [vmem:[#allocation52_spill] sm:$0xff]  ;;  %v1133_v17 = vsel %vm1057_vm2, %v1128_v0, %v1132_v59 }
 0x11e   :  { %9430 = vst [vmem:[#allocation152_spill] sm:$0xff] %v6131_v10  ;;  %v6140_v46 = vpop.permute.xlu0 %925  ;;  %v1154_v57 = vor.u32 %v1153_v37, %v1150_v16  ;;  %v1165_v34 = vrot.slane %v9437_v18, 2  ;;  %v1172_v16 = vrot.slane %v9441_v54, 1  ;;  %v9442_v37 = vld [vmem:[#allocation51_spill] sm:$0xff]  ;;  %v9447_v59 = vld [vmem:[#allocation56_spill] sm:$0xff]  ;;  %v9448_v54 = vld [vmem:[#allocation54_spill] sm:$0xff] }
 0x11f   :  { %1280 = vrot.lane.b32.xlu1 %v1121_v44, %s4845_s10  ;;  %9433 = vst [vmem:[#allocation153_spill] sm:$0xff] %v6140_v46  ;;  %v1173_v27 = vrot.slane %v9442_v37, 2  ;;  %v1163_v18 = vor.u32 %v1162_v43, %v1159_v33  ;;  %v9446_v37 = vld [vmem:[#allocation53_spill] sm:$0xff] }
 0x120   :  { %1278 = vrot.lane.b32.xlu0 %v1117_v29, %s4845_s10  ;;  %v9439_v29 = vld [vmem:[#allocation55_spill] sm:$0xff]  ;;  %v1155_v13 = vsel %vm1057_vm2, %v1145_v58, %v1154_v57  ;;  %v1177_v0 = vrot.slane %v9446_v37, 2  ;;  %v9466_v37 = vld [vmem:[#allocation66_spill] sm:$0xff] }
 0x121   :  { %v6145_v56 = vpop.permute.xlu1 %931  ;;  %v1168_v41 = vrot.slane %v9439_v29, 1  ;;  %v4726_v29 = vld [vmem:[%s9064_s0 + $0xc4] sm:$0xf] }
 0x122   :  { %9434 = vst [vmem:[#allocation154_spill] sm:$0xff] %v6145_v56  ;;  %v6151_v3 = vpop.permute.xlu0 %929  ;;  %v1174_v56 = vor.u32 %v1173_v27, %v1172_v16  ;;  %v9453_v27 = vld [vmem:[#allocation57_spill] sm:$0xff] }
 0x123   :  { %1284 = vrot.lane.b32.xlu1 %v1129_v38, %s4845_s10  ;;  %9435 = vst [vmem:[#allocation155_spill] sm:$0xff] %v6151_v3  ;;  %v1169_v38 = vrot.slane %v9440_v11, 2  ;;  %v1166_v3 = vor.u32 %v1165_v34, %v1164_v39  ;;  %v1181_v11 = vrot.slane %v9448_v54, 2 }
 0x124   :  { %1282 = vrot.lane.b32.xlu0 %v1125_v47, %s4845_s10  ;;  %v1146_v47 = vsel %vm1057_vm2, %v1136_v19, %v1145_v58 }
 0x125   :  { %v6157_v44 = vpop.permute.xlu1 %969  ;;  %v1170_v46 = vor.u32 %v1169_v38, %v1168_v41  ;;  %v1167_v43 = vsel %vm1057_vm2, %v1163_v18, %v1166_v3  ;;  %v9452_v38 = vld [vmem:[#allocation63_spill] sm:$0xff] }
 0x126   :  { %9438 = vst [vmem:[#allocation156_spill] sm:$0xff] %v6157_v44  ;;  %v6166_v25 = vpop.permute.xlu0 %967  ;;  %v9445_v44 = vld [vmem:[#allocation59_spill] sm:$0xff]  ;;  %v1184_v16 = vrot.slane %v9452_v38, 1 }
 0x127   :  { %1288 = vrot.lane.b32.xlu1 %v1137_v6, %s4845_s10  ;;  %9443 = vst [vmem:[#allocation157_spill] sm:$0xff] %v6166_v25  ;;  %v1176_v6 = vrot.slane %v9445_v44, 1  ;;  %v1180_v25 = vrot.slane %v9447_v59, 1  ;;  %v1175_v19 = vsel %vm1057_vm2, %v1170_v46, %v1174_v56  ;;  %v1205_v44 = vrot.slane %v9466_v37, 2  ;;  %v9473_v37 = vld [vmem:[#allocation70_spill] sm:$0xff] }
 0x128   :  { %1286 = vrot.lane.b32.xlu0 %v1133_v17, %s4845_s10  ;;  %v1185_v17 = vrot.slane %v9453_v27, 2 }
 0x129   :  { %v6169_v10 = vpop.permute.xlu1 %973  ;;  %v1178_v58 = vor.u32 %v1177_v0, %v1176_v6  ;;  %v1182_v34 = vor.u32 %v1181_v11, %v1180_v25  ;;  %v9459_v6 = vld [vmem:[#allocation64_spill] sm:$0xff]  ;;  %v9460_v25 = vld [vmem:[#allocation61_spill] sm:$0xff] }
 0x12a   :  { %9444 = vst [vmem:[#allocation158_spill] sm:$0xff] %v6169_v10  ;;  %v6178_v33 = vpop.permute.xlu0 %971  ;;  %v1196_v11 = vrot.slane %v9459_v6, 1  ;;  %v1197_v0 = vrot.slane %v9460_v25, 2  ;;  %v9463_v25 = vld [vmem:[#allocation71_spill] sm:$0xff] }
 0x12b   :  { %1292 = vrot.lane.b32.xlu1 %v1155_v13, %s4845_s10  ;;  %9449 = vst [vmem:[#allocation159_spill] sm:$0xff] %v6178_v33  ;;  %v9454_v13 = vld [vmem:[#allocation62_spill] sm:$0xff] }
 0x12c   :  { %1290 = vrot.lane.b32.xlu0 %v1146_v47, %s4845_s10  ;;  %v1188_v10 = vrot.slane %v9454_v13, 1  ;;  %v9455_v33 = vld [vmem:[#allocation58_spill] sm:$0xff]  ;;  %v9457_v47 = vld [vmem:[#allocation67_spill] sm:$0xff]  ;;  %v1186_v13 = vor.u32 %v1185_v17, %v1184_v16  ;;  %v1198_v6 = vor.u32 %v1197_v0, %v1196_v11  ;;  %v9471_v11 = vld [vmem:[#allocation68_spill] sm:$0xff] }
 0x12d   :  { %v6181_v39 = vpop.permute.xlu1 %977  ;;  %v1189_v18 = vrot.slane %v9455_v33, 2  ;;  %v1183_v33 = vsel %vm1057_vm2, %v1178_v58, %v1182_v34  ;;  %v1209_v0 = vrot.slane %v9471_v11, 2 }
 0x12e   :  { %9450 = vst [vmem:[#allocation160_spill] sm:$0xff] %v6181_v39  ;;  %v6186_v41 = vpop.permute.xlu0 %975  ;;  %v9458_v39 = vld [vmem:[#allocation60_spill] sm:$0xff] }
 0x12f   :  { %1296 = vrot.lane.b32.xlu1 %v1167_v43, %s4845_s10  ;;  %9451 = vst [vmem:[#allocation161_spill] sm:$0xff] %v6186_v41  ;;  %v1192_v43 = vrot.slane %v9457_v47, 1  ;;  %v1193_v59 = vrot.slane %v9458_v39, 2  ;;  %v1171_v41 = vsel %vm1057_vm2, %v1166_v3, %v1170_v46  ;;  %v9464_v47 = vld [vmem:[#allocation65_spill] sm:$0xff] }
 0x130   :  { %1294 = vrot.lane.b32.xlu0 %v1154_v57, %s4845_s10  ;;  %v1179_v57 = vsel %vm1057_vm2, %v1174_v56, %v1178_v58  ;;  %v1201_v46 = vrot.slane %v9464_v47, 2  ;;  %v9465_v3 = vld [vmem:[#allocation69_spill] sm:$0xff]  ;;  %v1187_v56 = vsel %vm1057_vm2, %v1182_v34, %v1186_v13  ;;  %v1216_v34 = vrot.slane %v5465_v45, 1 }
 0x131   :  { %v6192_v54 = vpop.permute.xlu1 %981  ;;  %v1194_v39 = vor.u32 %v1193_v59, %v1192_v43  ;;  %v6458_v45 = vld [vmem:[%s9064_s0 + $0x78] sm:$0xff]  }
 0x132   :  { %9456 = vst [vmem:[#allocation162_spill] sm:$0xff] %v6192_v54  ;;  %v6201_v27 = vpop.permute.xlu0 %979  ;;  %v1190_v54 = vor.u32 %v1189_v18, %v1188_v10  ;;  %v9470_v18 = vld [vmem:[#allocation75_spill] sm:$0xff]  ;;  %9513 = vst [vmem:[#allocation200_spill] sm:$0xff] %v6458_v45 }
 0x133   :  { %1300 = vrot.lane.b32.xlu1 %v1175_v19, %s4845_s10  ;;  %9461 = vst [vmem:[#allocation163_spill] sm:$0xff] %v6201_v27  ;;  %v1200_v19 = vrot.slane %v9463_v25, 1  ;;  %v1204_v27 = vrot.slane %v9465_v3, 1  ;;  %v1199_v59 = vsel %vm1057_vm2, %v1194_v39, %v1198_v6  ;;  %v1208_v43 = vrot.slane %v9470_v18, 1 }
 0x134   :  { %1298 = vrot.lane.b32.xlu0 %v1171_v41, %s4845_s10  ;;  %v1191_v10 = vsel %vm1057_vm2, %v1186_v13, %v1190_v54  ;;  %v9475_v13 = vld [vmem:[#allocation72_spill] sm:$0xff] }
 0x135   :  { %v6204_v38 = vpop.permute.xlu1 %985  ;;  %v1206_v58 = vor.u32 %v1205_v44, %v1204_v27  ;;  %v9477_v27 = vld [vmem:[#allocation74_spill] sm:$0xff] }
 0x136   :  { %9462 = vst [vmem:[#allocation164_spill] sm:$0xff] %v6204_v38  ;;  %v6213_v16 = vpop.permute.xlu0 %983  ;;  %v9472_v38 = vld [vmem:[#allocation73_spill] sm:$0xff] }
 0x137   :  { %1304 = vrot.lane.b32.xlu1 %v1183_v33, %s4845_s10  ;;  %9467 = vst [vmem:[#allocation165_spill] sm:$0xff] %v6213_v16  ;;  %v1202_v33 = vor.u32 %v1201_v46, %v1200_v19  ;;  %v1212_v16 = vrot.slane %v9472_v38, 1  ;;  %v9476_v19 = vld [vmem:[#allocation76_spill] sm:$0xff]  ;;  %v1221_v46 = vrot.slane %v9477_v27, 2  ;;  %v1210_v38 = vor.u32 %v1209_v0, %v1208_v43  ;;  %v9484_v0 = vld [vmem:[#allocation81_spill] sm:$0xff] }
 0x138   :  { %1302 = vrot.lane.b32.xlu0 %v1179_v57, %s4845_s10  ;;  %v1217_v57 = vrot.slane %v9475_v13, 2  ;;  %v1220_v44 = vrot.slane %v9476_v19, 1  ;;  %v6452_v27 = vld [vmem:[%s9064_s0 + $0x70] sm:$0xff]  }
 0x139   :  { %v6216_v17 = vpop.permute.xlu1 %989  ;;  %9512 = vst [vmem:[#allocation199_spill] sm:$0xff] %v6452_v27 }
 0x13a   :  { %9468 = vst [vmem:[#allocation166_spill] sm:$0xff] %v6216_v17  ;;  %v6222_v41 = vpop.permute.xlu0 %987  ;;  %v1213_v17 = vrot.slane %v9473_v37, 2  ;;  %v1207_v37 = vsel %vm1057_vm2, %v1202_v33, %v1206_v58  ;;  %v1218_v13 = vor.u32 %v1217_v57, %v1216_v34  ;;  %v1222_v19 = vor.u32 %v1221_v46, %v1220_v44 }
 0x13b   :  { %1308 = vrot.lane.b32.xlu1 %v1191_v10, %s4845_s10  ;;  %9469 = vst [vmem:[#allocation167_spill] sm:$0xff] %v6222_v41  ;;  %v1195_v10 = vsel %vm1057_vm2, %v1190_v54, %v1194_v39  ;;  %v1224_v54 = vrot.slane %v5487_v8, 1  ;;  %v9480_v39 = vld [vmem:[#allocation77_spill] sm:$0xff]  ;;  %v1211_v57 = vsel %vm1057_vm2, %v1206_v58, %v1210_v38 }
 0x13c   :  { %1306 = vrot.lane.b32.xlu0 %v1187_v56, %s4845_s10  ;;  %v1203_v56 = vsel %vm1057_vm2, %v1198_v6, %v1202_v33  ;;  %v1223_v44 = vsel %vm1057_vm2, %v1218_v13, %v1222_v19  ;;  %v1232_v33 = vrot.slane %v5499_v42, 1  ;;  %v6426_v42 = vld [vmem:[%s9064_s0 + $0x60] sm:$0xff]  }
 0x13d   :  { %v6228_v3 = vpop.permute.xlu1 %993  ;;  %9508 = vst [vmem:[#allocation195_spill] sm:$0xff] %v6426_v42 }
 0x13e   :  { %9474 = vst [vmem:[#allocation168_spill] sm:$0xff] %v6228_v3  ;;  %v6237_v41 = vpop.permute.xlu0 %991  ;;  %v1214_v3 = vor.u32 %v1213_v17, %v1212_v16  ;;  %v1228_v16 = vrot.slane %v5470_v9, 1  ;;  %v1229_v17 = vrot.slane %v5452_v61, 2  ;;  %v6432_v9 = vld [vmem:[%s9064_s0 + $0x68] sm:$0xff]  }
 0x13f   :  { %1312 = vrot.lane.b32.xlu1 %v1199_v59, %s4845_s10  ;;  %9478 = vst [vmem:[#allocation169_spill] sm:$0xff] %v6237_v41  ;;  %v114_v59 = vld [vmem:[%s9064_s0 + $0x164] sm:$0x3]  ;;  %v1225_v41 = vrot.slane %v9480_v39, 2  ;;  %9509 = vst [vmem:[#allocation196_spill] sm:$0xff] %v6432_v9 }
 0x140   :  { %1310 = vrot.lane.b32.xlu0 %v1195_v10, %s4845_s10  ;;  %v1215_v6 = vsel %vm1057_vm2, %v1210_v38, %v1214_v3  ;;  %v1230_v10 = vor.u32 %v1229_v17, %v1228_v16  ;;  %v1219_v38 = vsel %vm1057_vm2, %v1214_v3, %v1218_v13 }
 0x141   :  { %v6240_v11 = vpop.permute.xlu1 %997  ;;  %v1226_v46 = vor.u32 %v1225_v41, %v1224_v54 }
 0x142   :  { %9479 = vst [vmem:[#allocation170_spill] sm:$0xff] %v6240_v11  ;;  %v6252_v43 = vpop.permute.xlu0 %995 }
 0x143   :  { %1316 = vrot.lane.b32.xlu1 %v1207_v37, %s4845_s10  ;;  %9481 = vst [vmem:[#allocation171_spill] sm:$0xff] %v6252_v43  ;;  %v6260_v37 = vcombine.low %v6006_v51, %v114_v59  ;;  %v1233_v43 = vrot.slane %v9484_v0, 2  ;;  %v9486_v59 = vshll.u32 %v5990_v52, 16  ;;  %v1231_v16 = vsel %vm1057_vm2, %v1226_v46, %v1230_v10 }
 0x144   :  { %1314 = vrot.lane.b32.xlu0 %v1203_v56, %s4845_s10 }
 0x145   :  { %v6257_v34 = vpop.permute.xlu1 %1001  ;;  %v1242_v56 = vrot.slane %v9486_v59, 2  ;;  %v1246_v58 = vshrl.u32 %v6260_v37, 16  ;;  %v1249_v41 = vshll.u32 %v6260_v37, 16  ;;  %v1234_v17 = vor.u32 %v1233_v43, %v1232_v33 }
 0x146   :  { %9482 = vst [vmem:[#allocation172_spill] sm:$0xff] %v6257_v34  ;;  %v6266_v11 = vpop.permute.xlu0 %999  ;;  %v9485_v34 = vshrl.u32 %v5990_v52, 16 }
 0x147   :  { %1320 = vrot.lane.b32.xlu1 %v1215_v6, %s4845_s10  ;;  %9483 = vst [vmem:[#allocation173_spill] sm:$0xff] %v6266_v11  ;;  %v1251_v3 = vrot.slane %v1249_v41, 2  ;;  %v1235_v33 = vsel %vm1057_vm2, %v1230_v10, %v1234_v17 }
 0x148   :  { %v1239_v51 = vrot.slane %v9485_v34, 1  ;;  %1318 = vrot.lane.b32.xlu0 %v1211_v57, %s4845_s10  ;;  %v1227_v57 = vsel %vm1057_vm2, %v1222_v19, %v1226_v46  ;;  %v4708_v19 = vld [vmem:[%s9064_s0 + $0xc] sm:$0xf] }
 0x149   :  { %v6274_v61 = vpop.permute.xlu1 %1005 }
 0x14a   :  { %9487 = vst [vmem:[#allocation174_spill] sm:$0xff] %v6274_v61  ;;  %v6281_v54 = vpop.permute.xlu0 %1003  ;;  %v1243_v6 = vor.u32 %v1242_v56, %v1239_v51  ;;  %v115_v61 = vld [vmem:[%s9064_s0 + $0x8] sm:$0xc] }
 0x14b   :  { %1324 = vrot.lane.b32.xlu1 %v1223_v44, %s4845_s10  ;;  %9488 = vst [vmem:[#allocation175_spill] sm:$0xff] %v6281_v54  ;;  %v1248_v44 = vrot.slane %v1246_v58, 1  ;;  %v4347_v46 = vcombine.low %v115_v61, %v4708_v19  ;;  %v6309_v58 = vld [vmem:[%s9064_s0 + $0x18] sm:$0xff]  }
 0x14c   :  { %1322 = vrot.lane.b32.xlu0 %v1219_v38, %s4845_s10  ;;  %v1244_v59 = vsel %vm1057_vm2, %v1234_v17, %v1243_v6  ;;  %v1346_v38 = vrot.slane %v4886_v2, 2  ;;  %v6312_v41 = vrot.slane %v6309_v58, 2 }
 0x14d   :  { %v6284_v34 = vpop.permute.xlu1 %1009  ;;  %v1252_v51 = vor.u32 %v1251_v3, %v1248_v44  ;;  %v1345_v10 = vrot.slane %v4347_v46, 2  ;;  %v6326_v44 = vld [vmem:[%s9064_s0 + $0x20] sm:$0xff]  }
 0x14e   :  { %9489 = vst [vmem:[#allocation176_spill] sm:$0xff] %v6284_v34  ;;  %v6289_v13 = vpop.permute.xlu0 %1007  ;;  %v1350_v3 = vrot.slane %v6326_v44, 2  ;;  %v6406_v34 = vld [vmem:[%s9064_s0 + $0x58] sm:$0xff]  }
 0x14f   :  { %1328 = vrot.lane.b32.xlu1 %v1231_v16, %s4845_s10  ;;  %9490 = vst [vmem:[#allocation177_spill] sm:$0xff] %v6289_v13  ;;  %v1253_v61 = vsel %vm1057_vm2, %v1243_v6, %v1252_v51  ;;  %v6348_v13 = vld [vmem:[%s9064_s0 + $0x30] sm:$0xff]   ;;  %9505 = vst [vmem:[#allocation192_spill] sm:$0xff] %v6406_v34 }
 0x150   :  { %1326 = vrot.lane.b32.xlu0 %v1227_v57, %s4845_s10  ;;  %v1349_v57 = vsel %vm1344_vm3, %v1346_v38, %v6312_v41  ;;  %v1354_v54 = vrot.slane %v6348_v13, 2 }
 0x151   :  { %v6295_v43 = vpop.permute.xlu1 %1013 }
 0x152   :  { %9491 = vst [vmem:[#allocation178_spill] sm:$0xff] %v6295_v43  ;;  %v6303_v56 = vpop.permute.xlu0 %1011 }
 0x153   :  { %1332 = vrot.lane.b32.xlu1 %v1244_v59, %s4845_s10  ;;  %9492 = vst [vmem:[#allocation179_spill] sm:$0xff] %v6303_v56  ;;  %v6332_v59 = vld [vmem:[%s9064_s0 + $0x28] sm:$0xff]   ;;  %v6400_v56 = vld [vmem:[%s9064_s0 + $0x50] sm:$0xff]  }
 0x154   :  { %1330 = vrot.lane.b32.xlu0 %v1235_v33, %s4845_s10  ;;  %v1352_v6 = vrot.slane %v6332_v59, 2  ;;  %9504 = vst [vmem:[#allocation191_spill] sm:$0xff] %v6400_v56 }
 0x155   :  { %v6314_v16 = vpop.permute.xlu1 %1017 }
 0x156   :  { %9493 = vst [vmem:[#allocation180_spill] sm:$0xff] %v6314_v16  ;;  %v6319_v17 = vpop.permute.xlu0 %1015  ;;  %v6343_v46 = vsel %vm1344_vm3, %v1350_v3, %v1352_v6 }
 0x157   :  { %1336 = vrot.lane.b32.xlu1 %v1252_v51, %s4845_s10  ;;  %9494 = vst [vmem:[#allocation181_spill] sm:$0xff] %v6319_v17  ;;  %v1347_v51 = vsel %vm1344_vm3, %v1345_v10, %v1346_v38  ;;  %v6364_v10 = vsel %vm1344_vm3, %v6312_v41, %v1350_v3 }
 0x158   :  { %1334 = vrot.lane.b32.xlu0 %v1253_v61, %s4845_s10  ;;  %v6354_v61 = vld [vmem:[%s9064_s0 + $0x38] sm:$0xff]  }
 0x159   :  { %v6335_v33 = vpop.permute.xlu1 %1021  ;;  %9497 = vst [vmem:[#allocation184_spill] sm:$0xff] %v6354_v61 }
 0x15a   :  { %9495 = vst [vmem:[#allocation182_spill] sm:$0xff] %v6335_v33  ;;  %v6340_v19 = vpop.permute.xlu0 %1019 }
 0x15b   :  { %1429 = vrot.lane.b32.xlu1 %v1349_v57, %s4846_s25  ;;  %9496 = vst [vmem:[#allocation183_spill] sm:$0xff] %v6340_v19  ;;  %v1356_v57 = vrot.slane %v6354_v61, 2  ;;  %v6374_v19 = vld [vmem:[%s9064_s0 + $0x40] sm:$0xff]  }
 0x15c   :  { %1427 = vrot.lane.b32.xlu0 %v1347_v51, %s4846_s25  ;;  %9500 = vst [vmem:[#allocation187_spill] sm:$0xff] %v6374_v19  ;;  %v6380_v51 = vld [vmem:[%s9064_s0 + $0x48] sm:$0xff]  }
 0x15d   :  { %v6357_v38 = vpop.permute.xlu1 %1025  ;;  %v6369_v33 = vsel %vm1344_vm3, %v1354_v54, %v1356_v57  ;;  %9501 = vst [vmem:[#allocation188_spill] sm:$0xff] %v6380_v51  ;;  %v1360_v3 = vrot.slane %v6380_v51, 2 }
 0x15e   :  { %9498 = vst [vmem:[#allocation185_spill] sm:$0xff] %v6357_v38  ;;  %v6366_v11 = vpop.permute.xlu0 %1023  ;;  %v1358_v38 = vrot.slane %v6374_v19, 2 }
 0x15f   :  { %1433 = vrot.lane.b32.xlu1 %v6343_v46, %s4846_s25  ;;  %9499 = vst [vmem:[#allocation186_spill] sm:$0xff] %v6366_v11  ;;  %v6390_v11 = vsel %vm1344_vm3, %v1352_v6, %v1354_v54  ;;  %v1364_v54 = vrot.slane %v6406_v34, 2 }
 0x160   :  { %1431 = vrot.lane.b32.xlu0 %v6364_v10, %s4846_s25  ;;  %v6395_v43 = vsel %vm1344_vm3, %v1358_v38, %v1360_v3 }
 0x161   :  { %v6383_v16 = vpop.permute.xlu1 %1029 }
 0x162   :  { %9502 = vst [vmem:[#allocation189_spill] sm:$0xff] %v6383_v16  ;;  %v6392_v17 = vpop.permute.xlu0 %1027  ;;  %v1362_v16 = vrot.slane %v6400_v56, 2 }
 0x163   :  { %1437 = vrot.lane.b32.xlu1 %v6369_v33, %s4846_s25  ;;  %9503 = vst [vmem:[#allocation190_spill] sm:$0xff] %v6392_v17  ;;  %v6416_v17 = vsel %vm1344_vm3, %v1356_v57, %v1358_v38  ;;  %v1368_v57 = vrot.slane %v6432_v9, 2 }
 0x164   :  { %1435 = vrot.lane.b32.xlu0 %v6390_v11, %s4846_s25  ;;  %v6421_v0 = vsel %vm1344_vm3, %v1362_v16, %v1364_v54 }
 0x165   :  { %v6409_v6 = vpop.permute.xlu1 %1033 }
 0x166   :  { %9506 = vst [vmem:[#allocation193_spill] sm:$0xff] %v6409_v6  ;;  %v6418_v2 = vpop.permute.xlu0 %1031  ;;  %v1366_v6 = vrot.slane %v6426_v42, 2 }
 0x167   :  { %1441 = vrot.lane.b32.xlu1 %v6395_v43, %s4846_s25  ;;  %9507 = vst [vmem:[#allocation194_spill] sm:$0xff] %v6418_v2  ;;  %v6442_v2 = vsel %vm1344_vm3, %v1360_v3, %v1362_v16  ;;  %v1372_v16 = vrot.slane %v6458_v45, 2  ;;  %v4722_v45 = vld [vmem:[%s9064_s0 + $0x80] sm:$0xff]  }
 0x168   :  { %1439 = vrot.lane.b32.xlu0 %v6416_v17, %s4846_s25  ;;  %v6447_v8 = vsel %vm1344_vm3, %v1366_v6, %v1368_v57  ;;  %v1374_v25 = vrot.slane %v4722_v45, 2 }
 0x169   :  { %v6435_v38 = vpop.permute.xlu1 %1037 }
 0x16a   :  { %9510 = vst [vmem:[#allocation197_spill] sm:$0xff] %v6435_v38  ;;  %v6444_v39 = vpop.permute.xlu0 %1035  ;;  %v1370_v38 = vrot.slane %v6452_v27, 2 }
 0x16b   :  { %1445 = vrot.lane.b32.xlu1 %v6421_v0, %s4846_s25  ;;  %9511 = vst [vmem:[#allocation198_spill] sm:$0xff] %v6444_v39  ;;  %v6468_v39 = vsel %vm1344_vm3, %v1364_v54, %v1366_v6 }
 0x16c   :  { %1443 = vrot.lane.b32.xlu0 %v6442_v2, %s4846_s25  ;;  %v6473_v47 = vsel %vm1344_vm3, %v1370_v38, %v1372_v16  ;;  %v6488_v54 = vsel %vm1344_vm3, %v1368_v57, %v1370_v38  ;;  %v116_v57 = vld [vmem:[%s9064_s0 + $0xc0] sm:$0xc]  ;;  %v6511_v38 = vsel %vm1344_vm3, %v1372_v16, %v1374_v25 }
 0x16d   :  { %v6461_v3 = vpop.permute.xlu1 %1041  ;;  %v4348_v56 = vcombine.low %v116_v57, %v4726_v29 }
 0x16e   :  { %9514 = vst [vmem:[#allocation201_spill] sm:$0xff] %v6461_v3  ;;  %v6470_v18 = vpop.permute.xlu0 %1039  ;;  %v4723_v3 = vld [vmem:[%s9064_s0 + $0x88] sm:$0xff]  }
 0x16f   :  { %1449 = vrot.lane.b32.xlu1 %v6447_v8, %s4846_s25  ;;  %9515 = vst [vmem:[#allocation202_spill] sm:$0xff] %v6470_v18  ;;  %v1376_v27 = vrot.slane %v4723_v3, 2  ;;  %v4724_v3 = vld [vmem:[%s9064_s0 + $0x90] sm:$0xff]  }
 0x170   :  { %1447 = vrot.lane.b32.xlu0 %v6468_v39, %s4846_s25  ;;  %v1378_v18 = vrot.slane %v4724_v3, 2 }
 0x171   :  { %v6481_v9 = vpop.permute.xlu1 %1045  ;;  %v6493_v45 = vsel %vm1344_vm3, %v1374_v25, %v1376_v27 }
 0x172   :  { %9516 = vst [vmem:[#allocation203_spill] sm:$0xff] %v6481_v9  ;;  %v6490_v6 = vpop.permute.xlu0 %1043  ;;  %v4725_v9 = vld [vmem:[%s9064_s0 + $0x98] sm:$0xff]   ;;  %v6532_v25 = vsel %vm1344_vm3, %v1376_v27, %v1378_v18 }
 0x173   :  { %1453 = vrot.lane.b32.xlu1 %v6473_v47, %s4846_s25  ;;  %9517 = vst [vmem:[#allocation204_spill] sm:$0xff] %v6490_v6  ;;  %v1380_v42 = vrot.slane %v4725_v9, 2  ;;  %v6519_v9 = vrot.slane %v5894_v55, 2  ;;  %v1387_v55 = vrot.slane %v5204_v7, 2 }
 0x174   :  { %1451 = vrot.lane.b32.xlu0 %v6488_v54, %s4846_s25 }
 0x175   :  { %v6501_v34 = vpop.permute.xlu1 %1049  ;;  %v6516_v6 = vsel %vm1344_vm3, %v1378_v18, %v1380_v42  ;;  %v6546_v57 = vsel %vm1344_vm3, %v1380_v42, %v6519_v9 }
 0x176   :  { %9518 = vst [vmem:[#allocation205_spill] sm:$0xff] %v6501_v34  ;;  %v6513_v3 = vpop.permute.xlu0 %1047  ;;  %v1384_v34 = vrot.slane %v6103_v48, 2 }
 0x177   :  { %1457 = vrot.lane.b32.xlu1 %v6493_v45, %s4846_s25  ;;  %9519 = vst [vmem:[#allocation206_spill] sm:$0xff] %v6513_v3  ;;  %v1386_v3 = vrot.slane %v4348_v56, 2  ;;  %v6554_v56 = vld [vmem:[%s9064_s0 + $0xd0] sm:$0xff]  }
 0x178   :  { %1455 = vrot.lane.b32.xlu0 %v6511_v38, %s4846_s25  ;;  %v1385_v48 = vsel %vm1344_vm3, %v6519_v9, %v1384_v34  ;;  %9524 = vst [vmem:[#allocation211_spill] sm:$0xff] %v6554_v56  ;;  %v6557_v7 = vrot.slane %v6554_v56, 2 }
 0x179   :  { %v6525_v51 = vpop.permute.xlu1 %1256  ;;  %v1388_v27 = vsel %vm1344_vm3, %v1386_v3, %v1387_v55 }
 0x17a   :  { %9520 = vst [vmem:[#allocation207_spill] sm:$0xff] %v6525_v51  ;;  %v6534_v16 = vpop.permute.xlu0 %1254  ;;  %v6579_v51 = vld [vmem:[%s9064_s0 + $0xe0] sm:$0xff]  }
 0x17b   :  { %1461 = vrot.lane.b32.xlu1 %v6516_v6, %s4846_s25  ;;  %9521 = vst [vmem:[#allocation208_spill] sm:$0xff] %v6534_v16  ;;  %9528 = vst [vmem:[#allocation215_spill] sm:$0xff] %v6579_v51  ;;  %v1393_v16 = vrot.slane %v6579_v51, 2 }
 0x17c   :  { %1459 = vrot.lane.b32.xlu0 %v6532_v25, %s4846_s25 }
 0x17d   :  { %v6539_v29 = vpop.permute.xlu1 %1260 }
 0x17e   :  { %9522 = vst [vmem:[#allocation209_spill] sm:$0xff] %v6539_v29  ;;  %v6548_v18 = vpop.permute.xlu0 %1258 }
 0x17f   :  { %1465 = vrot.lane.b32.xlu1 %v1385_v48, %s4846_s25  ;;  %9523 = vst [vmem:[#allocation210_spill] sm:$0xff] %v6548_v18  ;;  %v6562_v48 = vld [vmem:[%s9064_s0 + $0xd8] sm:$0xff]  }
 0x180   :  { %9525 = vst [vmem:[#allocation212_spill] sm:$0xff] %v6562_v48  ;;  %v1391_v42 = vrot.slane %v6562_v48, 2  ;;  %1463 = vrot.lane.b32.xlu0 %v6546_v57, %s4846_s25 }
 0x181   :  { %v6565_v29 = vpop.permute.xlu1 %1264 }
 0x182   :  { %9526 = vst [vmem:[#allocation213_spill] sm:$0xff] %v6565_v29  ;;  %v6570_v3 = vpop.permute.xlu0 %1262  ;;  %v6574_v18 = vsel %vm1344_vm3, %v6557_v7, %v1391_v42  ;;  %v6585_v29 = vld [vmem:[%s9064_s0 + $0xe8] sm:$0xff]  }
 0x183   :  { %1469 = vrot.lane.b32.xlu1 %v1388_v27, %s4846_s25  ;;  %9527 = vst [vmem:[#allocation214_spill] sm:$0xff] %v6570_v3  ;;  %9529 = vst [vmem:[#allocation216_spill] sm:$0xff] %v6585_v29  ;;  %v1395_v27 = vrot.slane %v6585_v29, 2  ;;  %v1390_v3 = vsel %vm1344_vm3, %v1387_v55, %v6557_v7 }
 0x184   :  { %1467 = vrot.lane.b32.xlu0 %v1384_v34, %s4846_s25  ;;  %v6609_v34 = vld [vmem:[%s9064_s0 + $0xf8] sm:$0xff]  }
 0x185   :  { %v6588_v48 = vpop.permute.xlu1 %1268  ;;  %v6598_v51 = vsel %vm1344_vm3, %v1393_v16, %v1395_v27  ;;  %9533 = vst [vmem:[#allocation220_spill] sm:$0xff] %v6609_v34  ;;  %v1399_v29 = vrot.slane %v6609_v34, 2  ;;  %v1401_v34 = vrot.slane %v4733_v40, 2 }
 0x186   :  { %9530 = vst [vmem:[#allocation217_spill] sm:$0xff] %v6588_v48  ;;  %v6595_v56 = vpop.permute.xlu0 %1266  ;;  %v1397_v48 = vrot.slane %v6603_v60, 2 }
 0x187   :  { %1473 = vrot.lane.b32.xlu1 %v6574_v18, %s4846_s25  ;;  %9531 = vst [vmem:[#allocation218_spill] sm:$0xff] %v6595_v56  ;;  %v6618_v56 = vsel %vm1344_vm3, %v1391_v42, %v1393_v16 }
 0x188   :  { %1471 = vrot.lane.b32.xlu0 %v1390_v3, %s4846_s25  ;;  %v6623_v60 = vsel %vm1344_vm3, %v1397_v48, %v1399_v29  ;;  %v4734_v3 = vld [vmem:[%s9064_s0 + $0x108] sm:$0xff]   ;;  %v6638_v16 = vsel %vm1344_vm3, %v1395_v27, %v1397_v48  ;;  %v6658_v48 = vsel %vm1344_vm3, %v1399_v29, %v1401_v34 }
 0x189   :  { %v6612_v55 = vpop.permute.xlu1 %1272 }
 0x18a   :  { %9534 = vst [vmem:[#allocation221_spill] sm:$0xff] %v6612_v55  ;;  %v6620_v19 = vpop.permute.xlu0 %1270  ;;  %v1403_v55 = vrot.slane %v4734_v3, 2  ;;  %v4735_v3 = vld [vmem:[%s9064_s0 + $0x110] sm:$0xff]  }
 0x18b   :  { %1477 = vrot.lane.b32.xlu1 %v6598_v51, %s4846_s25  ;;  %9535 = vst [vmem:[#allocation222_spill] sm:$0xff] %v6620_v19  ;;  %v1405_v19 = vrot.slane %v4735_v3, 2 }
 0x18c   :  { %1475 = vrot.lane.b32.xlu0 %v6618_v56, %s4846_s25  ;;  %v6643_v40 = vsel %vm1344_vm3, %v1401_v34, %v1403_v55 }
 0x18d   :  { %v6631_v24 = vpop.permute.xlu1 %1276  ;;  %v6678_v29 = vsel %vm1344_vm3, %v1403_v55, %v1405_v19 }
 0x18e   :  { %9536 = vst [vmem:[#allocation223_spill] sm:$0xff] %v6631_v24  ;;  %v6640_v42 = vpop.permute.xlu0 %1274  ;;  %v4736_v24 = vld [vmem:[%s9064_s0 + $0x118] sm:$0xff]  }
 0x18f   :  { %1481 = vrot.lane.b32.xlu1 %v6623_v60, %s4846_s25  ;;  %9537 = vst [vmem:[#allocation224_spill] sm:$0xff] %v6640_v42  ;;  %v1407_v61 = vrot.slane %v4736_v24, 2  ;;  %v4737_v24 = vld [vmem:[%s9064_s0 + $0x120] sm:$0xff]  }
 0x190   :  { %1479 = vrot.lane.b32.xlu0 %v6638_v16, %s4846_s25  ;;  %v1409_v42 = vrot.slane %v4737_v24, 2 }
 0x191   :  { %v6651_v53 = vpop.permute.xlu1 %1280  ;;  %v6663_v3 = vsel %vm1344_vm3, %v1405_v19, %v1407_v61 }
 0x192   :  { %9538 = vst [vmem:[#allocation225_spill] sm:$0xff] %v6651_v53  ;;  %v6660_v27 = vpop.permute.xlu0 %1278  ;;  %v4738_v53 = vld [vmem:[%s9064_s0 + $0x128] sm:$0xff]   ;;  %v6698_v19 = vsel %vm1344_vm3, %v1407_v61, %v1409_v42 }
 0x193   :  { %1485 = vrot.lane.b32.xlu1 %v6643_v40, %s4846_s25  ;;  %9539 = vst [vmem:[#allocation226_spill] sm:$0xff] %v6660_v27  ;;  %v1411_v49 = vrot.slane %v4738_v53, 2  ;;  %v4739_v53 = vld [vmem:[%s9064_s0 + $0x130] sm:$0xff]  }
 0x194   :  { %1483 = vrot.lane.b32.xlu0 %v6658_v48, %s4846_s25  ;;  %v1413_v27 = vrot.slane %v4739_v53, 2 }
 0x195   :  { %v6671_v20 = vpop.permute.xlu1 %1284  ;;  %v6683_v24 = vsel %vm1344_vm3, %v1409_v42, %v1411_v49 }
 0x196   :  { %9540 = vst [vmem:[#allocation227_spill] sm:$0xff] %v6671_v20  ;;  %v6680_v34 = vpop.permute.xlu0 %1282  ;;  %v4740_v20 = vld [vmem:[%s9064_s0 + $0x138] sm:$0xff]   ;;  %v6718_v61 = vsel %vm1344_vm3, %v1411_v49, %v1413_v27 }
 0x197   :  { %1489 = vrot.lane.b32.xlu1 %v6663_v3, %s4846_s25  ;;  %9541 = vst [vmem:[#allocation228_spill] sm:$0xff] %v6680_v34  ;;  %v1415_v50 = vrot.slane %v4740_v20, 2  ;;  %v4741_v20 = vld [vmem:[%s9064_s0 + $0x140] sm:$0xff]  }
 0x198   :  { %1487 = vrot.lane.b32.xlu0 %v6678_v29, %s4846_s25  ;;  %v1417_v34 = vrot.slane %v4741_v20, 2 }
 0x199   :  { %v6691_v32 = vpop.permute.xlu1 %1288  ;;  %v6703_v53 = vsel %vm1344_vm3, %v1413_v27, %v1415_v50 }
 0x19a   :  { %9542 = vst [vmem:[#allocation229_spill] sm:$0xff] %v6691_v32  ;;  %v6700_v55 = vpop.permute.xlu0 %1286  ;;  %v4742_v32 = vld [vmem:[%s9064_s0 + $0x148] sm:$0xff]   ;;  %v6738_v49 = vsel %vm1344_vm3, %v1415_v50, %v1417_v34 }
 0x19b   :  { %1493 = vrot.lane.b32.xlu1 %v6683_v24, %s4846_s25  ;;  %9543 = vst [vmem:[#allocation230_spill] sm:$0xff] %v6700_v55  ;;  %v1419_v14 = vrot.slane %v4742_v32, 2  ;;  %v4743_v32 = vld [vmem:[%s9064_s0 + $0x150] sm:$0xff]  }
 0x19c   :  { %1491 = vrot.lane.b32.xlu0 %v6698_v19, %s4846_s25  ;;  %v1421_v55 = vrot.slane %v4743_v32, 2  ;;  %v117_v32 = vld [vmem:[%s9064_s0 + $0x10] sm:$0xc] }
 0x19d   :  { %v6711_v21 = vpop.permute.xlu1 %1292  ;;  %v6723_v20 = vsel %vm1344_vm3, %v1417_v34, %v1419_v14  ;;  %v1425_v34 = vrot.slane %v6260_v37, 2 }
 0x19e   :  { %9544 = vst [vmem:[#allocation231_spill] sm:$0xff] %v6711_v21  ;;  %v6720_v42 = vpop.permute.xlu0 %1290  ;;  %v6729_v21 = vrot.slane %v5990_v52, 2  ;;  %v6756_v50 = vsel %vm1344_vm3, %v1419_v14, %v1421_v55 }
 0x19f   :  { %1497 = vrot.lane.b32.xlu1 %v6703_v53, %s4846_s25  ;;  %9545 = vst [vmem:[#allocation232_spill] sm:$0xff] %v6720_v42 }
 0x1a0   :  { %1495 = vrot.lane.b32.xlu0 %v6718_v61, %s4846_s25  ;;  %v6744_v42 = vsel %vm1344_vm3, %v1421_v55, %v6729_v21  ;;  %v1426_v14 = vsel %vm1344_vm3, %v6729_v21, %v1425_v34 }
 0x1a1   :  { %v6731_v23 = vpop.permute.xlu1 %1296 }
 0x1a2   :  { %9546 = vst [vmem:[#allocation233_spill] sm:$0xff] %v6731_v23  ;;  %v6740_v27 = vpop.permute.xlu0 %1294 }
 0x1a3   :  { %1501 = vrot.lane.b32.xlu1 %v6723_v20, %s4846_s25  ;;  %9547 = vst [vmem:[#allocation234_spill] sm:$0xff] %v6740_v27  ;;  %v6762_v27 = vld [vmem:[%s9064_s0 + $0x14] sm:$0xf] }
 0x1a4   :  { %1499 = vrot.lane.b32.xlu0 %v6738_v49, %s4846_s25  ;;  %v6765_v52 = vcombine.low %v117_v32, %v6762_v27 }
 0x1a5   :  { %v6749_v23 = vpop.permute.xlu1 %1300 }
 0x1a6   :  { %9548 = vst [vmem:[#allocation235_spill] sm:$0xff] %v6749_v23  ;;  %v6767_v23 = vpop.permute.xlu0 %1298  ;;  %v1533_v37 = vrot.slane %v6765_v52, 2 }
 0x1a7   :  { %1505 = vrot.lane.b32.xlu1 %v6744_v42, %s4846_s25  ;;  %9549 = vst [vmem:[#allocation236_spill] sm:$0xff] %v6767_v23 }
 0x1a8   :  { %1503 = vrot.lane.b32.xlu0 %v6756_v50, %s4846_s25  ;;  %v1534_v32 = vsel %vm1344_vm3, %v1533_v37, %v6312_v41 }
 0x1a9   :  { %v6769_v26 = vpop.permute.xlu1 %1304 }
 0x1aa   :  { %9550 = vst [vmem:[#allocation237_spill] sm:$0xff] %v6769_v26  ;;  %v6777_v55 = vpop.permute.xlu0 %1302 }
 0x1ab   :  { %1509 = vrot.lane.b32.xlu1 %v1425_v34, %s4846_s25 }
 0x1ac   :  { %1507 = vrot.lane.b32.xlu0 %v1426_v14, %s4846_s25 }
 0x1ad   :  { %v6779_v36 = vpop.permute.xlu1 %1308 }
 0x1ae   :  { %9551 = vst [vmem:[#allocation238_spill] sm:$0xff] %v6779_v36  ;;  %v6786_v26 = vpop.permute.xlu0 %1306 }
 0x1af   :  { %1547 = vrot.lane.b32.xlu1 %v6364_v10, %s4847_s20  ;;  %9552 = vst [vmem:[#allocation239_spill] sm:$0xff] %v6786_v26 }
 0x1b0   :  { %1545 = vrot.lane.b32.xlu0 %v1534_v32, %s4847_s20 }
 0x1b1   :  { %v6788_v23 = vpop.permute.xlu1 %1312 }
 0x1b2   :  { %9553 = vst [vmem:[#allocation240_spill] sm:$0xff] %v6788_v23  ;;  %v6793_v34 = vpop.permute.xlu0 %1310 }
 0x1b3   :  { %1551 = vrot.lane.b32.xlu1 %v6390_v11, %s4847_s20  ;;  %9554 = vst [vmem:[#allocation241_spill] sm:$0xff] %v6793_v34 }
 0x1b4   :  { %1549 = vrot.lane.b32.xlu0 %v6343_v46, %s4847_s20 }
 0x1b5   :  { %v6795_v36 = vpop.permute.xlu1 %1316 }
 0x1b6   :  { %9555 = vst [vmem:[#allocation242_spill] sm:$0xff] %v6795_v36  ;;  %v6801_v41 = vpop.permute.xlu0 %1314 }
 0x1b7   :  { %1555 = vrot.lane.b32.xlu1 %v6416_v17, %s4847_s20  ;;  %9556 = vst [vmem:[#allocation243_spill] sm:$0xff] %v6801_v41 }
 0x1b8   :  { %1553 = vrot.lane.b32.xlu0 %v6369_v33, %s4847_s20  ;;  %v118_v33 = vld [vmem:[%s9064_s0 + $0xac] sm:$0xf] }
 0x1b9   :  { %v6803_v10 = vpop.permute.xlu1 %1320 }
 0x1ba   :  { %9557 = vst [vmem:[#allocation244_spill] sm:$0xff] %v6803_v10  ;;  %v6809_v11 = vpop.permute.xlu0 %1318 }
 0x1bb   :  { %1559 = vrot.lane.b32.xlu1 %v6442_v2, %s4847_s20  ;;  %9558 = vst [vmem:[#allocation245_spill] sm:$0xff] %v6809_v11 }
 0x1bc   :  { %1557 = vrot.lane.b32.xlu0 %v6395_v43, %s4847_s20 }
 0x1bd   :  { %v6811_v14 = vpop.permute.xlu1 %1324 }
 0x1be   :  { %9559 = vst [vmem:[#allocation246_spill] sm:$0xff] %v6811_v14  ;;  %v6817_v17 = vpop.permute.xlu0 %1322 }
 0x1bf   :  { %1563 = vrot.lane.b32.xlu1 %v6468_v39, %s4847_s20  ;;  %9560 = vst [vmem:[#allocation247_spill] sm:$0xff] %v6817_v17  ;;  %v6835_v39 = vld [vmem:[%s9064_s0 + $0xb0] sm:$0xf] }
 0x1c0   :  { %1561 = vrot.lane.b32.xlu0 %v6421_v0, %s4847_s20  ;;  %v120_v0 = vld [vmem:[%s9064_s0 + $0xb4] sm:$0x3] }
 0x1c1   :  { %v6819_v46 = vpop.permute.xlu1 %1328 }
 0x1c2   :  { %9561 = vst [vmem:[#allocation248_spill] sm:$0xff] %v6819_v46  ;;  %v6825_v2 = vpop.permute.xlu0 %1326 }
 0x1c3   :  { %1567 = vrot.lane.b32.xlu1 %v6488_v54, %s4847_s20  ;;  %9562 = vst [vmem:[#allocation249_spill] sm:$0xff] %v6825_v2  ;;  %v4745_v54 = vld [vmem:[%s9064_s0 + $0xa8] sm:$0xf] }
 0x1c4   :  { %1565 = vrot.lane.b32.xlu0 %v6447_v8, %s4847_s20  ;;  %v6847_v37 = vcombine.low %v4745_v54, %v118_v33  ;;  %v121_v2 = vld [vmem:[%s9064_s0 + $0xc8] sm:$0xc] }
 0x1c5   :  { %v6830_v43 = vpop.permute.xlu1 %1332 }
 0x1c6   :  { %9563 = vst [vmem:[#allocation250_spill] sm:$0xff] %v6830_v43  ;;  %v6849_v32 = vpop.permute.xlu0 %1330  ;;  %v4351_v43 = vcombine.low %v6835_v39, %v120_v0  ;;  %v6867_v0 = vld [vmem:[%s9064_s0 + $0xcc] sm:$0xf] }
 0x1c7   :  { %1571 = vrot.lane.b32.xlu1 %v6511_v38, %s4847_s20  ;;  %9564 = vst [vmem:[#allocation251_spill] sm:$0xff] %v6849_v32  ;;  %v1535_v38 = vrot.slane %v6847_v37, 2  ;;  %v6870_v54 = vcombine.low %v121_v2, %v6867_v0 }
 0x1c8   :  { %1569 = vrot.lane.b32.xlu0 %v6473_v47, %s4847_s20  ;;  %v1537_v33 = vrot.slane %v4351_v43, 2 }
 0x1c9   :  { %v6852_v46 = vpop.permute.xlu1 %1336  ;;  %v1539_v43 = vrot.slane %v6870_v54, 2  ;;  %v1536_v2 = vsel %vm1344_vm3, %v6519_v9, %v1535_v38 }
 0x1ca   :  { %9565 = vst [vmem:[#allocation252_spill] sm:$0xff] %v6852_v46  ;;  %v6861_v8 = vpop.permute.xlu0 %1334 }
 0x1cb   :  { %1575 = vrot.lane.b32.xlu1 %v6532_v25, %s4847_s20  ;;  %9566 = vst [vmem:[#allocation253_spill] sm:$0xff] %v6861_v8  ;;  %v1538_v25 = vsel %vm1344_vm3, %v1535_v38, %v1537_v33 }
 0x1cc   :  { %1573 = vrot.lane.b32.xlu0 %v6493_v45, %s4847_s20 }
 0x1cd   :  { %v6872_v32 = vpop.permute.xlu1 %1429 }
 0x1ce   :  { %v6878_v47 = vpop.permute.xlu0 %1427 }
 0x1cf   :  { %1579 = vrot.lane.b32.xlu1 %v6546_v57, %s4847_s20  ;;  %v1540_v57 = vsel %vm1344_vm3, %v1539_v43, %v6557_v7 }
 0x1d0   :  { %1577 = vrot.lane.b32.xlu0 %v6516_v6, %s4847_s20 }
 0x1d1   :  { %v6882_v8 = vpop.permute.xlu1 %1433 }
 0x1d2   :  { %v6889_v45 = vpop.permute.xlu0 %1431 }
 0x1d3   :  { %1583 = vrot.lane.b32.xlu1 %v1538_v25, %s4847_s20 }
 0x1d4   :  { %1581 = vrot.lane.b32.xlu0 %v1536_v2, %s4847_s20  ;;  %v127_v2 = vld [vmem:[%s9064_s0 + $0x10] sm:$0x8] }
 0x1d5   :  { %v6893_v14 = vpop.permute.xlu1 %1437 }
 0x1d6   :  { %v6897_v17 = vpop.permute.xlu0 %1435 }
 0x1d7   :  { %1587 = vrot.lane.b32.xlu1 %v1540_v57, %s4847_s20  ;;  %v1640_v57 = vshll.u32 %v6765_v52, 16 }
 0x1d8   :  { %1585 = vrot.lane.b32.xlu0 %v1537_v33, %s4847_s20 }
 0x1d9   :  { %v6899_v10 = vpop.permute.xlu1 %1441 }
 0x1da   :  { %v6904_v6 = vpop.permute.xlu0 %1439 }
 0x1db   :  { %1591 = vrot.lane.b32.xlu1 %v6618_v56, %s4847_s20 }
 0x1dc   :  { %1589 = vrot.lane.b32.xlu0 %v6574_v18, %s4847_s20  ;;  %v4705_v18 = vld [vmem:[%s9065_s1 + $0x10] ss:$0 sps:$4 sm:$0x33]  }
 0x1dd   :  { %v6906_v9 = vpop.permute.xlu1 %1445 }
 0x1de   :  { %v6912_v7 = vpop.permute.xlu0 %1443 }
 0x1df   :  { %1595 = vrot.lane.b32.xlu1 %v6638_v16, %s4847_s20  ;;  %v9231_v16 = vmov 0.0  }
 0x1e0   :  { %1593 = vrot.lane.b32.xlu0 %v6598_v51, %s4847_s20  ;;  %4448 = vmatprep.subr.bf16.mxu0 %v9231_v16  ;;  %v3082_v51 = vsel %vm3080_vm4, %v4705_v18, 0 }
 0x1e1   :  { %v6914_v38 = vpop.permute.xlu1 %1449  ;;  %4449 = vmatpush3.bf16.msra.mxu0 %v3082_v51  ;;  %4618 = vmatprep.subr.bf16.mxu1 %v9231_v16 }
 0x1e2   :  { %v6920_v56 = vpop.permute.xlu0 %1447  ;;  %4450 = vmatprep.subr.bf16.mxu0 %v9231_v16  ;;  %4621 = vmatpush3.bf16.msra.mxu1 %v3082_v51  ;;  %v4357_v51 = vcombine.low %v127_v2, %v6762_v27  ;;  %v1644_v27 = vrot.slane %v9379_v62, 2  ;;  %v1645_v2 = vrot.slane %v9380_v4, 3 }
 0x1e3   :  { %1599 = vrot.lane.b32.xlu1 %v6658_v48, %s4847_s20  ;;  %4619 = vmatprep.subr.bf16.mxu1 %v9231_v16 }
 0x1e4   :  { %1597 = vrot.lane.b32.xlu0 %v6623_v60, %s4847_s20  ;;  %v4706_v60 = vld [vmem:[%s9065_s1 + $0x8] sm:$0xff]   ;;  %4454 = vmatprep.mubr.msk.bf16.mxu0 %vm4849_vm5, %v9231_v16  ;;  %v1923_v36 = vrot.slane %v4357_v51, 3  ;;  %v1646_v4 = vor.u32 %v1645_v2, %v1644_v27 }
 0x1e5   :  { %v6922_v33 = vpop.permute.xlu1 %1453  ;;  %4451 = vmatpush3.bf16.msra.mxu0 %v4706_v60  ;;  %4538 = vmatprep.mubr.msk.bf16.mxu1 %vm4849_vm5, %v9231_v16 }
 0x1e6   :  { %v6932_v48 = vpop.permute.xlu0 %1451  ;;  %4452 = vmatprep.subr.bf16.mxu0 %v9231_v16  ;;  %4622 = vmatpush3.bf16.msra.mxu1 %v4706_v60 }
 0x1e7   :  { %1603 = vrot.lane.b32.xlu1 %v6678_v29, %s4847_s20  ;;  %4620 = vmatprep.subr.bf16.mxu1 %v9231_v16 }
 0x1e8   :  { %1601 = vrot.lane.b32.xlu0 %v6643_v40, %s4847_s20  ;;  %v4707_v40 = vld [vmem:[%s9065_s1] sm:$0xff]  }
 0x1e9   :  { %v6935_v25 = vpop.permute.xlu1 %1457  ;;  %4453 = vmatpush3.bf16.msra.mxu0 %v4707_v40 }
 0x1ea   :  { %9567 = vst [vmem:[#allocation254_spill] sm:$0xff] %v6935_v25  ;;  %v6946_v29 = vpop.permute.xlu0 %1455  ;;  %4623 = vmatpush3.bf16.msra.mxu1 %v4707_v40  ;;  %v9631_v25 = vld [vmem:[#allocation63_spill] sm:$0xff] }
 0x1eb   :  { %1607 = vrot.lane.b32.xlu1 %v6698_v19, %s4847_s20  ;;  %9568 = vst [vmem:[#allocation255_spill] sm:$0xff] %v6946_v29  ;;  %v1637_v19 = vshrl.u32 %v6765_v52, 16 }
 0x1ec   :  { %1605 = vrot.lane.b32.xlu0 %v6663_v3, %s4847_s20  ;;  %v122_v3 = vld [vmem:[%s9064_s0 + $0x164] sm:$0xf] }
 0x1ed   :  { %v6948_v43 = vpop.permute.xlu1 %1461  ;;  %v1639_v52 = vrot.slane %v1637_v19, 2 }
 0x1ee   :  { %9569 = vst [vmem:[#allocation256_spill] sm:$0xff] %v6948_v43  ;;  %v6964_v18 = vpop.permute.xlu0 %1459 }
 0x1ef   :  { %1611 = vrot.lane.b32.xlu1 %v6718_v61, %s4847_s20  ;;  %9570 = vst [vmem:[#allocation257_spill] sm:$0xff] %v6964_v18  ;;  %v1642_v61 = vrot.slane %v1640_v57, 3 }
 0x1f0   :  { %1609 = vrot.lane.b32.xlu0 %v6683_v24, %s4847_s20  ;;  %v4747_v24 = vld [vmem:[%s9064_s0 + $0x160] sm:$0xf] }
 0x1f1   :  { %v6970_v60 = vpop.permute.xlu1 %1465  ;;  %v6985_v40 = vcombine.low %v4747_v24, %v122_v3  ;;  %v1643_v62 = vor.u32 %v1642_v61, %v1639_v52  ;;  %v124_v52 = vld [vmem:[%s9064_s0 + $0x16c] sm:$0x3] }
 0x1f2   :  { %9571 = vst [vmem:[#allocation258_spill] sm:$0xff] %v6970_v60  ;;  %v6987_v11 = vpop.permute.xlu0 %1463 }
 0x1f3   :  { %1615 = vrot.lane.b32.xlu1 %v6738_v49, %s4847_s20  ;;  %9572 = vst [vmem:[#allocation259_spill] sm:$0xff] %v6987_v11  ;;  %v1924_v49 = vrot.slane %v6309_v58, 3  ;;  %v1541_v51 = vrot.slane %v6985_v40, 2  ;;  %v1648_v58 = vrot.slane %v9384_v30, 2 }
 0x1f4   :  { %1613 = vrot.lane.b32.xlu0 %v6703_v53, %s4847_s20  ;;  %v1649_v53 = vrot.slane %v9385_v35, 3  ;;  %v1926_v35 = vrot.slane %v6326_v44, 3 }
 0x1f5   :  { %v6990_v19 = vpop.permute.xlu1 %1469  ;;  %v1925_v3 = vsel %vm1922_vm6, %v1923_v36, %v1924_v49  ;;  %v7011_v36 = vld [vmem:[%s9064_s0 + $0x168] sm:$0xf]  ;;  %v1542_v30 = vsel %vm1344_vm3, %v6729_v21, %v1541_v51 }
 0x1f6   :  { %v6996_v57 = vpop.permute.xlu0 %1467  ;;  %v1650_v27 = vor.u32 %v1649_v53, %v1648_v58  ;;  %v4354_v2 = vcombine.low %v7011_v36, %v124_v52  ;;  %v1653_v58 = vrot.slane %v9387_v5, 3  ;;  %v1656_v53 = vrot.slane %v9389_v63, 2 }
 0x1f7   :  { %1619 = vrot.lane.b32.xlu1 %v6756_v50, %s4847_s20  ;;  %9573 = vst [vmem:[#allocation260_spill] sm:$0xff] %v6996_v57  ;;  %v1647_v50 = vsel %vm1635_vm7, %v1643_v62, %v1646_v4  ;;  %v1652_v57 = vrot.slane %v9386_v28, 2  ;;  %v1661_v52 = vrot.slane %v9392_v1, 3 }
 0x1f8   :  { %1617 = vrot.lane.b32.xlu0 %v6723_v20, %s4847_s20  ;;  %v1651_v21 = vsel %vm1635_vm7, %v1646_v4, %v1650_v27  ;;  %v1543_v44 = vrot.slane %v4354_v2, 2 }
 0x1f9   :  { %v7000_v24 = vpop.permute.xlu1 %1473  ;;  %v1654_v5 = vor.u32 %v1653_v58, %v1652_v57  ;;  %v9581_v58 = vld [vmem:[#allocation23_spill] sm:$0xff] }
 0x1fa   :  { %v7016_v61 = vpop.permute.xlu0 %1471  ;;  %v1544_v28 = vsel %vm1344_vm3, %v1541_v51, %v1543_v44  ;;  %v1930_v51 = vrot.slane %v6348_v13, 3 }
 0x1fb   :  { %2005 = vrot.lane.b32.xlu1 %v1925_v3, %s4850_s18  ;;  %v1927_v3 = vsel %vm1922_vm6, %v1924_v49, %v1926_v35  ;;  %v1660_v49 = vrot.slane %v9391_v12, 2 }
 0x1fc   :  { %1832 = vrot.lane.b32.xlu0 %v1647_v50, %s4851_s23  ;;  %v1657_v50 = vrot.slane %v9390_v15, 3 }
 0x1fd   :  { %v7021_v20 = vpop.permute.xlu1 %1477  ;;  %v1662_v2 = vor.u32 %v1661_v52, %v1660_v49  ;;  %v9583_v49 = vld [vmem:[#allocation30_spill] sm:$0xff] }
 0x1fe   :  { %9574 = vst [vmem:[#allocation261_spill] sm:$0xff] %v7021_v20  ;;  %v7026_v62 = vpop.permute.xlu0 %1475  ;;  %v1658_v63 = vor.u32 %v1657_v50, %v1656_v53  ;;  %v9582_v53 = vld [vmem:[#allocation22_spill] sm:$0xff]  ;;  %v1672_v52 = vrot.slane %v9583_v49, 2 }
 0x1ff   :  { %1623 = vrot.lane.b32.xlu1 %v1542_v30, %s4847_s20  ;;  %v1669_v50 = vrot.slane %v9582_v53, 3 }
 0x200   :  { %1621 = vrot.lane.b32.xlu0 %v6744_v42, %s4847_s20  ;;  %v1928_v42 = vrot.slane %v6332_v59, 3  ;;  %v1664_v59 = vrot.slane %v9395_v22, 2  ;;  %v1663_v57 = vsel %vm1635_vm7, %v1658_v63, %v1662_v2 }
 0x201   :  { %v7029_v16 = vpop.permute.xlu1 %1481 }
 0x202   :  { %9575 = vst [vmem:[#allocation262_spill] sm:$0xff] %v7029_v16  ;;  %v7041_v30 = vpop.permute.xlu0 %1479  ;;  %v1929_v12 = vsel %vm1922_vm6, %v1926_v35, %v1928_v42  ;;  %v1668_v35 = vrot.slane %v9581_v58, 2 }
 0x203   :  { %2007 = vrot.lane.b32.xlu1 %v1927_v3, %s4850_s18  ;;  %9576 = vst [vmem:[#allocation263_spill] sm:$0xff] %v7041_v30  ;;  %v1665_v3 = vrot.slane %v9396_v31, 3  ;;  %v1758_v30 = vrot.slane %v9631_v25, 2  ;;  %v128_v25 = vld [vmem:[%s9064_s0 + $0xc8] sm:$0x8] }
 0x204   :  { %1834 = vrot.lane.b32.xlu0 %v1651_v21, %s4851_s23  ;;  %v1655_v21 = vsel %vm1635_vm7, %v1650_v27, %v1654_v5  ;;  %v1659_v27 = vsel %vm1635_vm7, %v1654_v5, %v1658_v63  ;;  %v1670_v58 = vor.u32 %v1669_v50, %v1668_v35  ;;  %v9591_v63 = vld [vmem:[#allocation28_spill] sm:$0xff]  ;;  %v9593_v35 = vld [vmem:[#allocation29_spill] sm:$0xff] }
 0x205   :  { %v7044_v4 = vpop.permute.xlu1 %1485  ;;  %v1666_v31 = vor.u32 %v1665_v3, %v1664_v59  ;;  %v9590_v3 = vld [vmem:[#allocation34_spill] sm:$0xff]  ;;  %v1685_v50 = vrot.slane %v9593_v35, 3 }
 0x206   :  { %9577 = vst [vmem:[#allocation264_spill] sm:$0xff] %v7044_v4  ;;  %v7049_v15 = vpop.permute.xlu0 %1483  ;;  %v1680_v5 = vrot.slane %v9590_v3, 2 }
 0x207   :  { %1627 = vrot.lane.b32.xlu1 %v1543_v44, %s4847_s20  ;;  %9578 = vst [vmem:[#allocation265_spill] sm:$0xff] %v7049_v15  ;;  %v1667_v49 = vsel %vm1635_vm7, %v1662_v2, %v1666_v31 }
 0x208   :  { %1625 = vrot.lane.b32.xlu0 %v1544_v28, %s4847_s20  ;;  %v9584_v28 = vld [vmem:[#allocation24_spill] sm:$0xff] }
 0x209   :  { %v7052_v1 = vpop.permute.xlu1 %1489  ;;  %v1673_v22 = vrot.slane %v9584_v28, 3  ;;  %v9588_v28 = vld [vmem:[#allocation27_spill] sm:$0xff] }
 0x20a   :  { %9579 = vst [vmem:[#allocation266_spill] sm:$0xff] %v7052_v1  ;;  %v7061_v44 = vpop.permute.xlu0 %1487 }
 0x20b   :  { %2009 = vrot.lane.b32.xlu1 %v1929_v12, %s4850_s18  ;;  %9580 = vst [vmem:[#allocation267_spill] sm:$0xff] %v7061_v44  ;;  %v1931_v12 = vsel %vm1922_vm6, %v1928_v42, %v1930_v51  ;;  %v1674_v60 = vor.u32 %v1673_v22, %v1672_v52 }
 0x20c   :  { %1836 = vrot.lane.b32.xlu0 %v1655_v21, %s4851_s23  ;;  %v9589_v21 = vld [vmem:[#allocation26_spill] sm:$0xff] }
 0x20d   :  { %v7067_v1 = vpop.permute.xlu1 %1493  ;;  %v1677_v59 = vrot.slane %v9589_v21, 3  ;;  %v1675_v22 = vsel %vm1635_vm7, %v1670_v58, %v1674_v60 }
 0x20e   :  { %9585 = vst [vmem:[#allocation23_spill] sm:$0xff] %v7067_v1  ;;  %v7072_v13 = vpop.permute.xlu0 %1491  ;;  %v1676_v1 = vrot.slane %v9588_v28, 2 }
 0x20f   :  { %1840 = vrot.lane.b32.xlu1 %v1663_v57, %s4851_s23  ;;  %9586 = vst [vmem:[#allocation22_spill] sm:$0xff] %v7072_v13  ;;  %v1681_v57 = vrot.slane %v9591_v63, 3  ;;  %v9592_v13 = vld [vmem:[#allocation31_spill] sm:$0xff] }
 0x210   :  { %1838 = vrot.lane.b32.xlu0 %v1659_v27, %s4851_s23  ;;  %v1684_v42 = vrot.slane %v9592_v13, 2  ;;  %v9595_v27 = vld [vmem:[#allocation184_spill] sm:$0xff]  ;;  %v1678_v28 = vor.u32 %v1677_v59, %v1676_v1 }
 0x211   :  { %v7075_v53 = vpop.permute.xlu1 %1497  ;;  %v1932_v2 = vrot.slane %v9595_v27, 3  ;;  %v1682_v21 = vor.u32 %v1681_v57, %v1680_v5  ;;  %v9599_v27 = vld [vmem:[#allocation39_spill] sm:$0xff]  ;;  %v9604_v57 = vld [vmem:[#allocation32_spill] sm:$0xff] }
 0x212   :  { %9587 = vst [vmem:[#allocation30_spill] sm:$0xff] %v7075_v53  ;;  %v7086_v52 = vpop.permute.xlu0 %1495  ;;  %v1686_v3 = vor.u32 %v1685_v50, %v1684_v42  ;;  %v9603_v5 = vld [vmem:[#allocation35_spill] sm:$0xff]  ;;  %v1693_v42 = vrot.slane %v9604_v57, 3  ;;  %v9605_v50 = vld [vmem:[#allocation45_spill] sm:$0xff]  ;;  %v125_v57 = vld [vmem:[%s9064_s0 + $0xb4] sm:$0x7] }
 0x213   :  { %2011 = vrot.lane.b32.xlu1 %v1931_v12, %s4850_s18  ;;  %9594 = vst [vmem:[#allocation24_spill] sm:$0xff] %v7086_v52  ;;  %v1671_v12 = vsel %vm1635_vm7, %v1666_v31, %v1670_v58  ;;  %v1933_v63 = vsel %vm1922_vm6, %v1930_v51, %v1932_v2  ;;  %v1688_v52 = vrot.slane %v9599_v27, 2  ;;  %v9601_v31 = vld [vmem:[#allocation187_spill] sm:$0xff]  ;;  %v1692_v51 = vrot.slane %v9603_v5, 2 }
 0x214   :  { %1842 = vrot.lane.b32.xlu0 %v1667_v49, %s4851_s23  ;;  %v1679_v49 = vsel %vm1635_vm7, %v1674_v60, %v1678_v28  ;;  %v1687_v1 = vsel %vm1635_vm7, %v1682_v21, %v1686_v3  ;;  %v1934_v58 = vrot.slane %v9601_v31, 3  ;;  %v1683_v60 = vsel %vm1635_vm7, %v1678_v28, %v1682_v21  ;;  %v9611_v21 = vld [vmem:[#allocation49_spill] sm:$0xff] }
 0x215   :  { %v7090_v53 = vpop.permute.xlu1 %1501  ;;  %v1694_v5 = vor.u32 %v1693_v42, %v1692_v51  ;;  %v9612_v51 = vld [vmem:[#allocation41_spill] sm:$0xff] }
 0x216   :  { %9596 = vst [vmem:[#allocation27_spill] sm:$0xff] %v7090_v53  ;;  %v7095_v13 = vpop.permute.xlu0 %1499  ;;  %v9600_v53 = vld [vmem:[#allocation33_spill] sm:$0xff]  ;;  %v1935_v31 = vsel %vm1922_vm6, %v1932_v2, %v1934_v58  ;;  %v1704_v2 = vrot.slane %v9611_v21, 2  ;;  %v1705_v42 = vrot.slane %v9612_v51, 3 }
 0x217   :  { %1846 = vrot.lane.b32.xlu1 %v1675_v22, %s4851_s23  ;;  %9597 = vst [vmem:[#allocation26_spill] sm:$0xff] %v7095_v13  ;;  %v1689_v44 = vrot.slane %v9600_v53, 3  ;;  %v1696_v22 = vrot.slane %v9605_v50, 2  ;;  %v7136_v13 = vcombine.low %v6835_v39, %v125_v57  ;;  %v1717_v39 = vshrl.u32 %v6847_v37, 16 }
 0x218   :  { %1844 = vrot.lane.b32.xlu0 %v1671_v12, %s4851_s23  ;;  %v9606_v12 = vld [vmem:[#allocation36_spill] sm:$0xff]  ;;  %v1706_v51 = vor.u32 %v1705_v42, %v1704_v2  ;;  %v9619_v42 = vld [vmem:[#allocation191_spill] sm:$0xff] }
 0x219   :  { %v7098_v35 = vpop.permute.xlu1 %1505  ;;  %v1697_v27 = vrot.slane %v9606_v12, 3  ;;  %v1690_v53 = vor.u32 %v1689_v44, %v1688_v52  ;;  %v9609_v52 = vld [vmem:[#allocation40_spill] sm:$0xff]  ;;  %v1729_v46 = vshll.u32 %v7136_v13, 16 }
 0x21a   :  { %9598 = vst [vmem:[#allocation34_spill] sm:$0xff] %v7098_v35  ;;  %v7107_v59 = vpop.permute.xlu0 %1503 }
 0x21b   :  { %2013 = vrot.lane.b32.xlu1 %v1933_v63, %s4850_s18  ;;  %9602 = vst [vmem:[#allocation28_spill] sm:$0xff] %v7107_v59  ;;  %v1698_v59 = vor.u32 %v1697_v27, %v1696_v22  ;;  %v1691_v44 = vsel %vm1635_vm7, %v1686_v3, %v1690_v53  ;;  %v9613_v22 = vld [vmem:[#allocation46_spill] sm:$0xff] }
 0x21c   :  { %1848 = vrot.lane.b32.xlu0 %v1679_v49, %s4851_s23  ;;  %v1700_v49 = vrot.slane %v9609_v52, 2  ;;  %v1708_v12 = vrot.slane %v9613_v22, 2  ;;  %v9614_v27 = vld [vmem:[#allocation42_spill] sm:$0xff]  ;;  %v9615_v52 = vld [vmem:[#allocation188_spill] sm:$0xff] }
 0x21d   :  { %v7113_v35 = vpop.permute.xlu1 %1509  ;;  %v1699_v3 = vsel %vm1635_vm7, %v1694_v5, %v1698_v59  ;;  %v1936_v41 = vrot.slane %v9615_v52, 3  ;;  %v1726_v52 = vshrl.u32 %v7136_v13, 16 }
 0x21e   :  { %9607 = vst [vmem:[#allocation31_spill] sm:$0xff] %v7113_v35  ;;  %v7118_v63 = vpop.permute.xlu0 %1507  ;;  %v1720_v35 = vshll.u32 %v6847_v37, 16 }
 0x21f   :  { %1852 = vrot.lane.b32.xlu1 %v1687_v1, %s4851_s23  ;;  %9608 = vst [vmem:[#allocation29_spill] sm:$0xff] %v7118_v63  ;;  %v9610_v1 = vld [vmem:[#allocation37_spill] sm:$0xff]  ;;  %v1709_v63 = vrot.slane %v9614_v27, 3  ;;  %v1937_v27 = vsel %vm1922_vm6, %v1934_v58, %v1936_v41  ;;  %v1728_v23 = vrot.slane %v1726_v52, 2 }
 0x220   :  { %1850 = vrot.lane.b32.xlu0 %v1683_v60, %s4851_s23  ;;  %v1701_v28 = vrot.slane %v9610_v1, 3  ;;  %v1722_v4 = vrot.slane %v1720_v35, 3 }
 0x221   :  { %v7124_v50 = vpop.permute.xlu1 %1547  ;;  %v1710_v22 = vor.u32 %v1709_v63, %v1708_v12  ;;  %v1938_v12 = vrot.slane %v9619_v42, 3 }
 0x222   :  { %v7138_v60 = vpop.permute.xlu0 %1545  ;;  %v1702_v21 = vor.u32 %v1701_v28, %v1700_v49 }
 0x223   :  { %2015 = vrot.lane.b32.xlu1 %v1935_v31, %s4850_s18  ;;  %v1695_v31 = vsel %vm1635_vm7, %v1690_v53, %v1694_v5  ;;  %v9616_v53 = vld [vmem:[#allocation38_spill] sm:$0xff]  ;;  %v1711_v2 = vsel %vm1635_vm7, %v1706_v51, %v1710_v22 }
 0x224   :  { %1854 = vrot.lane.b32.xlu0 %v1691_v44, %s4851_s23  ;;  %v9617_v5 = vshrl.u32 %v9616_v53, 16  ;;  %v9618_v63 = vshll.u32 %v9616_v53, 16  ;;  %v1703_v58 = vsel %vm1635_vm7, %v1698_v59, %v1702_v21  ;;  %v1707_v59 = vsel %vm1635_vm7, %v1702_v21, %v1706_v51  ;;  %v9621_v51 = vld [vmem:[#allocation50_spill] sm:$0xff] }
 0x225   :  { %v7142_v1 = vpop.permute.xlu1 %1551 }
 0x226   :  { %v7148_v57 = vpop.permute.xlu0 %1549  ;;  %v1712_v49 = vrot.slane %v9617_v5, 2  ;;  %v1713_v28 = vrot.slane %v9618_v63, 3  ;;  %v4852_v5 = vmov 0  }
 0x227   :  { %1858 = vrot.lane.b32.xlu1 %v1699_v3, %s4851_s23  ;;  %v1719_v3 = vrot.slane %v1717_v39, 2  ;;  %4637 = vset.pattern.permute.xlu0 %v4852_v5  ;;  %v1939_v39 = vsel %vm1922_vm6, %v1936_v41, %v1938_v12 }
 0x228   :  { %1856 = vrot.lane.b32.xlu0 %v1695_v31, %s4851_s23  ;;  %v1731_v31 = vrot.slane %v1729_v46, 3  ;;  %4638 = vset.pattern.permute.xlu1 %v4852_v5  ;;  %v1735_v5 = vshrl.u32 %v6870_v54, 16 }
 0x229   :  { %v7154_v44 = vpop.permute.xlu1 %1555  ;;  %v1723_v42 = vor.u32 %v1722_v4, %v1719_v3  ;;  %v9623_v4 = vld [vmem:[#allocation51_spill] sm:$0xff] }
 0x22a   :  { %v7165_v11 = vpop.permute.xlu0 %1553  ;;  %v1732_v35 = vor.u32 %v1731_v31, %v1728_v23  ;;  %v1747_v23 = vrot.slane %v9623_v4, 3 }
 0x22b   :  { %2017 = vrot.lane.b32.xlu1 %v1937_v27, %s4850_s18  ;;  %v1714_v27 = vor.u32 %v1713_v28, %v1712_v49  ;;  %v1738_v49 = vshll.u32 %v6870_v54, 16  ;;  %v9620_v28 = vld [vmem:[#allocation55_spill] sm:$0xff]  ;;  %v1737_v54 = vrot.slane %v1735_v5, 2 }
 0x22c   :  { %1860 = vrot.lane.b32.xlu0 %v1703_v58, %s4851_s23  ;;  %v1742_v21 = vrot.slane %v9620_v28, 2  ;;  %v1743_v58 = vrot.slane %v9621_v51, 3  ;;  %v1733_v31 = vsel %vm1635_vm7, %v1723_v42, %v1732_v35  ;;  %v9626_v5 = vld [vmem:[#allocation195_spill] sm:$0xff] }
 0x22d   :  { %v7167_v43 = vpop.permute.xlu1 %1559  ;;  %v1715_v46 = vsel %vm1635_vm7, %v1710_v22, %v1714_v27  ;;  %v1724_v28 = vsel %vm1635_vm7, %v1714_v27, %v1723_v42  ;;  %v9628_v27 = vld [vmem:[#allocation53_spill] sm:$0xff] }
 0x22e   :  { %v7172_v63 = vpop.permute.xlu0 %1557  ;;  %v1744_v51 = vor.u32 %v1743_v58, %v1742_v21  ;;  %v1751_v42 = vrot.slane %v9628_v27, 3  ;;  %v9629_v58 = vld [vmem:[#allocation56_spill] sm:$0xff] }
 0x22f   :  { %1864 = vrot.lane.b32.xlu1 %v1711_v2, %s4851_s23  ;;  %v9622_v2 = vld [vmem:[#allocation52_spill] sm:$0xff] }
 0x230   :  { %1862 = vrot.lane.b32.xlu0 %v1707_v59, %s4851_s23  ;;  %v1746_v41 = vrot.slane %v9622_v2, 2  ;;  %v9624_v59 = vld [vmem:[#allocation192_spill] sm:$0xff] }
 0x231   :  { %v7175_v52 = vpop.permute.xlu1 %1563  ;;  %v1940_v22 = vrot.slane %v9624_v59, 3 }
 0x232   :  { %v7186_v3 = vpop.permute.xlu0 %1561  ;;  %v1748_v2 = vor.u32 %v1747_v23, %v1746_v41  ;;  %v1754_v41 = vrot.slane %v9629_v58, 2 }
 0x233   :  { %2019 = vrot.lane.b32.xlu1 %v1939_v39, %s4850_s18  ;;  %v1740_v39 = vrot.slane %v1738_v49, 3  ;;  %v1941_v4 = vsel %vm1922_vm6, %v1938_v12, %v1940_v22  ;;  %v1942_v49 = vrot.slane %v9626_v5, 3  ;;  %v9630_v12 = vld [vmem:[#allocation54_spill] sm:$0xff] }
 0x234   :  { %1866 = vrot.lane.b32.xlu0 %v1715_v46, %s4851_s23  ;;  %v1749_v46 = vsel %vm1635_vm7, %v1744_v51, %v1748_v2  ;;  %v1755_v23 = vrot.slane %v9630_v12, 3 }
 0x235   :  { %v7190_v15 = vpop.permute.xlu1 %1567  ;;  %v1741_v59 = vor.u32 %v1740_v39, %v1737_v54  ;;  %v1943_v27 = vsel %vm1922_vm6, %v1940_v22, %v1942_v49  ;;  %v9639_v22 = vld [vmem:[#allocation196_spill] sm:$0xff] }
 0x236   :  { %v7195_v34 = vpop.permute.xlu0 %1565  ;;  %v1756_v58 = vor.u32 %v1755_v23, %v1754_v41  ;;  %v1944_v41 = vrot.slane %v9639_v22, 3  ;;  %v4358_v23 = vcombine.low %v128_v25, %v6867_v0 }
 0x237   :  { %1870 = vrot.lane.b32.xlu1 %v1733_v31, %s4851_s23  ;;  %v9627_v31 = vld [vmem:[#allocation59_spill] sm:$0xff] }
 0x238   :  { %1868 = vrot.lane.b32.xlu0 %v1724_v28, %s4851_s23  ;;  %v1750_v16 = vrot.slane %v9627_v31, 2  ;;  %v9632_v28 = vld [vmem:[#allocation57_spill] sm:$0xff]  ;;  %v1964_v22 = vrot.slane %v4358_v23, 3 }
 0x239   :  { %v7198_v18 = vpop.permute.xlu1 %1571  ;;  %v1759_v54 = vrot.slane %v9632_v28, 3 }
 0x23a   :  { %9625 = vst [vmem:[#allocation184_spill] sm:$0xff] %v7198_v18  ;;  %v7206_v21 = vpop.permute.xlu0 %1569  ;;  %v1752_v5 = vor.u32 %v1751_v42, %v1750_v16 }
 0x23b   :  { %2021 = vrot.lane.b32.xlu1 %v1941_v4, %s4850_s18  ;;  %v1745_v4 = vsel %vm1635_vm7, %v1741_v59, %v1744_v51  ;;  %v1760_v26 = vor.u32 %v1759_v54, %v1758_v30  ;;  %v9636_v51 = vld [vmem:[#allocation62_spill] sm:$0xff] }
 0x23c   :  { %1872 = vrot.lane.b32.xlu0 %v1732_v35, %s4851_s23  ;;  %v1753_v35 = vsel %vm1635_vm7, %v1748_v2, %v1752_v5  ;;  %v1762_v16 = vrot.slane %v9636_v51, 2  ;;  %v9637_v59 = vld [vmem:[#allocation58_spill] sm:$0xff]  ;;  %v1757_v2 = vsel %vm1635_vm7, %v1752_v5, %v1756_v58  ;;  %v9642_v51 = vld [vmem:[#allocation60_spill] sm:$0xff] }
 0x23d   :  { %v7212_v39 = vpop.permute.xlu1 %1575  ;;  %v1761_v30 = vsel %vm1635_vm7, %v1756_v58, %v1760_v26 }
 0x23e   :  { %9633 = vst [vmem:[#allocation39_spill] sm:$0xff] %v7212_v39  ;;  %v7217_v31 = vpop.permute.xlu0 %1573  ;;  %v9644_v39 = vld [vmem:[#allocation211_spill] sm:$0xff] }
 0x23f   :  { %1876 = vrot.lane.b32.xlu1 %v1749_v46, %s4851_s23  ;;  %9634 = vst [vmem:[#allocation33_spill] sm:$0xff] %v7217_v31  ;;  %v1763_v46 = vrot.slane %v9637_v59, 3  ;;  %v1767_v59 = vrot.slane %v9642_v51, 3  ;;  %v1965_v0 = vrot.slane %v9644_v39, 3  ;;  %v9647_v39 = vld [vmem:[#allocation212_spill] sm:$0xff] }
 0x240   :  { %1874 = vrot.lane.b32.xlu0 %v1745_v4, %s4851_s23  ;;  %v9641_v4 = vld [vmem:[#allocation67_spill] sm:$0xff]  ;;  %v1967_v23 = vrot.slane %v9647_v39, 3 }
 0x241   :  { %v7220_v12 = vpop.permute.xlu1 %1579  ;;  %v1764_v54 = vor.u32 %v1763_v46, %v1762_v16  ;;  %v1966_v16 = vsel %vm1922_vm6, %v1964_v22, %v1965_v0  ;;  %v9646_v46 = vld [vmem:[#allocation199_spill] sm:$0xff] }
 0x242   :  { %9635 = vst [vmem:[#allocation187_spill] sm:$0xff] %v7220_v12  ;;  %v7230_v42 = vpop.permute.xlu0 %1577  ;;  %v9650_v22 = vld [vmem:[#allocation215_spill] sm:$0xff] }
 0x243   :  { %2023 = vrot.lane.b32.xlu1 %v1943_v27, %s4850_s18  ;;  %9638 = vst [vmem:[#allocation35_spill] sm:$0xff] %v7230_v42  ;;  %v1766_v27 = vrot.slane %v9641_v4, 2  ;;  %v1945_v42 = vsel %vm1922_vm6, %v1942_v49, %v1944_v41  ;;  %v1765_v5 = vsel %vm1635_vm7, %v1760_v26, %v1764_v54  ;;  %v9649_v26 = vld [vmem:[#allocation61_spill] sm:$0xff] }
 0x244   :  { %1878 = vrot.lane.b32.xlu0 %v1753_v35, %s4851_s23 }
 0x245   :  { %v7235_v28 = vpop.permute.xlu1 %1583  ;;  %v1768_v58 = vor.u32 %v1767_v59, %v1766_v27  ;;  %v1771_v27 = vrot.slane %v9649_v26, 3 }
 0x246   :  { %9640 = vst [vmem:[#allocation32_spill] sm:$0xff] %v7235_v28  ;;  %v7242_v12 = vpop.permute.xlu0 %1581 }
 0x247   :  { %1882 = vrot.lane.b32.xlu1 %v1761_v30, %s4851_s23  ;;  %9643 = vst [vmem:[#allocation45_spill] sm:$0xff] %v7242_v12  ;;  %v1946_v30 = vrot.slane %v9646_v46, 3  ;;  %v1769_v49 = vsel %vm1635_vm7, %v1764_v54, %v1768_v58  ;;  %v1969_v46 = vrot.slane %v9650_v22, 3  ;;  %v1968_v54 = vsel %vm1922_vm6, %v1965_v0, %v1967_v23 }
 0x248   :  { %1880 = vrot.lane.b32.xlu0 %v1757_v2, %s4851_s23 }
 0x249   :  { %v7246_v25 = vpop.permute.xlu1 %1587  ;;  %v1947_v59 = vsel %vm1922_vm6, %v1944_v41, %v1946_v30  ;;  %v1970_v12 = vsel %vm1922_vm6, %v1967_v23, %v1969_v46  ;;  %v9654_v41 = vld [vmem:[#allocation200_spill] sm:$0xff] }
 0x24a   :  { %v7251_v35 = vpop.permute.xlu0 %1585  ;;  %v1948_v31 = vrot.slane %v9654_v41, 3  ;;  %v9659_v23 = vld [vmem:[#allocation216_spill] sm:$0xff] }
 0x24b   :  { %2025 = vrot.lane.b32.xlu1 %v1945_v42, %s4850_s18  ;;  %9645 = vst [vmem:[#allocation36_spill] sm:$0xff] %v7251_v35  ;;  %v9648_v42 = vld [vmem:[#allocation64_spill] sm:$0xff] }
 0x24c   :  { %1884 = vrot.lane.b32.xlu0 %v1765_v5, %s4851_s23  ;;  %v1770_v2 = vrot.slane %v9648_v42, 2  ;;  %v9653_v42 = vld [vmem:[#allocation65_spill] sm:$0xff]  ;;  %v1949_v29 = vsel %vm1922_vm6, %v1946_v30, %v1948_v31  ;;  %v7302_v30 = vld [vmem:[%s9064_s0 + $0x80] sm:$0xff]  }
 0x24d   :  { %v7255_v4 = vpop.permute.xlu1 %1591  ;;  %v1775_v28 = vrot.slane %v9653_v42, 3  ;;  %9664 = vst [vmem:[#allocation42_spill] sm:$0xff] %v7302_v30 }
 0x24e   :  { %v7263_v51 = vpop.permute.xlu0 %1589  ;;  %v1772_v5 = vor.u32 %v1771_v27, %v1770_v2  ;;  %v9656_v2 = vld [vmem:[#allocation69_spill] sm:$0xff] }
 0x24f   :  { %2047 = vrot.lane.b32.xlu1 %v1966_v16, %s4850_s18  ;;  %v9652_v16 = vld [vmem:[#allocation71_spill] sm:$0xff]  ;;  %v1778_v27 = vrot.slane %v9656_v2, 2 }
 0x250   :  { %1886 = vrot.lane.b32.xlu0 %v1769_v49, %s4851_s23  ;;  %v1774_v39 = vrot.slane %v9652_v16, 2  ;;  %v1773_v49 = vsel %vm1635_vm7, %v1768_v58, %v1772_v5 }
 0x251   :  { %v7267_v35 = vpop.permute.xlu1 %1595 }
 0x252   :  { %9651 = vst [vmem:[#allocation40_spill] sm:$0xff] %v7267_v35  ;;  %v7274_v26 = vpop.permute.xlu0 %1593  ;;  %v1776_v0 = vor.u32 %v1775_v28, %v1774_v39  ;;  %v1971_v35 = vrot.slane %v9659_v23, 3  ;;  %v9661_v28 = vld [vmem:[#allocation75_spill] sm:$0xff]  ;;  %v9662_v39 = vld [vmem:[#allocation68_spill] sm:$0xff] }
 0x253   :  { %2027 = vrot.lane.b32.xlu1 %v1947_v59, %s4850_s18  ;;  %v9657_v59 = vld [vmem:[#allocation66_spill] sm:$0xff]  ;;  %v1783_v2 = vrot.slane %v9662_v39, 3 }
 0x254   :  { %2049 = vrot.lane.b32.xlu0 %v1968_v54, %s4850_s18  ;;  %v1779_v16 = vrot.slane %v9657_v59, 3  ;;  %v1782_v54 = vrot.slane %v9661_v28, 2  ;;  %v9667_v28 = vld [vmem:[#allocation70_spill] sm:$0xff] }
 0x255   :  { %v7278_v22 = vpop.permute.xlu1 %1599 }
 0x256   :  { %9655 = vst [vmem:[#allocation37_spill] sm:$0xff] %v7278_v22  ;;  %v7285_v42 = vpop.permute.xlu0 %1597  ;;  %v1780_v58 = vor.u32 %v1779_v16, %v1778_v27  ;;  %v1972_v22 = vsel %vm1922_vm6, %v1969_v46, %v1971_v35  ;;  %v9666_v27 = vld [vmem:[#allocation73_spill] sm:$0xff]  ;;  %v1787_v46 = vrot.slane %v9667_v28, 3 }
 0x257   :  { %2051 = vrot.lane.b32.xlu1 %v1970_v12, %s4850_s18  ;;  %9658 = vst [vmem:[#allocation49_spill] sm:$0xff] %v7285_v42  ;;  %v1777_v12 = vsel %vm1635_vm7, %v1772_v5, %v1776_v0  ;;  %v1784_v5 = vor.u32 %v1783_v2, %v1782_v54  ;;  %v1786_v16 = vrot.slane %v9666_v27, 2  ;;  %v9672_v2 = vld [vmem:[#allocation72_spill] sm:$0xff] }
 0x258   :  { %1888 = vrot.lane.b32.xlu0 %v1773_v49, %s4851_s23  ;;  %v1950_v49 = vrot.slane %v7302_v30, 3  ;;  %v1791_v27 = vrot.slane %v9672_v2, 3 }
 0x259   :  { %v7289_v41 = vpop.permute.xlu1 %1603 }
 0x25a   :  { %9660 = vst [vmem:[#allocation41_spill] sm:$0xff] %v7289_v41  ;;  %v7296_v59 = vpop.permute.xlu0 %1601  ;;  %v1951_v41 = vsel %vm1922_vm6, %v1948_v31, %v1950_v49  ;;  %v4749_v31 = vld [vmem:[%s9064_s0 + $0x88] sm:$0xff]  }
 0x25b   :  { %2029 = vrot.lane.b32.xlu1 %v1949_v29, %s4850_s18  ;;  %9663 = vst [vmem:[#allocation46_spill] sm:$0xff] %v7296_v59  ;;  %v1781_v29 = vsel %vm1635_vm7, %v1776_v0, %v1780_v58  ;;  %v9669_v59 = vld [vmem:[#allocation219_spill] sm:$0xff]  ;;  %v1788_v0 = vor.u32 %v1787_v46, %v1786_v16  ;;  %v9676_v46 = vld [vmem:[#allocation74_spill] sm:$0xff] }
 0x25c   :  { %1890 = vrot.lane.b32.xlu0 %v1777_v12, %s4851_s23  ;;  %v1973_v42 = vrot.slane %v9669_v59, 3  ;;  %v9671_v12 = vld [vmem:[#allocation79_spill] sm:$0xff]  ;;  %v1952_v59 = vrot.slane %v4749_v31, 3  ;;  %v9678_v31 = vld [vmem:[#allocation220_spill] sm:$0xff] }
 0x25d   :  { %v7305_v23 = vpop.permute.xlu1 %1607  ;;  %v1790_v54 = vrot.slane %v9671_v12, 2 }
 0x25e   :  { %9665 = vst [vmem:[#allocation188_spill] sm:$0xff] %v7305_v23  ;;  %v7312_v39 = vpop.permute.xlu0 %1605  ;;  %v1974_v23 = vsel %vm1922_vm6, %v1971_v35, %v1973_v42  ;;  %v1795_v35 = vrot.slane %v9676_v46, 3  ;;  %v1953_v2 = vsel %vm1922_vm6, %v1950_v49, %v1952_v59  ;;  %v9684_v46 = vld [vmem:[#allocation77_spill] sm:$0xff] }
 0x25f   :  { %2053 = vrot.lane.b32.xlu1 %v1972_v22, %s4850_s18  ;;  %9668 = vst [vmem:[#allocation38_spill] sm:$0xff] %v7312_v39  ;;  %v1785_v22 = vsel %vm1635_vm7, %v1780_v58, %v1784_v5  ;;  %v1792_v58 = vor.u32 %v1791_v27, %v1790_v54  ;;  %v9680_v39 = vld [vmem:[#allocation10_spill] sm:$0xff] }
 0x260   :  { %1892 = vrot.lane.b32.xlu0 %v1781_v29, %s4851_s23  ;;  %v9675_v29 = vld [vmem:[#allocation76_spill] sm:$0xff]  ;;  %v9683_v27 = vld [vmem:[#allocation82_spill] sm:$0xff] }
 0x261   :  { %v7316_v30 = vpop.permute.xlu1 %1611  ;;  %v1794_v16 = vrot.slane %v9675_v29, 2  ;;  %v1793_v49 = vsel %vm1635_vm7, %v1788_v0, %v1792_v58  ;;  %v1798_v29 = vrot.slane %v9683_v27, 2  ;;  %v9688_v27 = vld [vmem:[#allocation80_spill] sm:$0xff] }
 0x262   :  { %9670 = vst [vmem:[#allocation191_spill] sm:$0xff] %v7316_v30  ;;  %v7323_v28 = vpop.permute.xlu0 %1609 }
 0x263   :  { %2031 = vrot.lane.b32.xlu1 %v1951_v41, %s4850_s18  ;;  %9673 = vst [vmem:[#allocation55_spill] sm:$0xff] %v7323_v28  ;;  %v1789_v41 = vsel %vm1635_vm7, %v1784_v5, %v1788_v0  ;;  %v1975_v28 = vrot.slane %v9678_v31, 3  ;;  %v1796_v54 = vor.u32 %v1795_v35, %v1794_v16  ;;  %v1799_v31 = vrot.slane %v9684_v46, 3 }
 0x264   :  { %1894 = vrot.lane.b32.xlu0 %v1785_v22, %s4851_s23  ;;  %v1802_v46 = vrot.slane %v9688_v27, 2 }
 0x265   :  { %v7329_v30 = vpop.permute.xlu1 %1615 }
 0x266   :  { %9674 = vst [vmem:[#allocation50_spill] sm:$0xff] %v7329_v30  ;;  %v7336_v12 = vpop.permute.xlu0 %1613  ;;  %v9679_v30 = vld [vmem:[#allocation85_spill] sm:$0xff] }
 0x267   :  { %2055 = vrot.lane.b32.xlu1 %v1974_v23, %s4850_s18  ;;  %9677 = vst [vmem:[#allocation52_spill] sm:$0xff] %v7336_v12  ;;  %v2091_v20 = vsel %vm2089_vm8, %v9680_v39, %v9679_v30  ;;  %v9682_v23 = vld [vmem:[#allocation126_spill] sm:$0xff]  ;;  %v9685_v30 = vld [vmem:[#allocation157_spill] sm:$0xff]  ;;  %v9695_v12 = vld [vmem:[#allocation43_spill] sm:$0xff] }
 0x268   :  { %v2178_v5 = vsel %vm2176_vm9, %v2091_v20, %v9682_v23  ;;  %1896 = vrot.lane.b32.xlu0 %v1789_v41, %s4851_s23  ;;  %v1976_v20 = vsel %vm1922_vm6, %v1973_v42, %v1975_v28  ;;  %v4750_v41 = vld [vmem:[%s9064_s0 + $0x90] sm:$0xff]   ;;  %v1797_v42 = vsel %vm1635_vm7, %v1792_v58, %v1796_v54 }
 0x269   :  { %v7343_v22 = vpop.permute.xlu1 %1619  ;;  %v2263_v39 = vsel %vm2261_vm10, %v2178_v5, %v9685_v30  ;;  %v1954_v23 = vrot.slane %v4750_v41, 3  ;;  %v1800_v5 = vor.u32 %v1799_v31, %v1798_v29  ;;  %v9689_v30 = vld [vmem:[#allocation78_spill] sm:$0xff]  ;;  %v9691_v29 = vld [vmem:[#allocation87_spill] sm:$0xff] }
 0x26a   :  { %9681 = vst [vmem:[#allocation51_spill] sm:$0xff] %v7343_v22  ;;  %v7354_v22 = vpop.permute.xlu0 %1617  ;;  %v1803_v41 = vrot.slane %v9689_v30, 3  ;;  %v9692_v31 = vld [vmem:[#allocation11_spill] sm:$0xff] }
 0x26b   :  { %2033 = vrot.lane.b32.xlu1 %v1953_v2, %s4850_s18  ;;  %9686 = vst [vmem:[#allocation192_spill] sm:$0xff] %v7354_v22  ;;  %v9687_v2 = vld [vmem:[#allocation208_spill] sm:$0xff]  ;;  %v2093_v27 = vsel %vm2089_vm8, %v9692_v31, %v9691_v29  ;;  %v9698_v31 = vmov 0.0  }
 0x26c   :  { %v2348_v0 = vsel %vm2346_vm11, %v2263_v39, %v9687_v2  ;;  %1898 = vrot.lane.b32.xlu0 %v1793_v49, %s4851_s23  ;;  %v4751_v49 = vld [vmem:[%s9064_s0 + $0x100] sm:$0xff]   ;;  %v2180_v18 = vsel %vm2176_vm9, %v2093_v27, %v9695_v12  ;;  %v4752_v12 = vld [vmem:[%s9064_s0 + $0x98] sm:$0xff]  }
 0x26d   :  { %v2006_v16 = vpop.permute.xlu1 %2005  ;;  %v2433_v35 = vsel %vm2431_vm12, %v2348_v0, %v6878_v47  ;;  %v1955_v47 = vsel %vm1922_vm6, %v1952_v59, %v1954_v23  ;;  %v1977_v0 = vrot.slane %v4751_v49, 3  ;;  %v9694_v59 = vld [vmem:[#allocation81_spill] sm:$0xff]  ;;  %v9696_v49 = vld [vmem:[#allocation156_spill] sm:$0xff]  ;;  %v1956_v27 = vrot.slane %v4752_v12, 3 }
 0x26e   :  { %v2518_v39 = vsel %vm2516_vm13, %v2433_v35, %v7138_v60  ;;  %v1833_v2 = vpop.permute.xlu0 %1832  ;;  %v9693_v35 = vld [vmem:[#allocation83_spill] sm:$0xff]  ;;  %v1807_v22 = vrot.slane %v9694_v59, 3  ;;  %v1815_v12 = vshrl.u32 %v6985_v40, 16 }
 0x26f   :  { %2057 = vrot.lane.b32.xlu1 %v1976_v20, %s4850_s18  ;;  %v2603_v20 = vsel %vm2601_vm14, %v2518_v39, %v1833_v2  ;;  %v1806_v30 = vrot.slane %v9693_v35, 2  ;;  %v126_v39 = vld [vmem:[%s9064_s0 + $0x16c] sm:$0x7]  ;;  %v1801_v2 = vsel %vm1635_vm7, %v1796_v54, %v1800_v5  ;;  %v1978_v29 = vsel %vm1922_vm6, %v1975_v28, %v1977_v0 }
 0x270   :  { %1900 = vrot.lane.b32.xlu0 %v1797_v42, %s4851_s23  ;;  %v2688_v60 = vsel %vm2686_vm15, %v2603_v20, %v2006_v16  ;;  %v1804_v42 = vor.u32 %v1803_v41, %v1802_v46  ;;  %v2265_v16 = vsel %vm2261_vm10, %v2180_v18, %v9696_v49  ;;  %v7406_v46 = vcombine.low %v7011_v36, %v126_v39  ;;  %v9700_v41 = vld [vmem:[#allocation142_spill] sm:$0xff] }
 0x271   :  { %v7376_v58 = vpop.permute.xlu1 %1623  ;;  %4455 = vmatmul.mubr.msk.bf16.vlgmr.msra.gmra.mxu0 %vm2956_vm0, %v2688_v60  ;;  %v9699_v60 = vld [vmem:[#allocation207_spill] sm:$0xff]  ;;  %v1808_v18 = vor.u32 %v1807_v22, %v1806_v30  ;;  %v9701_v28 = vshrl.u32 %v9700_v41, 16  ;;  %v9702_v59 = vshll.u32 %v9700_v41, 16  ;;  %v1818_v36 = vshll.u32 %v6985_v40, 16 }
 0x272   :  { %9690 = vst [vmem:[#allocation195_spill] sm:$0xff] %v7376_v58  ;;  %v7395_v20 = vpop.permute.xlu0 %1621  ;;  %4458 = vmatprep.mubr.msk.bf16.mxu0 %vm4849_vm5, %v9698_v31  ;;  %v1957_v39 = vsel %vm1922_vm6, %v1954_v23, %v1956_v27 }
 0x273   :  { %2035 = vrot.lane.b32.xlu1 %v1955_v47, %s4850_s18  ;;  %9697 = vst [vmem:[#allocation59_spill] sm:$0xff] %v7395_v20  ;;  %v2350_v47 = vsel %vm2346_vm11, %v2265_v16, %v9699_v60  ;;  %v1810_v35 = vrot.slane %v9701_v28, 2  ;;  %v1811_v49 = vrot.slane %v9702_v59, 3  ;;  %v1805_v16 = vsel %vm1635_vm7, %v1800_v5, %v1804_v42  ;;  %v9705_v59 = vld [vmem:[#allocation128_spill] sm:$0xff] }
 0x274   :  { %1902 = vrot.lane.b32.xlu0 %v1801_v2, %s4851_s23  ;;  %v2435_v58 = vsel %vm2431_vm12, %v2350_v47, %v6872_v32  ;;  %v4753_v2 = vld [vmem:[%s9064_s0 + $0x108] sm:$0xff]   ;;  %v9703_v32 = vld [vmem:[#allocation84_spill] sm:$0xff]  ;;  %v1809_v23 = vsel %vm1635_vm7, %v1804_v42, %v1808_v18  ;;  %v1958_v42 = vrot.slane %v9616_v53, 3 }
 0x275   :  { %v2008_v54 = vpop.permute.xlu1 %2007  ;;  %v2520_v22 = vsel %vm2516_vm13, %v2435_v58, %v7124_v50  ;;  %v1979_v60 = vrot.slane %v4753_v2, 3  ;;  %v9704_v47 = vld [vmem:[#allocation8_spill] sm:$0xff]  ;;  %v1812_v58 = vor.u32 %v1811_v49, %v1810_v35  ;;  %v1817_v2 = vrot.slane %v1815_v12, 2  ;;  %v9707_v35 = vld [vmem:[#allocation210_spill] sm:$0xff] }
 0x276   :  { %v1835_v30 = vpop.permute.xlu0 %1834 }
 0x277   :  { %2059 = vrot.lane.b32.xlu1 %v1978_v29, %s4850_s18  ;;  %v2095_v29 = vsel %vm2089_vm8, %v9704_v47, %v9703_v32  ;;  %v2605_v5 = vsel %vm2601_vm14, %v2520_v22, %v1835_v30  ;;  %v1820_v32 = vrot.slane %v1818_v36, 3  ;;  %v1824_v22 = vshrl.u32 %v7406_v46, 16  ;;  %v9706_v47 = vld [vmem:[#allocation159_spill] sm:$0xff] }
 0x278   :  { %v2182_v20 = vsel %vm2176_vm9, %v2095_v29, %v9705_v59  ;;  %1904 = vrot.lane.b32.xlu0 %v1805_v16, %s4851_s23  ;;  %v2690_v50 = vsel %vm2686_vm15, %v2605_v5, %v2008_v54  ;;  %v1827_v30 = vshll.u32 %v7406_v46, 16  ;;  %v1980_v54 = vsel %vm1922_vm6, %v1977_v0, %v1979_v60 }
 0x279   :  { %v7429_v28 = vpop.permute.xlu1 %1627  ;;  %4459 = vmatmul.mubr.msk.bf16.gmra.mxu0 %vm2956_vm0, %v2690_v50  ;;  %v2267_v29 = vsel %vm2261_vm10, %v2182_v20, %v9706_v47  ;;  %v1813_v20 = vsel %vm1635_vm7, %v1808_v18, %v1812_v58  ;;  %v1821_v36 = vor.u32 %v1820_v32, %v1817_v2  ;;  %v1826_v0 = vrot.slane %v1824_v22, 2  ;;  %v4754_v47 = vld [vmem:[%s9064_s0 + $0x110] sm:$0xff]   ;;  %v9709_v22 = vld [vmem:[#allocation127_spill] sm:$0xff] }
 0x27a   :  { %v7442_v59 = vpop.permute.xlu0 %1625  ;;  %4462 = vmatprep.mubr.msk.bf16.mxu0 %vm4849_vm5, %v9698_v31  ;;  %v2352_v49 = vsel %vm2346_vm11, %v2267_v29, %v9707_v35  ;;  %v1959_v50 = vsel %vm1922_vm6, %v1956_v27, %v1958_v42  ;;  %v9708_v29 = vld [vmem:[#allocation86_spill] sm:$0xff] }
 0x27b   :  { %2037 = vrot.lane.b32.xlu1 %v1957_v39, %s4850_s18  ;;  %v2437_v12 = vsel %vm2431_vm12, %v2352_v49, %v6889_v45  ;;  %v1829_v39 = vrot.slane %v1827_v30, 3  ;;  %v1981_v45 = vrot.slane %v4754_v47, 3  ;;  %v9710_v30 = vld [vmem:[#allocation158_spill] sm:$0xff]  ;;  %v1822_v35 = vsel %vm1635_vm7, %v1812_v58, %v1821_v36 }
 0x27c   :  { %1906 = vrot.lane.b32.xlu0 %v1809_v23, %s4851_s23  ;;  %v2522_v5 = vsel %vm2516_vm13, %v2437_v12, %v7148_v57  ;;  %v4755_v23 = vld [vmem:[%s9064_s0 + $0x18] sm:$0xff]  }
 0x27d   :  { %v2010_v16 = vpop.permute.xlu1 %2009  ;;  %v2097_v18 = vsel %vm2089_vm8, %v4755_v23, %v9708_v29  ;;  %v1830_v49 = vor.u32 %v1829_v39, %v1826_v0  ;;  %v9711_v12 = vld [vmem:[#allocation209_spill] sm:$0xff]  ;;  %v1982_v47 = vsel %vm1922_vm6, %v1979_v60, %v1981_v45 }
 0x27e   :  { %v1837_v53 = vpop.permute.xlu0 %1836  ;;  %v2184_v57 = vsel %vm2176_vm9, %v2097_v18, %v9709_v22  ;;  %v9712_v18 = vld [vmem:[#allocation89_spill] sm:$0xff] }
 0x27f   :  { %2061 = vrot.lane.b32.xlu1 %v1980_v54, %s4850_s18  ;;  %v2607_v2 = vsel %vm2601_vm14, %v2522_v5, %v1837_v53  ;;  %v2269_v54 = vsel %vm2261_vm10, %v2184_v57, %v9710_v30  ;;  %v1831_v60 = vsel %vm1635_vm7, %v1821_v36, %v1830_v49  ;;  %v9713_v36 = vld [vmem:[#allocation130_spill] sm:$0xff]  ;;  %v1962_v30 = vrot.slane %v7136_v13, 3 }
 0x280   :  { %1908 = vrot.lane.b32.xlu0 %v1813_v20, %s4851_s23  ;;  %v2692_v27 = vsel %vm2686_vm15, %v2607_v2, %v2010_v16  ;;  %v2354_v5 = vsel %vm2346_vm11, %v2269_v54, %v9711_v12  ;;  %v1960_v16 = vrot.slane %v6847_v37, 3  ;;  %v9715_v54 = vld [vmem:[#allocation214_spill] sm:$0xff] }
 0x281   :  { %v1841_v32 = vpop.permute.xlu1 %1840  ;;  %4463 = vmatmul.mubr.msk.bf16.gmra.mxu0 %vm2956_vm0, %v2692_v27  ;;  %v2439_v20 = vsel %vm2431_vm12, %v2354_v5, %v6882_v8  ;;  %v4756_v8 = vld [vmem:[%s9064_s0 + $0x118] sm:$0xff]  }
 0x282   :  { %v1839_v53 = vpop.permute.xlu0 %1838  ;;  %4466 = vmatprep.mubr.msk.bf16.mxu0 %vm4849_vm5, %v9698_v31  ;;  %v1961_v37 = vsel %vm1922_vm6, %v1958_v42, %v1960_v16  ;;  %v1983_v29 = vrot.slane %v4756_v8, 3  ;;  %v9714_v42 = vld [vmem:[#allocation161_spill] sm:$0xff] }
 0x283   :  { %2039 = vrot.lane.b32.xlu1 %v1959_v50, %s4850_s18  ;;  %v2524_v50 = vsel %vm2516_vm13, %v2439_v20, %v7142_v1  ;;  %v4757_v1 = vld [vmem:[%s9064_s0 + $0x20] sm:$0xff]  }
 0x284   :  { %1910 = vrot.lane.b32.xlu0 %v1822_v35, %s4851_s23  ;;  %v2609_v58 = vsel %vm2601_vm14, %v2524_v50, %v1839_v53  ;;  %v2099_v2 = vsel %vm2089_vm8, %v4757_v1, %v9712_v18  ;;  %v1984_v5 = vsel %vm1922_vm6, %v1981_v45, %v1983_v29  ;;  %v4758_v53 = vld [vmem:[%s9064_s0 + $0x120] sm:$0xff]   ;;  %v1963_v45 = vsel %vm1922_vm6, %v1960_v16, %v1962_v30  ;;  %v9716_v16 = vld [vmem:[#allocation88_spill] sm:$0xff] }
 0x285   :  { %v2012_v23 = vpop.permute.xlu1 %2011  ;;  %v2186_v57 = vsel %vm2176_vm9, %v2099_v2, %v9713_v36  ;;  %v9718_v2 = vld [vmem:[#allocation160_spill] sm:$0xff] }
 0x286   :  { %v2694_v0 = vsel %vm2686_vm15, %v2609_v58, %v2012_v23  ;;  %v1843_v39 = vpop.permute.xlu0 %1842  ;;  %v2271_v27 = vsel %vm2261_vm10, %v2186_v57, %v9714_v42  ;;  %v9719_v57 = vld [vmem:[#allocation213_spill] sm:$0xff] }
 0x287   :  { %2063 = vrot.lane.b32.xlu1 %v1982_v47, %s4850_s18  ;;  %v2356_v35 = vsel %vm2346_vm11, %v2271_v27, %v9715_v54  ;;  %v1985_v47 = vrot.slane %v4758_v53, 3  ;;  %v4763_v53 = vld [vmem:[%s9064_s0 + $0x140] sm:$0xff]  }
 0x288   :  { %1912 = vrot.lane.b32.xlu0 %v1831_v60, %s4851_s23  ;;  %v2441_v20 = vsel %vm2431_vm12, %v2356_v35, %v6897_v17  ;;  %v4759_v17 = vld [vmem:[%s9064_s0 + $0x128] sm:$0xff]   ;;  %v4762_v35 = vld [vmem:[%s9064_s0 + $0x138] sm:$0xff]  }
 0x289   :  { %v7500_v22 = vpop.permute.xlu1 %1846  ;;  %4467 = vmatmul.mubr.msk.bf16.gmra.mxu0 %vm2956_vm0, %v2694_v0  ;;  %v2526_v13 = vsel %vm2516_vm13, %v2441_v20, %v7165_v11  ;;  %v1986_v0 = vsel %vm1922_vm6, %v1983_v29, %v1985_v47  ;;  %v4760_v11 = vld [vmem:[%s9064_s0 + $0x130] sm:$0xff]   ;;  %v9717_v29 = vld [vmem:[#allocation129_spill] sm:$0xff]  ;;  %v1993_v20 = vrot.slane %v4763_v53, 3  ;;  %v1999_v53 = vrot.slane %v9700_v41, 3 }
 0x28a   :  { %v7512_v12 = vpop.permute.xlu0 %1844  ;;  %4470 = vmatprep.mubr.msk.bf16.mxu0 %vm4849_vm5, %v9698_v31  ;;  %v2611_v50 = vsel %vm2601_vm14, %v2526_v13, %v1841_v32  ;;  %v1989_v32 = vrot.slane %v4760_v11, 3 }
 0x28b   :  { %2041 = vrot.lane.b32.xlu1 %v1961_v37, %s4850_s18  ;;  %v1987_v37 = vrot.slane %v4759_v17, 3 }
 0x28c   :  { %1914 = vrot.lane.b32.xlu0 %v1830_v49, %s4851_s23  ;;  %v4761_v49 = vld [vmem:[%s9064_s0 + $0x28] sm:$0xff]  }
 0x28d   :  { %v2014_v23 = vpop.permute.xlu1 %2013  ;;  %v2101_v8 = vsel %vm2089_vm8, %v4761_v49, %v9716_v16  ;;  %v1990_v54 = vsel %vm1922_vm6, %v1987_v37, %v1989_v32 }
 0x28e   :  { %v2696_v58 = vsel %vm2686_vm15, %v2611_v50, %v2014_v23  ;;  %v7529_v60 = vpop.permute.xlu0 %1848  ;;  %v2188_v18 = vsel %vm2176_vm9, %v2101_v8, %v9717_v29  ;;  %v9721_v8 = vld [vmem:[#allocation132_spill] sm:$0xff] }
 0x28f   :  { %2065 = vrot.lane.b32.xlu1 %v1984_v5, %s4850_s18  ;;  %v2273_v36 = vsel %vm2261_vm10, %v2188_v18, %v9718_v2  ;;  %v1991_v5 = vrot.slane %v4762_v35, 3  ;;  %v9722_v18 = vld [vmem:[#allocation163_spill] sm:$0xff] }
 0x290   :  { %2043 = vrot.lane.b32.xlu0 %v1963_v45, %s4850_s18  ;;  %v2358_v42 = vsel %vm2346_vm11, %v2273_v36, %v9719_v57  ;;  %v9723_v57 = vld [vmem:[#allocation218_spill] sm:$0xff] }
 0x291   :  { %v7543_v1 = vpop.permute.xlu1 %1852  ;;  %4471 = vmatmul.mubr.msk.bf16.gmra.mxu0 %vm2956_vm0, %v2696_v58  ;;  %v2443_v23 = vsel %vm2431_vm12, %v2358_v42, %v6893_v14  ;;  %v1988_v58 = vsel %vm1922_vm6, %v1985_v47, %v1987_v37  ;;  %v1994_v11 = vsel %vm1922_vm6, %v1991_v5, %v1993_v20  ;;  %v4764_v14 = vld [vmem:[%s9064_s0 + $0x148] sm:$0xff]   ;;  %v1992_v36 = vsel %vm1922_vm6, %v1989_v32, %v1991_v5 }
 0x292   :  { %v7554_v27 = vpop.permute.xlu0 %1850  ;;  %4474 = vmatprep.mubr.msk.bf16.mxu0 %vm4849_vm5, %v9698_v31  ;;  %v2528_v50 = vsel %vm2516_vm13, %v2443_v23, %v7154_v44  ;;  %v1995_v49 = vrot.slane %v4764_v14, 3  ;;  %v4765_v44 = vld [vmem:[%s9064_s0 + $0x150] sm:$0xff]   ;;  %v9720_v47 = vld [vmem:[#allocation91_spill] sm:$0xff]  ;;  %v2001_v23 = vrot.slane %v6985_v40, 3 }
 0x293   :  { %2067 = vrot.lane.b32.xlu1 %v1986_v0, %s4850_s18  ;;  %v2613_v45 = vsel %vm2601_vm14, %v2528_v50, %v1843_v39  ;;  %v1997_v39 = vrot.slane %v4765_v44, 3 }
 0x294   :  { %2045 = vrot.lane.b32.xlu0 %v1962_v30, %s4850_s18  ;;  %v4766_v30 = vld [vmem:[%s9064_s0 + $0x30] sm:$0xff]   ;;  %v2002_v40 = vsel %vm1922_vm6, %v1999_v53, %v2001_v23 }
 0x295   :  { %v2016_v13 = vpop.permute.xlu1 %2015  ;;  %v2103_v37 = vsel %vm2089_vm8, %v4766_v30, %v9720_v47  ;;  %v1998_v35 = vsel %vm1922_vm6, %v1995_v49, %v1997_v39  ;;  %v2000_v44 = vsel %vm1922_vm6, %v1997_v39, %v1999_v53  ;;  %v2003_v30 = vrot.slane %v7406_v46, 3  ;;  %v9727_v47 = vld [vmem:[#allocation217_spill] sm:$0xff]  ;;  %v9729_v53 = vld [vmem:[#allocation134_spill] sm:$0xff] }
 0x296   :  { %v2698_v0 = vsel %vm2686_vm15, %v2613_v45, %v2016_v13  ;;  %v7574_v17 = vpop.permute.xlu0 %1854  ;;  %v2190_v29 = vsel %vm2176_vm9, %v2103_v37, %v9721_v8  ;;  %v1996_v45 = vsel %vm1922_vm6, %v1993_v20, %v1995_v49  ;;  %v9726_v20 = vld [vmem:[#allocation162_spill] sm:$0xff] }
 0x297   :  { %2071 = vrot.lane.b32.xlu1 %v1990_v54, %s4850_s18  ;;  %v2275_v2 = vsel %vm2261_vm10, %v2190_v29, %v9722_v18  ;;  %v2004_v39 = vsel %vm1922_vm6, %v2001_v23, %v2003_v30 }
 0x298   :  { %2069 = vrot.lane.b32.xlu0 %v1988_v58, %s4850_s18  ;;  %v2360_v42 = vsel %vm2346_vm11, %v2275_v2, %v9723_v57 }
 0x299   :  { %v7588_v16 = vpop.permute.xlu1 %1858  ;;  %4475 = vmatmul.mubr.msk.bf16.gmra.mxu0 %vm2956_vm0, %v2698_v0  ;;  %v2445_v13 = vsel %vm2431_vm12, %v2360_v42, %v6904_v6  ;;  %v4767_v6 = vld [vmem:[%s9064_s0 + $0x38] sm:$0xff]  }
 0x29a   :  { %v7600_v54 = vpop.permute.xlu0 %1856  ;;  %4478 = vmatprep.mubr.msk.bf16.mxu0 %vm4849_vm5, %v9698_v31  ;;  %v2530_v32 = vsel %vm2516_vm13, %v2445_v13, %v7172_v63  ;;  %v9724_v63 = vld [vmem:[#allocation90_spill] sm:$0xff]  ;;  %v9728_v42 = vld [vmem:[#allocation93_spill] sm:$0xff] }
 0x29b   :  { %2075 = vrot.lane.b32.xlu1 %v1994_v11, %s4850_s18  ;;  %v2615_v5 = vsel %vm2601_vm14, %v2530_v32, %v7512_v12  ;;  %v2105_v0 = vsel %vm2089_vm8, %v4767_v6, %v9724_v63  ;;  %v9725_v12 = vld [vmem:[#allocation131_spill] sm:$0xff]  ;;  %v9730_v13 = vld [vmem:[#allocation165_spill] sm:$0xff]  ;;  %v3445_v32 = vld [vmem:[%s9066_s2] sm:$0xff] }
 0x29c   :  { %2073 = vrot.lane.b32.xlu0 %v1992_v36, %s4850_s18  ;;  %v2192_v14 = vsel %vm2176_vm9, %v2105_v0, %v9725_v12 }
 0x29d   :  { %v2018_v50 = vpop.permute.xlu1 %2017  ;;  %v2277_v49 = vsel %vm2261_vm10, %v2192_v14, %v9726_v20  ;;  %v3448_v14 = vld [vmem:[%s9066_s2 + $0x18] sm:$0xff] }
 0x29e   :  { %v2700_v41 = vsel %vm2686_vm15, %v2615_v5, %v2018_v50  ;;  %v7617_v58 = vpop.permute.xlu0 %1860  ;;  %v2362_v37 = vsel %vm2346_vm11, %v2277_v49, %v9727_v47  ;;  %v9731_v5 = vld [vmem:[#allocation222_spill] sm:$0xff]  ;;  %v9733_v47 = vld [vmem:[#allocation133_spill] sm:$0xff] }
 0x29f   :  { %2079 = vrot.lane.b32.xlu1 %v1998_v35, %s4850_s18  ;;  %v2447_v29 = vsel %vm2431_vm12, %v2362_v37, %v6899_v10  ;;  %v3446_v10 = vld [vmem:[%s9066_s2 + $0x8] sm:$0xff] }
 0x2a0   :  { %2077 = vrot.lane.b32.xlu0 %v1996_v45, %s4850_s18  ;;  %v2532_v2 = vsel %vm2516_vm13, %v2447_v29, %v7167_v43  ;;  %v4768_v43 = vld [vmem:[%s9064_s0 + $0x40] sm:$0xff]   ;;  %v9734_v29 = vld [vmem:[#allocation164_spill] sm:$0xff] }
 0x2a1   :  { %v7625_v11 = vpop.permute.xlu1 %1864  ;;  %4479 = vmatmul.mubr.msk.bf16.gmra.mxu0 %vm2956_vm0, %v2700_v41  ;;  %v2617_v46 = vsel %vm2601_vm14, %v2532_v2, %v7500_v22  ;;  %v2107_v35 = vsel %vm2089_vm8, %v4768_v43, %v9728_v42  ;;  %v3450_v2 = vld [vmem:[%s9066_s2 + $0x28] sm:$0xff] }
 0x2a2   :  { %v7638_v8 = vpop.permute.xlu0 %1862  ;;  %4482 = vmatprep.mubr.msk.bf16.mxu0 %vm4849_vm5, %v9698_v31  ;;  %v2194_v23 = vsel %vm2176_vm9, %v2107_v35, %v9729_v53 }
 0x2a3   :  { %2083 = vrot.lane.b32.xlu1 %v2002_v40, %s4850_s18  ;;  %v2279_v50 = vsel %vm2261_vm10, %v2194_v23, %v9730_v13  ;;  %v3447_v40 = vld [vmem:[%s9066_s2 + $0x10] sm:$0xff]  ;;  %v3452_v23 = vld [vmem:[%s9066_s2 + $0x38] sm:$0xff] }
 0x2a4   :  { %2081 = vrot.lane.b32.xlu0 %v2000_v44, %s4850_s18  ;;  %v2364_v45 = vsel %vm2346_vm11, %v2279_v50, %v9731_v5  ;;  %v9732_v44 = vld [vmem:[#allocation92_spill] sm:$0xff] }
 0x2a5   :  { %v2020_v18 = vpop.permute.xlu1 %2019  ;;  %v2449_v6 = vsel %vm2431_vm12, %v2364_v45, %v6912_v7  ;;  %v3449_v7 = vld [vmem:[%s9066_s2 + $0x20] sm:$0xff]  ;;  %v9737_v45 = vld [vmem:[#allocation136_spill] sm:$0xff] }
 0x2a6   :  { %v2702_v36 = vsel %vm2686_vm15, %v2617_v46, %v2020_v18  ;;  %v7652_v57 = vpop.permute.xlu0 %1866  ;;  %v2534_v0 = vsel %vm2516_vm13, %v2449_v6, %v7186_v3  ;;  %v4769_v3 = vld [vmem:[%s9064_s0 + $0x48] sm:$0xff]   ;;  %v9735_v46 = vld [vmem:[#allocation221_spill] sm:$0xff] }
 0x2a7   :  { %2087 = vrot.lane.b32.xlu1 %v2003_v30, %s4850_s18  ;;  %v2619_v12 = vsel %vm2601_vm14, %v2534_v0, %v7529_v60  ;;  %v2109_v60 = vsel %vm2089_vm8, %v4769_v3, %v9732_v44  ;;  %v9738_v6 = vld [vmem:[#allocation167_spill] sm:$0xff] }
 0x2a8   :  { %2085 = vrot.lane.b32.xlu0 %v2004_v39, %s4850_s18  ;;  %v2196_v37 = vsel %vm2176_vm9, %v2109_v60, %v9733_v47  ;;  %v3454_v0 = vld [vmem:[%s9066_s2 + $0x48] sm:$0xff]  ;;  %s4854_s18 = smov [#allocation4]  }
 0x2a9   :  { %v7662_v22 = vpop.permute.xlu1 %1870  ;;  %4483 = vmatmul.mubr.msk.bf16.gmra.mxu0 %vm2956_vm0, %v2702_v36  ;;  %v2281_v18 = vsel %vm2261_vm10, %v2196_v37, %v9734_v29  ;;  %v3456_v37 = vld [vmem:[%s9066_s2 + $0x58] sm:$0xff]  ;;  %v9740_v29 = vld [vmem:[#allocation104_spill] sm:$0xff]  ;;  %s4281_s27 = sshll.u32 %s4854_s18, 4  ;;  %s4282_s27 = int_to_ptr.vmem [resolvable:$true] %s4281_s27 }
 0x2aa   :  { %v7675_v41 = vpop.permute.xlu0 %1868  ;;  %4486 = vmatprep.mubr.msk.bf16.mxu0 %vm4849_vm5, %v9698_v31  ;;  %v2366_v39 = vsel %vm2346_vm11, %v2281_v18, %v9735_v46  ;;  %v9741_v18 = vld [vmem:[#allocation44_spill] sm:$0xff] }
 0x2ab   :  { %3534 = vperm.xlu1 %4638, %v3446_v10   ;;  %v3451_v10 = vld [vmem:[%s9066_s2 + $0x30] sm:$0xff]  ;;  %v2451_v43 = vsel %vm2431_vm12, %v2366_v39, %v6906_v9  ;;  %v3453_v9 = vld [vmem:[%s9066_s2 + $0x40] sm:$0xff] }
 0x2ac   :  { %3529 = vperm.xlu0 %4637, %v3445_v32   ;;  %v2536_v35 = vsel %vm2516_vm13, %v2451_v43, %v7175_v52  ;;  %v4770_v52 = vld [vmem:[%s9064_s0 + $0x50] sm:$0xff]   ;;  %v9736_v32 = vld [vmem:[#allocation95_spill] sm:$0xff]  ;;  %v9742_v39 = vld [vmem:[#allocation94_spill] sm:$0xff] }
 0x2ad   :  { %v2022_v63 = vpop.permute.xlu1 %2021  ;;  %v2621_v53 = vsel %vm2601_vm14, %v2536_v35, %v7554_v27  ;;  %v2111_v27 = vsel %vm2089_vm8, %v4770_v52, %v9736_v32  ;;  %v9743_v43 = vld [vmem:[#allocation146_spill] sm:$0xff]  ;;  %v9747_v32 = vld [vmem:[#allocation176_spill] sm:$0xff] }
 0x2ae   :  { %v2704_v20 = vsel %vm2686_vm15, %v2619_v12, %v2022_v63  ;;  %v7692_v49 = vpop.permute.xlu0 %1872  ;;  %v9739_v12 = vld [vmem:[#allocation224_spill] sm:$0xff] }
 0x2af   :  { %3539 = vperm.xlu1 %4638, %v3447_v40   ;;  %v2198_v40 = vsel %vm2176_vm9, %v2111_v27, %v9737_v45  ;;  %v9748_v45 = vld [vmem:[#allocation147_spill] sm:$0xff] }
 0x2b0   :  { %3544 = vperm.xlu0 %4637, %v3448_v14   ;;  %v2283_v63 = vsel %vm2261_vm10, %v2198_v40, %v9738_v6  ;;  %v9749_v6 = vld [vmem:[#allocation166_spill] sm:$0xff] }
 0x2b1   :  { %v7702_v30 = vpop.permute.xlu1 %1876  ;;  %4487 = vmatmul.mubr.msk.bf16.gmra.mxu0 %vm2956_vm0, %v2704_v20  ;;  %v2368_v14 = vsel %vm2346_vm11, %v2283_v63, %v9739_v12 }
 0x2b2   :  { %v7714_v36 = vpop.permute.xlu0 %1874  ;;  %4490 = vmatprep.mubr.msk.bf16.mxu0 %vm4849_vm5, %v9698_v31  ;;  %v2453_v3 = vsel %vm2431_vm12, %v2368_v14, %v6920_v56  ;;  %v3458_v14 = vld [vmem:[%s9066_s2 + $0x68] sm:$0xff] }
 0x2b3   :  { %3549 = vperm.xlu1 %4638, %v3449_v7   ;;  %v3455_v7 = vld [vmem:[%s9066_s2 + $0x50] sm:$0xff]  ;;  %v2538_v60 = vsel %vm2516_vm13, %v2453_v3, %v7195_v34  ;;  %v3457_v34 = vld [vmem:[%s9066_s2 + $0x60] sm:$0xff] }
 0x2b4   :  { %3554 = vperm.xlu0 %4637, %v3450_v2   ;;  %v2623_v47 = vsel %vm2601_vm14, %v2538_v60, %v7543_v1  ;;  %v2134_v2 = vsel %vm2089_vm8, %v9741_v18, %v9740_v29  ;;  %v4771_v1 = vld [vmem:[%s9064_s0 + $0x58] sm:$0xff]   ;;  %v3459_v29 = vld [vmem:[%s9066_s2 + $0x70] sm:$0xff] }
 0x2b5   :  { %v2024_v42 = vpop.permute.xlu1 %2023  ;;  %v9753_v18 = vld [vmem:[#allocation236_spill] sm:$0xff] }
 0x2b6   :  { %v2706_v13 = vsel %vm2686_vm15, %v2621_v53, %v2024_v42  ;;  %v7731_v50 = vpop.permute.xlu0 %1878  ;;  %v2220_v42 = vsel %vm2176_vm9, %v2134_v2, %v9743_v43  ;;  %v9744_v53 = vld [vmem:[#allocation107_spill] sm:$0xff] }
 0x2b7   :  { %3559 = vperm.xlu1 %4638, %v3451_v10   ;;  %v2113_v10 = vsel %vm2089_vm8, %v4771_v1, %v9742_v39  ;;  %v2305_v27 = vsel %vm2261_vm10, %v2220_v42, %v9747_v32  ;;  %v9755_v39 = vld [vmem:[#allocation48_spill] sm:$0xff] }
 0x2b8   :  { %3564 = vperm.xlu0 %4637, %v3452_v23   ;;  %v9745_v23 = vld [vmem:[#allocation47_spill] sm:$0xff] }
 0x2b9   :  { %v7741_v5 = vpop.permute.xlu1 %1882  ;;  %4491 = vmatmul.mubr.msk.bf16.gmra.mxu0 %vm2956_vm0, %v2706_v13  ;;  %v2136_v13 = vsel %vm2089_vm8, %v9745_v23, %v9744_v53  ;;  %v9756_v23 = vld [vmem:[#allocation9_spill] sm:$0xff] }
 0x2ba   :  { %v7753_v20 = vpop.permute.xlu0 %1880  ;;  %4494 = vmatprep.mubr.msk.bf16.mxu0 %vm4849_vm5, %v9698_v31  ;;  %v2222_v40 = vsel %vm2176_vm9, %v2136_v13, %v9748_v45 }
 0x2bb   :  { %3569 = vperm.xlu1 %4638, %v3453_v9   ;;  %v9746_v9 = vld [vmem:[#allocation135_spill] sm:$0xff] }
 0x2bc   :  { %3574 = vperm.xlu0 %4637, %v3454_v0   ;;  %v2200_v52 = vsel %vm2176_vm9, %v2113_v10, %v9746_v9  ;;  %v9750_v0 = vld [vmem:[#allocation233_spill] sm:$0xff] }
 0x2bd   :  { %v2026_v44 = vpop.permute.xlu1 %2025  ;;  %v2285_v63 = vsel %vm2261_vm10, %v2200_v52, %v9749_v6  ;;  %v2390_v12 = vsel %vm2346_vm11, %v2305_v27, %v9750_v0  ;;  %v9758_v27 = vld [vmem:[#allocation97_spill] sm:$0xff]  ;;  %v9760_v0 = vld [vmem:[#allocation138_spill] sm:$0xff] }
 0x2be   :  { %v2708_v46 = vsel %vm2686_vm15, %v2623_v47, %v2026_v44  ;;  %v7773_v56 = vpop.permute.xlu0 %1884  ;;  %v9752_v44 = vld [vmem:[#allocation223_spill] sm:$0xff]  ;;  %v2475_v47 = vsel %vm2431_vm12, %v2390_v12, %v6990_v19  ;;  %v9754_v19 = vld [vmem:[#allocation106_spill] sm:$0xff] }
 0x2bf   :  { %3579 = vperm.xlu1 %4638, %v3455_v7   ;;  %v9751_v7 = vld [vmem:[#allocation179_spill] sm:$0xff]  ;;  %v2370_v60 = vsel %vm2346_vm11, %v2285_v63, %v9752_v44  ;;  %v2138_v10 = vsel %vm2089_vm8, %v9755_v39, %v9754_v19  ;;  %v9761_v44 = vld [vmem:[#allocation169_spill] sm:$0xff] }
 0x2c0   :  { %3584 = vperm.xlu0 %4637, %v3456_v37   ;;  %v2307_v3 = vsel %vm2261_vm10, %v2222_v40, %v9751_v7  ;;  %v9759_v40 = vld [vmem:[#allocation235_spill] sm:$0xff] }
 0x2c1   :  { %v2048_v35 = vpop.permute.xlu1 %2047  ;;  %4495 = vmatmul.mubr.msk.bf16.gmra.mxu0 %vm2956_vm0, %v2708_v46  ;;  %v2392_v2 = vsel %vm2346_vm11, %v2307_v3, %v9753_v18  ;;  %v2455_v46 = vsel %vm2431_vm12, %v2370_v60, %v6914_v38  ;;  %v2224_v38 = vsel %vm2176_vm9, %v2138_v10, %v9756_v23  ;;  %v9762_v18 = vld [vmem:[#allocation226_spill] sm:$0xff]  ;;  %v9763_v10 = vld [vmem:[#allocation109_spill] sm:$0xff] }
 0x2c2   :  { %v7808_v37 = vpop.permute.xlu0 %1886  ;;  %4498 = vmatprep.mubr.msk.bf16.mxu0 %vm4849_vm5, %v9698_v31  ;;  %v2477_v43 = vsel %vm2431_vm12, %v2392_v2, %v7016_v61  ;;  %v2540_v42 = vsel %vm2516_vm13, %v2455_v46, %v7190_v15  ;;  %v3460_v61 = vld [vmem:[%s9066_s2 + $0x78] sm:$0xff]  ;;  %v9757_v15 = vld [vmem:[#allocation178_spill] sm:$0xff] }
 0x2c3   :  { %3589 = vperm.xlu1 %4638, %v3457_v34   ;;  %v2560_v34 = vsel %vm2516_vm13, %v2475_v47, %v7246_v25  ;;  %v2562_v25 = vsel %vm2516_vm13, %v2477_v43, %v7263_v51  ;;  %v2625_v13 = vsel %vm2601_vm14, %v2540_v42, %v7574_v17  ;;  %v3461_v17 = vld [vmem:[%s9066_s2 + $0x80] sm:$0xff] }
 0x2c4   :  { %v2645_v53 = vsel %vm2601_vm14, %v2560_v34, %v7714_v36  ;;  %3594 = vperm.xlu0 %4637, %v3458_v14   ;;  %v2309_v36 = vsel %vm2261_vm10, %v2224_v38, %v9757_v15  ;;  %v2647_v52 = vsel %vm2601_vm14, %v2562_v25, %v7702_v30  ;;  %v3464_v38 = vld [vmem:[%s9066_s2 + $0x98] sm:$0xff] }
 0x2c5   :  { %v2028_v1 = vpop.permute.xlu1 %2027  ;;  %v7837_v9 = vsel %vm2686_vm15, %v2645_v53, %v2048_v35  ;;  %v4772_v35 = vld [vmem:[%s9064_s0 + $0x60] sm:$0xff]   ;;  %v2394_v6 = vsel %vm2346_vm11, %v2309_v36, %v9759_v40  ;;  %v9764_v53 = vld [vmem:[#allocation13_spill] sm:$0xff]  ;;  %v4774_v36 = vld [vmem:[%s9064_s0 + $0x68] sm:$0xff]  }
 0x2c6   :  { %v2710_v32 = vsel %vm2686_vm15, %v2625_v13, %v2028_v1  ;;  %v2050_v51 = vpop.permute.xlu0 %2049  ;;  %v2115_v45 = vsel %vm2089_vm8, %v4772_v35, %v9758_v27  ;;  %v2479_v14 = vsel %vm2431_vm12, %v2394_v6, %v7000_v24  ;;  %v2855_v7 = vunpack.c.h.b16 %v7837_v9  ;;  %v9765_v25 = vld [vmem:[#allocation181_spill] sm:$0xff]  ;;  %v9768_v6 = vld [vmem:[#allocation168_spill] sm:$0xff] }
 0x2c7   :  { %3599 = vperm.xlu1 %4638, %v3459_v29   ;;  %v2732_v63 = vsel %vm2686_vm15, %v2647_v52, %v2050_v51  ;;  %v2202_v12 = vsel %vm2176_vm9, %v2115_v45, %v9760_v0  ;;  %v2564_v47 = vsel %vm2516_vm13, %v2479_v14, %v7255_v4  ;;  %v3462_v29 = vld [vmem:[%s9066_s2 + $0x88] sm:$0xff]  ;;  %v3463_v4 = vld [vmem:[%s9066_s2 + $0x90] sm:$0xff]  ;;  %v9767_v35 = vld [vmem:[#allocation137_spill] sm:$0xff] }
 0x2c8   :  { %v2856_v3 = vunpack.c.l.b16 %v2732_v63  ;;  %3604 = vperm.xlu0 %4637, %v3460_v61   ;;  %v2287_v60 = vsel %vm2261_vm10, %v2202_v12, %v9761_v44  ;;  %v2649_v2 = vsel %vm2601_vm14, %v2564_v47, %v7731_v50  ;;  %v4773_v50 = vld [vmem:[%s9064_s0 + $0xd0] sm:$0xff]   ;;  %v2857_v40 = vunpack.c.h.b16 %v2732_v63  ;;  %v9769_v12 = vld [vmem:[#allocation225_spill] sm:$0xff] }
 0x2c9   :  { %v2052_v30 = vpop.permute.xlu1 %2051  ;;  %4499 = vmatmul.mubr.msk.bf16.gmra.mxu0 %vm2956_vm0, %v2710_v32  ;;  %v2372_v24 = vsel %vm2346_vm11, %v2287_v60, %v9762_v18  ;;  %v2140_v43 = vsel %vm2089_vm8, %v4773_v50, %v9763_v10  ;;  %v9766_v52 = vld [vmem:[#allocation96_spill] sm:$0xff] }
 0x2ca   :  { %v2921_v46 = vpack.c.b16 %v2856_v3, %v2855_v7  ;;  %v7875_v34 = vpop.permute.xlu0 %1888  ;;  %4502 = vmatprep.mubr.msk.bf16.mxu0 %vm4849_vm5, %v9698_v31  ;;  %v2457_v1 = vsel %vm2431_vm12, %v2372_v24, %v6932_v48  ;;  %v7885_v19 = vsel %vm2686_vm15, %v2649_v2, %v2052_v30  ;;  %v2226_v48 = vsel %vm2176_vm9, %v2140_v43, %v9764_v53  ;;  %v9770_v47 = vld [vmem:[#allocation108_spill] sm:$0xff]  ;;  %v9772_v2 = vld [vmem:[#allocation17_spill] sm:$0xff]  ;;  %v9774_v53 = vld [vmem:[#allocation99_spill] sm:$0xff] }
 0x2cb   :  { %3609 = vperm.xlu1 %4638, %v3461_v17   ;;  %v2542_v42 = vsel %vm2516_vm13, %v2457_v1, %v7206_v21  ;;  %v2311_v21 = vsel %vm2261_vm10, %v2226_v48, %v9765_v25  ;;  %v2858_v13 = vunpack.c.l.b16 %v7885_v19  ;;  %v2117_v32 = vsel %vm2089_vm8, %v4774_v36, %v9766_v52  ;;  %v9771_v18 = vld [vmem:[#allocation184_spill] sm:$0xff]  ;;  %v9778_v52 = vld [vmem:[#allocation171_spill] sm:$0xff] }
 0x2cc   :  { %3614 = vperm.xlu0 %4637, %v3462_v29   ;;  %4539 = vmatmul.mubr.msk.bf16.vlgmr.msra.gmra.mxu1 %vm2956_vm0, %v2921_v46  ;;  %v2627_v23 = vsel %vm2601_vm14, %v2542_v42, %v7600_v54  ;;  %v3465_v54 = vld [vmem:[%s9066_s2 + $0xa0] sm:$0xff]  ;;  %v2396_v51 = vsel %vm2346_vm11, %v2311_v21, %v6777_v55  ;;  %v2204_v27 = vsel %vm2176_vm9, %v2117_v32, %v9767_v35  ;;  %v3466_v55 = vld [vmem:[%s9066_s2 + $0xa8] sm:$0xff]  ;;  %v9773_v1 = vld [vmem:[#allocation180_spill] sm:$0xff]  ;;  %v2859_v36 = vunpack.c.h.b16 %v7885_v19 }
 0x2cd   :  { %v2030_v39 = vpop.permute.xlu1 %2029  ;;  %4542 = vmatprep.mubr.msk.bf16.mxu1 %vm4849_vm5, %v9698_v31  ;;  %v2481_v45 = vsel %vm2431_vm12, %v2396_v51, %v7026_v62  ;;  %v2289_v30 = vsel %vm2261_vm10, %v2204_v27, %v9768_v6  ;;  %v2922_v63 = vpack.c.b16 %v2858_v13, %v2857_v40  ;;  %v4776_v42 = vld [vmem:[%s9064_s0 + $0x70] sm:$0xff]   ;;  %v3470_v35 = vld [vmem:[%s9066_s2 + $0xc8] sm:$0xff] }
 0x2ce   :  { %v2712_v61 = vsel %vm2686_vm15, %v2627_v23, %v2030_v39  ;;  %v7908_v15 = vpop.permute.xlu0 %1890  ;;  %v2566_v0 = vsel %vm2516_vm13, %v2481_v45, %v7274_v26  ;;  %v2374_v14 = vsel %vm2346_vm11, %v2289_v30, %v9769_v12  ;;  %v3467_v26 = vld [vmem:[%s9066_s2 + $0xb0] sm:$0xff]  ;;  %v2119_v48 = vsel %vm2089_vm8, %v4776_v42, %v9774_v53  ;;  %v9775_v23 = vld [vmem:[#allocation237_spill] sm:$0xff]  ;;  %v9788_v42 = vld [vmem:[#allocation139_spill] sm:$0xff] }
 0x2cf   :  { %3619 = vperm.xlu1 %4638, %v3463_v4   ;;  %v2651_v62 = vsel %vm2601_vm14, %v2566_v0, %v7753_v20  ;;  %v2459_v3 = vsel %vm2431_vm12, %v2374_v14, %v6922_v33  ;;  %v4775_v20 = vld [vmem:[%s9064_s0 + $0xd8] sm:$0xff]   ;;  %v9776_v21 = vld [vmem:[#allocation140_spill] sm:$0xff]  ;;  %v9781_v0 = vld [vmem:[#allocation255_spill] sm:$0xff] }
 0x2d0   :  { %3624 = vperm.xlu0 %4637, %v3464_v38   ;;  %v2142_v29 = vsel %vm2089_vm8, %v4775_v20, %v9770_v47  ;;  %v2544_v24 = vsel %vm2516_vm13, %v2459_v3, %v9771_v18  ;;  %v3468_v4 = vld [vmem:[%s9066_s2 + $0xb8] sm:$0xff]  ;;  %v2206_v13 = vsel %vm2176_vm9, %v2119_v48, %v9776_v21  ;;  %v9779_v51 = vld [vmem:[#allocation40_spill] sm:$0xff]  ;;  %v9785_v18 = vld [vmem:[#allocation183_spill] sm:$0xff] }
 0x2d1   :  { %v2054_v17 = vpop.permute.xlu1 %2053  ;;  %4503 = vmatmul.mubr.msk.bf16.gmra.mxu0 %vm2956_vm0, %v2712_v61  ;;  %v2228_v33 = vsel %vm2176_vm9, %v2142_v29, %v9772_v2  ;;  %v2629_v46 = vsel %vm2601_vm14, %v2544_v24, %v7588_v16  ;;  %v3469_v16 = vld [vmem:[%s9066_s2 + $0xc0] sm:$0xff]  ;;  %v9777_v61 = vld [vmem:[#allocation261_spill] sm:$0xff]  ;;  %v2291_v32 = vsel %vm2261_vm10, %v2206_v13, %v9778_v52  ;;  %v9780_v27 = vld [vmem:[#allocation228_spill] sm:$0xff] }
 0x2d2   :  { %v7936_v7 = vpop.permute.xlu0 %1892  ;;  %4506 = vmatprep.mubr.msk.bf16.mxu0 %vm4849_vm5, %v9698_v31  ;;  %v7946_v44 = vsel %vm2686_vm15, %v2651_v62, %v2054_v17  ;;  %v2313_v39 = vsel %vm2261_vm10, %v2228_v33, %v9773_v1  ;;  %v2376_v45 = vsel %vm2346_vm11, %v2291_v32, %v9780_v27  ;;  %v3471_v30 = vld [vmem:[%s9066_s2 + $0xd0] sm:$0xff]  ;;  %v9782_v62 = vld [vmem:[#allocation111_spill] sm:$0xff]  ;;  %v3472_v29 = vld [vmem:[%s9066_s2 + $0xd8] sm:$0xff] }
 0x2d3   :  { %3629 = vperm.xlu1 %4638, %v3465_v54   ;;  %v2860_v50 = vunpack.c.l.b16 %v7946_v44  ;;  %v2398_v38 = vsel %vm2346_vm11, %v2313_v39, %v9775_v23  ;;  %v9786_v1 = vld [vmem:[#allocation98_spill] sm:$0xff]  ;;  %v9789_v48 = vld [vmem:[#allocation263_spill] sm:$0xff]  ;;  %v9791_v13 = vld [vmem:[#allocation49_spill] sm:$0xff] }
 0x2d4   :  { %3634 = vperm.xlu0 %4637, %v3466_v55   ;;  %4543 = vmatmul.mubr.msk.bf16.gmra.mxu1 %vm2956_vm0, %v2922_v63  ;;  %v2483_v54 = vsel %vm2431_vm12, %v2398_v38, %v9777_v61  ;;  %v2461_v55 = vsel %vm2431_vm12, %v2376_v45, %v9781_v0  ;;  %v2861_v38 = vunpack.c.h.b16 %v7946_v44  ;;  %v9795_v0 = vld [vmem:[#allocation39_spill] sm:$0xff] }
 0x2d5   :  { %v2032_v60 = vpop.permute.xlu1 %2031  ;;  %4546 = vmatprep.mubr.msk.bf16.mxu1 %vm4849_vm5, %v9698_v31  ;;  %v2568_v17 = vsel %vm2516_vm13, %v2483_v54, %v9779_v51  ;;  %v2923_v40 = vpack.c.b16 %v2860_v50, %v2859_v36  ;;  %v9787_v50 = vld [vmem:[#allocation239_spill] sm:$0xff] }
 0x2d6   :  { %v2714_v10 = vsel %vm2686_vm15, %v2629_v46, %v2032_v60  ;;  %v7969_v43 = vpop.permute.xlu0 %1894  ;;  %v2653_v19 = vsel %vm2601_vm14, %v2568_v17, %v7741_v5  ;;  %v4777_v5 = vld [vmem:[%s9064_s0 + $0xe0] sm:$0xff]   ;;  %v3474_v54 = vld [vmem:[%s9066_s2 + $0xe8] sm:$0xff]  ;;  %v3475_v17 = vld [vmem:[%s9066_s2 + $0xf0] sm:$0xff] }
 0x2d7   :  { %3639 = vperm.xlu1 %4638, %v3467_v26   ;;  %v2144_v63 = vsel %vm2089_vm8, %v4777_v5, %v9782_v62  ;;  %v9783_v26 = vld [vmem:[#allocation33_spill] sm:$0xff]  ;;  %v9784_v60 = vld [vmem:[#allocation14_spill] sm:$0xff]  ;;  %v9792_v36 = vld [vmem:[#allocation227_spill] sm:$0xff] }
 0x2d8   :  { %3644 = vperm.xlu0 %4637, %v3468_v4   ;;  %v2546_v3 = vsel %vm2516_vm13, %v2461_v55, %v9783_v26  ;;  %v2230_v20 = vsel %vm2176_vm9, %v2144_v63, %v9784_v60  ;;  %v4778_v4 = vld [vmem:[%s9064_s0 + $0x78] sm:$0xff]   ;;  %v9797_v26 = vld [vmem:[#allocation182_spill] sm:$0xff] }
 0x2d9   :  { %v2056_v25 = vpop.permute.xlu1 %2055  ;;  %4507 = vmatmul.mubr.msk.bf16.gmra.mxu0 %vm2956_vm0, %v2714_v10  ;;  %v2631_v47 = vsel %vm2601_vm14, %v2546_v3, %v7617_v58  ;;  %v2315_v24 = vsel %vm2261_vm10, %v2230_v20, %v9785_v18  ;;  %v3473_v58 = vld [vmem:[%s9066_s2 + $0xe0] sm:$0xff]  ;;  %v2121_v39 = vsel %vm2089_vm8, %v4778_v4, %v9786_v1  ;;  %v3476_v63 = vld [vmem:[%s9066_s2 + $0xf8] sm:$0xff]  ;;  %v9801_v4 = vld [vmem:[#allocation143_spill] sm:$0xff] }
 0x2da   :  { %v7998_v6 = vpop.permute.xlu0 %1896  ;;  %4510 = vmatprep.mubr.msk.bf16.mxu0 %vm4849_vm5, %v9698_v31  ;;  %v8008_v12 = vsel %vm2686_vm15, %v2653_v19, %v2056_v25  ;;  %v2400_v10 = vsel %vm2346_vm11, %v2315_v24, %v9787_v50  ;;  %v2208_v53 = vsel %vm2176_vm9, %v2121_v39, %v9788_v42  ;;  %v9790_v25 = vld [vmem:[#allocation170_spill] sm:$0xff] }
 0x2db   :  { %3649 = vperm.xlu1 %4638, %v3469_v16   ;;  %v2862_v2 = vunpack.c.l.b16 %v8008_v12  ;;  %v2485_v23 = vsel %vm2431_vm12, %v2400_v10, %v9789_v48  ;;  %v2293_v21 = vsel %vm2261_vm10, %v2208_v53, %v9790_v25  ;;  %v9799_v18 = vld [vmem:[#allocation42_spill] sm:$0xff]  ;;  %v2863_v10 = vunpack.c.h.b16 %v8008_v12  ;;  %v9804_v53 = vld [vmem:[#allocation37_spill] sm:$0xff] }
 0x2dc   :  { %3654 = vperm.xlu0 %4637, %v3470_v35   ;;  %4547 = vmatmul.mubr.msk.bf16.gmra.mxu1 %vm2956_vm0, %v2923_v40  ;;  %v2570_v61 = vsel %vm2516_vm13, %v2485_v23, %v9791_v13  ;;  %v2378_v52 = vsel %vm2346_vm11, %v2293_v21, %v9792_v36  ;;  %v9793_v35 = vld [vmem:[#allocation254_spill] sm:$0xff]  ;;  %v3478_v23 = vld [vmem:[%s9066_s2 + $0x108] sm:$0xff] }
 0x2dd   :  { %v2034_v14 = vpop.permute.xlu1 %2033  ;;  %4550 = vmatprep.mubr.msk.bf16.mxu1 %vm4849_vm5, %v9698_v31  ;;  %v2655_v44 = vsel %vm2601_vm14, %v2570_v61, %v7773_v56  ;;  %v2924_v32 = vpack.c.b16 %v2862_v2, %v2861_v38  ;;  %v2463_v27 = vsel %vm2431_vm12, %v2378_v52, %v9793_v35  ;;  %v4779_v56 = vld [vmem:[%s9064_s0 + $0xe8] sm:$0xff]   ;;  %v9794_v40 = vld [vmem:[#allocation110_spill] sm:$0xff]  ;;  %v3479_v61 = vld [vmem:[%s9066_s2 + $0x110] sm:$0xff] }
 0x2de   :  { %v2716_v33 = vsel %vm2686_vm15, %v2631_v47, %v2034_v14  ;;  %v8031_v46 = vpop.permute.xlu0 %1898  ;;  %v2548_v55 = vsel %vm2516_vm13, %v2463_v27, %v9795_v0  ;;  %v9796_v14 = vld [vmem:[#allocation15_spill] sm:$0xff]  ;;  %v9800_v2 = vld [vmem:[#allocation238_spill] sm:$0xff] }
 0x2df   :  { %3659 = vperm.xlu1 %4638, %v3471_v30   ;;  %v2146_v30 = vsel %vm2089_vm8, %v4779_v56, %v9794_v40  ;;  %v2633_v62 = vsel %vm2601_vm14, %v2548_v55, %v7638_v8  ;;  %v3477_v8 = vld [vmem:[%s9066_s2 + $0x100] sm:$0xff]  ;;  %v9808_v35 = vld [vmem:[#allocation35_spill] sm:$0xff] }
 0x2e0   :  { %3664 = vperm.xlu0 %4637, %v3472_v29   ;;  %v2232_v5 = vsel %vm2176_vm9, %v2146_v30, %v9796_v14  ;;  %v9798_v29 = vld [vmem:[#allocation101_spill] sm:$0xff]  ;;  %v9802_v39 = vld [vmem:[#allocation262_spill] sm:$0xff] }
 0x2e1   :  { %v2058_v16 = vpop.permute.xlu1 %2057  ;;  %4511 = vmatmul.mubr.msk.bf16.gmra.mxu0 %vm2956_vm0, %v2716_v33  ;;  %v2317_v3 = vsel %vm2261_vm10, %v2232_v5, %v9797_v26  ;;  %v2123_v24 = vsel %vm2089_vm8, %v9799_v18, %v9798_v29  ;;  %v9805_v38 = vld [vmem:[#allocation230_spill] sm:$0xff]  ;;  %v3480_v30 = vld [vmem:[%s9066_s2 + $0x118] sm:$0xff]  ;;  %v9811_v26 = vld [vmem:[#allocation100_spill] sm:$0xff] }
 0x2e2   :  { %v8060_v51 = vpop.permute.xlu0 %1900  ;;  %4514 = vmatprep.mubr.msk.bf16.mxu0 %vm4849_vm5, %v9698_v31  ;;  %v8070_v45 = vsel %vm2686_vm15, %v2655_v44, %v2058_v16  ;;  %v2402_v33 = vsel %vm2346_vm11, %v2317_v3, %v9800_v2  ;;  %v2210_v1 = vsel %vm2176_vm9, %v2123_v24, %v9801_v4  ;;  %v9803_v16 = vld [vmem:[#allocation173_spill] sm:$0xff]  ;;  %v9810_v0 = vld [vmem:[#allocation186_spill] sm:$0xff] }
 0x2e3   :  { %3669 = vperm.xlu1 %4638, %v3473_v58   ;;  %v2864_v60 = vunpack.c.l.b16 %v8070_v45  ;;  %v2487_v50 = vsel %vm2431_vm12, %v2402_v33, %v9802_v39  ;;  %v2295_v42 = vsel %vm2261_vm10, %v2210_v1, %v9803_v16  ;;  %v9813_v29 = vld [vmem:[#allocation141_spill] sm:$0xff]  ;;  %v2865_v33 = vunpack.c.h.b16 %v8070_v45  ;;  %v9816_v1 = vld [vmem:[#allocation46_spill] sm:$0xff] }
 0x2e4   :  { %3674 = vperm.xlu0 %4637, %v3474_v54   ;;  %4551 = vmatmul.mubr.msk.bf16.gmra.mxu1 %vm2956_vm0, %v2924_v32  ;;  %v2572_v48 = vsel %vm2516_vm13, %v2487_v50, %v9804_v53  ;;  %v2380_v25 = vsel %vm2346_vm11, %v2295_v42, %v9805_v38  ;;  %v9806_v54 = vld [vmem:[#allocation257_spill] sm:$0xff]  ;;  %v3482_v50 = vld [vmem:[%s9066_s2 + $0x128] sm:$0xff] }
 0x2e5   :  { %v2036_v19 = vpop.permute.xlu1 %2035  ;;  %4554 = vmatprep.mubr.msk.bf16.mxu1 %vm4849_vm5, %v9698_v31  ;;  %v2657_v12 = vsel %vm2601_vm14, %v2572_v48, %v7808_v37  ;;  %v2925_v21 = vpack.c.b16 %v2864_v60, %v2863_v10  ;;  %v2465_v36 = vsel %vm2431_vm12, %v2380_v25, %v9806_v54  ;;  %v4780_v37 = vld [vmem:[%s9064_s0 + $0xf0] sm:$0xff]   ;;  %v9807_v32 = vld [vmem:[#allocation113_spill] sm:$0xff]  ;;  %v9820_v54 = vld [vmem:[#allocation187_spill] sm:$0xff] }
 0x2e6   :  { %v2718_v20 = vsel %vm2686_vm15, %v2633_v62, %v2036_v19  ;;  %v8093_v47 = vpop.permute.xlu0 %1902  ;;  %v2550_v27 = vsel %vm2516_vm13, %v2465_v36, %v9808_v35  ;;  %v9809_v19 = vld [vmem:[#allocation16_spill] sm:$0xff]  ;;  %v9812_v60 = vld [vmem:[#allocation241_spill] sm:$0xff] }
 0x2e7   :  { %3679 = vperm.xlu1 %4638, %v3475_v17   ;;  %v2148_v17 = vsel %vm2089_vm8, %v4780_v37, %v9807_v32  ;;  %v2635_v40 = vsel %vm2601_vm14, %v2550_v27, %v7625_v11  ;;  %v3481_v11 = vld [vmem:[%s9066_s2 + $0x120] sm:$0xff]  ;;  %v9814_v24 = vld [vmem:[#allocation265_spill] sm:$0xff]  ;;  %v3483_v48 = vld [vmem:[%s9066_s2 + $0x130] sm:$0xff] }
 0x2e8   :  { %3684 = vperm.xlu0 %4637, %v3476_v63   ;;  %v2234_v56 = vsel %vm2176_vm9, %v2148_v17, %v9809_v19  ;;  %v4781_v63 = vld [vmem:[%s9064_s0 + $0x88] sm:$0xff]   ;;  %v9817_v10 = vld [vmem:[#allocation229_spill] sm:$0xff] }
 0x2e9   :  { %v2060_v58 = vpop.permute.xlu1 %2059  ;;  %4515 = vmatmul.mubr.msk.bf16.gmra.mxu0 %vm2956_vm0, %v2718_v20  ;;  %v2319_v55 = vsel %vm2261_vm10, %v2234_v56, %v9810_v0  ;;  %v2125_v3 = vsel %vm2089_vm8, %v4781_v63, %v9811_v26  ;;  %v9821_v32 = vld [vmem:[#allocation21_spill] sm:$0xff] }
 0x2ea   :  { %v8120_v13 = vpop.permute.xlu0 %1904  ;;  %4518 = vmatprep.mubr.msk.bf16.mxu0 %vm4849_vm5, %v9698_v31  ;;  %v8130_v52 = vsel %vm2686_vm15, %v2657_v12, %v2060_v58  ;;  %v2404_v20 = vsel %vm2346_vm11, %v2319_v55, %v9812_v60  ;;  %v2212_v18 = vsel %vm2176_vm9, %v2125_v3, %v9813_v29  ;;  %v9815_v58 = vld [vmem:[#allocation172_spill] sm:$0xff]  ;;  %v3484_v27 = vld [vmem:[%s9066_s2 + $0x138] sm:$0xff] }
 0x2eb   :  { %3689 = vperm.xlu1 %4638, %v3477_v8   ;;  %v2866_v14 = vunpack.c.l.b16 %v8130_v52  ;;  %v2489_v2 = vsel %vm2431_vm12, %v2404_v20, %v9814_v24  ;;  %v2297_v4 = vsel %vm2261_vm10, %v2212_v18, %v9815_v58  ;;  %v9822_v19 = vld [vmem:[#allocation185_spill] sm:$0xff]  ;;  %v4784_v55 = vld [vmem:[%s9064_s0 + $0x90] sm:$0xff]   ;;  %v2867_v29 = vunpack.c.h.b16 %v8130_v52 }
 0x2ec   :  { %3694 = vperm.xlu0 %4637, %v3478_v23   ;;  %4555 = vmatmul.mubr.msk.bf16.gmra.mxu1 %vm2956_vm0, %v2925_v21  ;;  %v2574_v39 = vsel %vm2516_vm13, %v2489_v2, %v9816_v1  ;;  %v2382_v16 = vsel %vm2346_vm11, %v2297_v4, %v9817_v10  ;;  %v9818_v23 = vld [vmem:[#allocation256_spill] sm:$0xff]  ;;  %v9825_v3 = vld [vmem:[#allocation145_spill] sm:$0xff]  ;;  %v9828_v2 = vld [vmem:[#allocation175_spill] sm:$0xff] }
 0x2ed   :  { %v2038_v44 = vpop.permute.xlu1 %2037  ;;  %4558 = vmatprep.mubr.msk.bf16.mxu1 %vm4849_vm5, %v9698_v31  ;;  %v2659_v45 = vsel %vm2601_vm14, %v2574_v39, %v7875_v34  ;;  %v2926_v42 = vpack.c.b16 %v2866_v14, %v2865_v33  ;;  %v2467_v38 = vsel %vm2431_vm12, %v2382_v16, %v9818_v23  ;;  %v4782_v34 = vld [vmem:[%s9064_s0 + $0xf8] sm:$0xff]   ;;  %v9819_v21 = vld [vmem:[#allocation112_spill] sm:$0xff]  ;;  %v9823_v14 = vld [vmem:[#allocation103_spill] sm:$0xff] }
 0x2ee   :  { %v2720_v5 = vsel %vm2686_vm15, %v2635_v40, %v2038_v44  ;;  %v8153_v62 = vpop.permute.xlu0 %1906  ;;  %v2552_v36 = vsel %vm2516_vm13, %v2467_v38, %v9820_v54  ;;  %v4783_v44 = vld [vmem:[%s9064_s0 + $0x158] sm:$0xf]  ;;  %v9826_v20 = vld [vmem:[#allocation264_spill] sm:$0xff]  ;;  %v3486_v1 = vld [vmem:[%s9066_s2 + $0x148] sm:$0xff] }
 0x2ef   :  { %3699 = vperm.xlu1 %4638, %v3479_v61   ;;  %v2150_v61 = vsel %vm2089_vm8, %v4782_v34, %v9819_v21  ;;  %v4334_v37 = vcombine.low %v4783_v44, %v4783_v44  ;;  %v2637_v35 = vsel %vm2601_vm14, %v2552_v36, %v7652_v57  ;;  %v3485_v57 = vld [vmem:[%s9066_s2 + $0x140] sm:$0xff]  ;;  %v9827_v18 = vld [vmem:[#allocation124_spill] sm:$0xff]  ;;  %v9829_v58 = vld [vmem:[#allocation41_spill] sm:$0xff] }
 0x2f0   :  { %3704 = vperm.xlu0 %4637, %v3480_v30   ;;  %v2236_v17 = vsel %vm2176_vm9, %v2150_v61, %v9821_v32  ;;  %v9830_v39 = vld [vmem:[#allocation154_spill] sm:$0xff]  ;;  %v9832_v23 = vld [vmem:[#allocation205_spill] sm:$0xff]  ;;  %v9834_v54 = vld [vmem:[#allocation115_spill] sm:$0xff] }
 0x2f1   :  { %v2062_v8 = vpop.permute.xlu1 %2061  ;;  %4519 = vmatmul.mubr.msk.bf16.gmra.mxu0 %vm2956_vm0, %v2720_v5  ;;  %v2321_v56 = vsel %vm2261_vm10, %v2236_v17, %v9822_v19  ;;  %v2127_v5 = vsel %vm2089_vm8, %v4784_v55, %v9823_v14  ;;  %v2175_v24 = vsel %vm2089_vm8, %v4334_v37, %v9827_v18  ;;  %v4785_v61 = vld [vmem:[%s9064_s0 + $0x100] sm:$0xff]   ;;  %v9835_v44 = vld [vmem:[#allocation252_spill] sm:$0xff]  ;;  %v9836_v32 = vld [vmem:[#allocation45_spill] sm:$0xff] }
 0x2f2   :  { %v8182_v53 = vpop.permute.xlu0 %1908  ;;  %4522 = vmatprep.mubr.msk.bf16.mxu0 %vm4849_vm5, %v9698_v31  ;;  %v8192_v25 = vsel %vm2686_vm15, %v2659_v45, %v2062_v8  ;;  %v2214_v60 = vsel %vm2176_vm9, %v2127_v5, %v9825_v3  ;;  %v2260_v52 = vsel %vm2176_vm9, %v2175_v24, %v9830_v39  ;;  %v2152_v36 = vsel %vm2089_vm8, %v4785_v61, %v9834_v54  ;;  %v9838_v19 = vld [vmem:[#allocation31_spill] sm:$0xff]  ;;  %v4786_v18 = vld [vmem:[%s9064_s0 + $0x98] sm:$0xff]   ;;  %v9842_v24 = vld [vmem:[#allocation102_spill] sm:$0xff] }
 0x2f3   :  { %3709 = vperm.xlu1 %4638, %v3481_v11   ;;  %v2868_v40 = vunpack.c.l.b16 %v8192_v25  ;;  %v9824_v11 = vld [vmem:[#allocation240_spill] sm:$0xff]  ;;  %v2299_v33 = vsel %vm2261_vm10, %v2214_v60, %v9828_v2  ;;  %v2345_v38 = vsel %vm2261_vm10, %v2260_v52, %v9832_v23  ;;  %v2129_v2 = vsel %vm2089_vm8, %v4786_v18, %v9842_v24  ;;  %v9848_v54 = vld [vmem:[#allocation105_spill] sm:$0xff] }
 0x2f4   :  { %3714 = vperm.xlu0 %4637, %v3482_v50   ;;  %4559 = vmatmul.mubr.msk.bf16.gmra.mxu1 %vm2956_vm0, %v2926_v42  ;;  %v2406_v63 = vsel %vm2346_vm11, %v2321_v56, %v9824_v11  ;;  %v9831_v50 = vld [vmem:[#allocation232_spill] sm:$0xff]  ;;  %v2430_v37 = vsel %vm2346_vm11, %v2345_v38, %v9835_v44  ;;  %v9849_v44 = vld [vmem:[#allocation19_spill] sm:$0xff] }
 0x2f5   :  { %v2040_v12 = vpop.permute.xlu1 %2039  ;;  %4562 = vmatprep.mubr.msk.bf16.mxu1 %vm4849_vm5, %v9698_v31  ;;  %v2491_v8 = vsel %vm2431_vm12, %v2406_v63, %v9826_v20  ;;  %v2384_v10 = vsel %vm2346_vm11, %v2299_v33, %v9831_v50  ;;  %v2927_v45 = vpack.c.b16 %v2868_v40, %v2867_v29  ;;  %v2515_v56 = vsel %vm2431_vm12, %v2430_v37, %v9838_v19  ;;  %v9841_v20 = vld [vmem:[#allocation267_spill] sm:$0xff]  ;;  %v4787_v33 = vld [vmem:[%s9064_s0 + $0xa0] sm:$0xf]  ;;  %v9844_v39 = vld [vmem:[#allocation144_spill] sm:$0xff] }
 0x2f6   :  { %v2722_v30 = vsel %vm2686_vm15, %v2637_v35, %v2040_v12  ;;  %v8218_v0 = vpop.permute.xlu0 %1910  ;;  %v2576_v4 = vsel %vm2516_vm13, %v2491_v8, %v9829_v58  ;;  %v9833_v12 = vld [vmem:[#allocation259_spill] sm:$0xff]  ;;  %v9837_v35 = vld [vmem:[#allocation18_spill] sm:$0xff]  ;;  %v2600_v14 = vsel %vm2516_vm13, %v2515_v56, %v7429_v28  ;;  %v2869_v28 = vunpack.c.h.b16 %v8192_v25  ;;  %v9852_v56 = vld [vmem:[#allocation189_spill] sm:$0xff] }
 0x2f7   :  { %3719 = vperm.xlu1 %4638, %v3483_v48   ;;  %v2661_v16 = vsel %vm2601_vm14, %v2576_v4, %v7908_v15  ;;  %v3487_v48 = vld [vmem:[%s9066_s2 + $0x150] sm:$0xff]  ;;  %v2469_v34 = vsel %vm2431_vm12, %v2384_v10, %v9833_v12  ;;  %v4313_v58 = vcombine.low %v4787_v33, %v4787_v33  ;;  %v9843_v4 = vld [vmem:[#allocation38_spill] sm:$0xff]  ;;  %v3490_v25 = vld [vmem:[%s9066_s2 + $0x168] sm:$0xff]  ;;  %v2216_v52 = vsel %vm2176_vm9, %v2129_v2, %v9844_v39 }
 0x2f8   :  { %3724 = vperm.xlu0 %4637, %v3484_v27   ;;  %v2554_v17 = vsel %vm2516_vm13, %v2469_v34, %v9836_v32  ;;  %v2238_v27 = vsel %vm2176_vm9, %v2152_v36, %v9837_v35  ;;  %v4788_v12 = vld [vmem:[%s9064_s0 + $0x108] sm:$0xff]   ;;  %v9850_v32 = vld [vmem:[#allocation258_spill] sm:$0xff]  ;;  %v3492_v35 = vld [vmem:[%s9066_s2 + $0x178] sm:$0xff] }
 0x2f9   :  { %v2064_v26 = vpop.permute.xlu1 %2063  ;;  %4523 = vmatmul.mubr.msk.bf16.gmra.mxu0 %vm2956_vm0, %v2722_v30  ;;  %v2639_v40 = vsel %vm2601_vm14, %v2554_v17, %v7675_v41  ;;  %v3488_v30 = vld [vmem:[%s9066_s2 + $0x158] sm:$0xff]  ;;  %v3489_v41 = vld [vmem:[%s9066_s2 + $0x160] sm:$0xff]  ;;  %v2132_v36 = vsel %vm2089_vm8, %v4313_v58, %v9848_v54  ;;  %v9858_v2 = vld [vmem:[#allocation260_spill] sm:$0xff] }
 0x2fa   :  { %v8251_v42 = vpop.permute.xlu0 %1912  ;;  %4526 = vmatprep.mubr.msk.bf16.mxu0 %vm4849_vm5, %v9698_v31  ;;  %v8263_v21 = vsel %vm2686_vm15, %v2661_v16, %v2064_v26  ;;  %v9840_v26 = vld [vmem:[#allocation243_spill] sm:$0xff]  ;;  %v3491_v16 = vld [vmem:[%s9066_s2 + $0x170] sm:$0xff]  ;;  %v3497_v54 = vld [vmem:[%s9066_s2 + $0x1a0] sm:$0xff] }
 0x2fb   :  { %3729 = vperm.xlu1 %4638, %v3485_v57   ;;  %v9839_v57 = vld [vmem:[#allocation190_spill] sm:$0xff]  ;;  %v2870_v5 = vunpack.c.l.b16 %v8263_v21  ;;  %v9859_v58 = vld [vmem:[#allocation188_spill] sm:$0xff] }
 0x2fc   :  { %3734 = vperm.xlu0 %4637, %v3486_v1   ;;  %4563 = vmatmul.mubr.msk.bf16.gmra.mxu1 %vm2956_vm0, %v2927_v45  ;;  %v2323_v55 = vsel %vm2261_vm10, %v2238_v27, %v9839_v57  ;;  %v9845_v45 = vld [vmem:[#allocation174_spill] sm:$0xff]  ;;  %v9851_v27 = vld [vmem:[#allocation12_spill] sm:$0xff] }
 0x2fd   :  { %v2042_v15 = vpop.permute.xlu1 %2041  ;;  %4566 = vmatprep.mubr.msk.bf16.mxu1 %vm4849_vm5, %v9698_v31  ;;  %v2408_v3 = vsel %vm2346_vm11, %v2323_v55, %v9840_v26  ;;  %v2928_v10 = vpack.c.b16 %v2870_v5, %v2869_v28  ;;  %v2218_v19 = vsel %vm2176_vm9, %v2132_v36, %v9851_v27  ;;  %v9854_v5 = vld [vmem:[#allocation177_spill] sm:$0xff] }
 0x2fe   :  { %v2724_v11 = vsel %vm2686_vm15, %v2639_v40, %v2042_v15  ;;  %v1915_v63 = vpop.permute.xlu0 %1914  ;;  %v2493_v8 = vsel %vm2431_vm12, %v2408_v3, %v9841_v20  ;;  %v9847_v15 = vld [vmem:[#allocation231_spill] sm:$0xff]  ;;  %v9856_v3 = vld [vmem:[#allocation234_spill] sm:$0xff]  ;;  %v9864_v36 = vld [vmem:[#allocation245_spill] sm:$0xff] }
 0x2ff   :  { %3739 = vperm.xlu1 %4638, %v3487_v48   ;;  %v8298_v60 = vsel %vm2601_vm14, %v2600_v14, %v1915_v63  ;;  %v2578_v1 = vsel %vm2516_vm13, %v2493_v8, %v9843_v4  ;;  %v2301_v48 = vsel %vm2261_vm10, %v2216_v52, %v9845_v45  ;;  %v3493_v14 = vld [vmem:[%s9066_s2 + $0x180] sm:$0xff]  ;;  %v4789_v45 = vld [vmem:[%s9064_s0 + $0x110] sm:$0xff]  }
 0x300   :  { %3744 = vperm.xlu0 %4637, %v3488_v30   ;;  %v2663_v50 = vsel %vm2601_vm14, %v2578_v1, %v7936_v7  ;;  %v9846_v7 = vld [vmem:[#allocation114_spill] sm:$0xff]  ;;  %v2386_v61 = vsel %vm2346_vm11, %v2301_v48, %v9847_v15  ;;  %v9853_v30 = vld [vmem:[#allocation32_spill] sm:$0xff]  ;;  %v9861_v48 = vld [vmem:[#allocation117_spill] sm:$0xff] }
 0x301   :  { %v2066_v29 = vpop.permute.xlu1 %2065  ;;  %4527 = vmatmul.mubr.msk.bf16.gmra.mxu0 %vm2956_vm0, %v2724_v11  ;;  %v2154_v34 = vsel %vm2089_vm8, %v4788_v12, %v9846_v7  ;;  %v2471_v17 = vsel %vm2431_vm12, %v2386_v61, %v9850_v32  ;;  %v2303_v11 = vsel %vm2261_vm10, %v2218_v19, %v9854_v5  ;;  %v9855_v63 = vld [vmem:[#allocation242_spill] sm:$0xff]  ;;  %v9862_v12 = vld [vmem:[#allocation20_spill] sm:$0xff]  ;;  %v9866_v19 = vld [vmem:[#allocation55_spill] sm:$0xff] }
 0x302   :  { %4530 = vmatprep.mubr.msk.bf16.mxu0 %vm4849_vm5, %v9698_v31  ;;  %v8329_v23 = vsel %vm2686_vm15, %v2663_v50, %v2066_v29  ;;  %v2044_v38 = vpop.permute.xlu0 %2043  ;;  %v2240_v37 = vsel %vm2176_vm9, %v2154_v34, %v9849_v44  ;;  %v2556_v57 = vsel %vm2516_vm13, %v2471_v17, %v9853_v30  ;;  %v2388_v20 = vsel %vm2346_vm11, %v2303_v11, %v9856_v3  ;;  %v9857_v8 = vld [vmem:[#allocation266_spill] sm:$0xff]  ;;  %v3495_v50 = vld [vmem:[%s9066_s2 + $0x190] sm:$0xff]  ;;  %v9868_v11 = vld [vmem:[#allocation25_spill] sm:$0xff] }
 0x303   :  { %3749 = vperm.xlu1 %4638, %v3489_v41   ;;  %v2325_v40 = vsel %vm2261_vm10, %v2240_v37, %v9852_v56  ;;  %v2872_v55 = vunpack.c.l.b16 %v8329_v23  ;;  %v2641_v26 = vsel %vm2601_vm14, %v2556_v57, %v7662_v22  ;;  %v2871_v29 = vunpack.c.h.b16 %v8263_v21  ;;  %v3494_v22 = vld [vmem:[%s9066_s2 + $0x188] sm:$0xff]  ;;  %v9863_v34 = vld [vmem:[#allocation194_spill] sm:$0xff] }
 0x304   :  { %3754 = vperm.xlu0 %4637, %v3490_v25   ;;  %4567 = vmatmul.mubr.msk.bf16.gmra.mxu1 %vm2956_vm0, %v2928_v10  ;;  %v2410_v41 = vsel %vm2346_vm11, %v2325_v40, %v9855_v63  ;;  %v2726_v18 = vsel %vm2686_vm15, %v2641_v26, %v2044_v38  ;;  %v2473_v33 = vsel %vm2431_vm12, %v2388_v20, %v9858_v2  ;;  %v9860_v25 = vld [vmem:[#allocation36_spill] sm:$0xff]  ;;  %v9865_v32 = vld [vmem:[#allocation22_spill] sm:$0xff]  ;;  %v3498_v40 = vld [vmem:[%s9066_s2 + $0x1a8] sm:$0xff] }
 0x305   :  { %4570 = vmatprep.mubr.msk.bf16.mxu1 %vm4849_vm5, %v9698_v31  ;;  %v2495_v28 = vsel %vm2431_vm12, %v2410_v41, %v9857_v8  ;;  %v2068_v24 = vpop.permute.xlu1 %2067  ;;  %v2558_v21 = vsel %vm2516_vm13, %v2473_v33, %v9860_v25  ;;  %v2929_v52 = vpack.c.b16 %v2872_v55, %v2871_v29  ;;  %v4790_v55 = vld [vmem:[%s9064_s0 + $0x118] sm:$0xff]   ;;  %v3501_v8 = vld [vmem:[%s9066_s2 + $0x1c0] sm:$0xff]  ;;  %v9872_v33 = vld [vmem:[#allocation191_spill] sm:$0xff] }
 0x306   :  { %v2580_v4 = vsel %vm2516_vm13, %v2495_v28, %v9859_v58  ;;  %v2046_v1 = vpop.permute.xlu0 %2045  ;;  %v2643_v10 = vsel %vm2601_vm14, %v2558_v21, %v7692_v49  ;;  %v3496_v49 = vld [vmem:[%s9066_s2 + $0x198] sm:$0xff]  ;;  %v9870_v28 = vld [vmem:[#allocation244_spill] sm:$0xff] }
 0x307   :  { %3759 = vperm.xlu1 %4638, %v3491_v16   ;;  %v2665_v39 = vsel %vm2601_vm14, %v2580_v4, %v7969_v43  ;;  %v2156_v43 = vsel %vm2089_vm8, %v4789_v45, %v9861_v48  ;;  %v2728_v38 = vsel %vm2686_vm15, %v2643_v10, %v2046_v1  ;;  %v3500_v63 = vld [vmem:[%s9066_s2 + $0x1b8] sm:$0xff]  ;;  %v3502_v4 = vld [vmem:[%s9066_s2 + $0x1c8] sm:$0xff]  ;;  %v3503_v25 = vld [vmem:[%s9066_s2 + $0x1d0] sm:$0xff] }
 0x308   :  { %3764 = vperm.xlu0 %4637, %v3492_v35   ;;  %v2750_v16 = vsel %vm2686_vm15, %v2665_v39, %v2068_v24  ;;  %v2242_v7 = vsel %vm2176_vm9, %v2156_v43, %v9862_v12  ;;  %v4359_v37 = vcombine.low %v2728_v38, %v7837_v9  ;;  %v2873_v35 = vunpack.c.h.b16 %v8329_v23  ;;  %v3499_v23 = vld [vmem:[%s9066_s2 + $0x1b0] sm:$0xff]  ;;  %v9869_v41 = vld [vmem:[#allocation193_spill] sm:$0xff]  ;;  %v4791_v39 = vld [vmem:[%s9064_s0 + $0x120] sm:$0xff]  }
 0x309   :  { %4531 = vmatmul.mubr.msk.bf16.gmra.mxu0 %vm2956_vm0, %v2726_v18  ;;  %v2327_v15 = vsel %vm2261_vm10, %v2242_v7, %v9863_v34  ;;  %v2874_v61 = vunpack.c.l.b16 %v2750_v16  ;;  %v2072_v3 = vpop.permute.xlu1 %2071  ;;  %v9871_v18 = vld [vmem:[#allocation23_spill] sm:$0xff]  ;;  %v2875_v2 = vunpack.c.h.b16 %v2750_v16  ;;  %v9874_v16 = vld [vmem:[#allocation149_spill] sm:$0xff]  ;;  %v9875_v43 = vld [vmem:[#allocation198_spill] sm:$0xff] }
 0x30a   :  { %4534 = vmatprep.mubr.msk.bf16.mxu0 %vm4849_vm5, %v9698_v31  ;;  %v2412_v44 = vsel %vm2346_vm11, %v2327_v15, %v9864_v36  ;;  %v2070_v27 = vpop.permute.xlu0 %2069  ;;  %v3504_v48 = vld [vmem:[%s9066_s2 + $0x1d8] sm:$0xff]  ;;  %v9876_v34 = vld [vmem:[#allocation247_spill] sm:$0xff]  ;;  %v9878_v36 = vld [vmem:[#allocation52_spill] sm:$0xff] }
 0x30b   :  { %3769 = vperm.xlu1 %4638, %v3493_v14   ;;  %v2497_v17 = vsel %vm2431_vm12, %v2412_v44, %v9865_v32  ;;  %v2930_v30 = vpack.c.b16 %v2874_v61, %v2873_v35  ;;  %v9867_v14 = vld [vmem:[#allocation116_spill] sm:$0xff] }
 0x30c   :  { %3774 = vperm.xlu0 %4637, %v3494_v22   ;;  %4571 = vmatmul.mubr.msk.bf16.gmra.mxu1 %vm2956_vm0, %v2929_v52  ;;  %v2582_v56 = vsel %vm2516_vm13, %v2497_v17, %v9866_v19  ;;  %v2158_v5 = vsel %vm2089_vm8, %v4790_v55, %v9867_v14  ;;  %v9873_v52 = vld [vmem:[#allocation119_spill] sm:$0xff]  ;;  %v9877_v61 = vld [vmem:[#allocation24_spill] sm:$0xff]  ;;  %v9881_v55 = vld [vmem:[#allocation197_spill] sm:$0xff] }
 0x30d   :  { %4574 = vmatprep.mubr.msk.bf16.mxu1 %vm4849_vm5, %v9698_v31  ;;  %v2667_v9 = vsel %vm2601_vm14, %v2582_v56, %v7998_v6  ;;  %v2244_v6 = vsel %vm2176_vm9, %v2158_v5, %v9868_v11  ;;  %v2076_v10 = vpop.permute.xlu1 %2075  ;;  %v3509_v11 = vld [vmem:[%s9066_s2 + $0x200] sm:$0xff] }
 0x30e   :  { %v2752_v57 = vsel %vm2686_vm15, %v2667_v9, %v2070_v27  ;;  %v2329_v26 = vsel %vm2261_vm10, %v2244_v6, %v9869_v41  ;;  %v2074_v45 = vpop.permute.xlu0 %2073  ;;  %v3507_v27 = vld [vmem:[%s9066_s2 + $0x1f0] sm:$0xff]  ;;  %v9879_v9 = vld [vmem:[#allocation118_spill] sm:$0xff] }
 0x30f   :  { %3779 = vperm.xlu1 %4638, %v3495_v50   ;;  %v2876_v20 = vunpack.c.l.b16 %v2752_v57  ;;  %v2414_v29 = vsel %vm2346_vm11, %v2329_v26, %v9870_v28  ;;  %v2160_v50 = vsel %vm2089_vm8, %v4791_v39, %v9873_v52  ;;  %v2877_v7 = vunpack.c.h.b16 %v2752_v57  ;;  %v3508_v57 = vld [vmem:[%s9066_s2 + $0x1f8] sm:$0xff]  ;;  %v9882_v6 = vld [vmem:[#allocation246_spill] sm:$0xff] }
 0x310   :  { %3784 = vperm.xlu0 %4637, %v3496_v49   ;;  %v2499_v24 = vsel %vm2431_vm12, %v2414_v29, %v9871_v18  ;;  %v3505_v49 = vld [vmem:[%s9066_s2 + $0x1e0] sm:$0xff]  ;;  %v3510_v18 = vld [vmem:[%s9066_s2 + $0x208] sm:$0xff] }
 0x311   :  { %4535 = vmatmul.mubr.msk.bf16.gmra.mxu0 %vm2956_vm0, %v4359_v37  ;;  %v2584_v58 = vsel %vm2516_vm13, %v2499_v24, %v9872_v33  ;;  %v2931_v22 = vpack.c.b16 %v2876_v20, %v2875_v2  ;;  %v3506_v37 = vld [vmem:[%s9066_s2 + $0x1e8] sm:$0xff]  ;;  %v8491_v35 = vpop.permute.xlu1 %2079  ;;  %v9883_v41 = vld [vmem:[#allocation30_spill] sm:$0xff]  ;;  %v3511_v33 = vld [vmem:[%s9066_s2 + $0x210] sm:$0xff] }
 0x312   :  { %v2669_v1 = vsel %vm2601_vm14, %v2584_v58, %v8031_v46  ;;  %v2246_v46 = vsel %vm2176_vm9, %v2160_v50, %v9874_v16  ;;  %v2078_v56 = vpop.permute.xlu0 %2077  ;;  %v9887_v39 = vld [vmem:[#allocation202_spill] sm:$0xff] }
 0x313   :  { %3789 = vperm.xlu1 %4638, %v3497_v54   ;;  %v2754_v21 = vsel %vm2686_vm15, %v2669_v1, %v2072_v3  ;;  %v2331_v38 = vsel %vm2261_vm10, %v2246_v46, %v9875_v43  ;;  %v9885_v1 = vld [vmem:[#allocation121_spill] sm:$0xff]  ;;  %v3513_v46 = vld [vmem:[%s9066_s2 + $0x220] sm:$0xff] }
 0x314   :  { %3794 = vperm.xlu0 %4637, %v3498_v40   ;;  %4575 = vmatmul.mubr.msk.bf16.gmra.mxu1 %vm2956_vm0, %v2930_v30  ;;  %v2878_v12 = vunpack.c.l.b16 %v2754_v21  ;;  %v2416_v15 = vsel %vm2346_vm11, %v2331_v38, %v9876_v34  ;;  %v4792_v40 = vld [vmem:[%s9064_s0 + $0x128] sm:$0xff]   ;;  %v2879_v3 = vunpack.c.h.b16 %v2754_v21  ;;  %v3512_v21 = vld [vmem:[%s9066_s2 + $0x218] sm:$0xff]  ;;  %v9889_v38 = vld [vmem:[#allocation26_spill] sm:$0xff] }
 0x315   :  { %4578 = vmatprep.mubr.msk.bf16.mxu1 %vm4849_vm5, %v9698_v31  ;;  %v2501_v54 = vsel %vm2431_vm12, %v2416_v15, %v9877_v61  ;;  %v2162_v30 = vsel %vm2089_vm8, %v4792_v40, %v9879_v9  ;;  %v8519_v20 = vpop.permute.xlu1 %2083  ;;  %v3514_v15 = vld [vmem:[%s9066_s2 + $0x228] sm:$0xff]  ;;  %v9892_v9 = vld [vmem:[#allocation150_spill] sm:$0xff] }
 0x316   :  { %v2586_v44 = vsel %vm2516_vm13, %v2501_v54, %v9878_v36  ;;  %v2932_v17 = vpack.c.b16 %v2878_v12, %v2877_v7  ;;  %v8523_v29 = vpop.permute.xlu0 %2081  ;;  %v9890_v7 = vld [vmem:[#allocation192_spill] sm:$0xff] }
 0x317   :  { %3799 = vperm.xlu1 %4638, %v3499_v23   ;;  %v2671_v32 = vsel %vm2601_vm14, %v2586_v44, %v8060_v51  ;;  %v9880_v51 = vld [vmem:[#allocation148_spill] sm:$0xff] }
 0x318   :  { %3804 = vperm.xlu0 %4637, %v3500_v63   ;;  %v2756_v19 = vsel %vm2686_vm15, %v2671_v32, %v2074_v45  ;;  %v2248_v23 = vsel %vm2176_vm9, %v2162_v30, %v9880_v51  ;;  %v9888_v45 = vld [vmem:[#allocation249_spill] sm:$0xff]  ;;  %v3515_v44 = vld [vmem:[%s9066_s2 + $0x230] sm:$0xff] }
 0x319   :  { %v2333_v14 = vsel %vm2261_vm10, %v2248_v23, %v9881_v55  ;;  %v2880_v5 = vunpack.c.l.b16 %v2756_v19  ;;  %v8549_v16 = vpop.permute.xlu1 %2087  ;;  %v9891_v32 = vld [vmem:[#allocation120_spill] sm:$0xff]  ;;  %v9893_v51 = vld [vmem:[#allocation201_spill] sm:$0xff] }
 0x31a   :  { %v2418_v63 = vsel %vm2346_vm11, %v2333_v14, %v9882_v6  ;;  %v8556_v43 = vpop.permute.xlu0 %2085  ;;  %v3516_v55 = vld [vmem:[%s9066_s2 + $0x238] sm:$0xff]  ;;  %v3517_v6 = vld [vmem:[%s9066_s2 + $0x240] sm:$0xff] }
 0x31b   :  { %3809 = vperm.xlu1 %4638, %v3501_v8   ;;  %v2503_v26 = vsel %vm2431_vm12, %v2418_v63, %v9883_v41  ;;  %v9884_v8 = vld [vmem:[#allocation50_spill] sm:$0xff]  ;;  %v2933_v2 = vpack.c.b16 %v2880_v5, %v2879_v3  ;;  %v9895_v63 = vld [vmem:[#allocation27_spill] sm:$0xff] }
 0x31c   :  { %3814 = vperm.xlu0 %4637, %v3502_v4   ;;  %4579 = vmatmul.mubr.msk.bf16.gmra.mxu1 %vm2956_vm0, %v2931_v22  ;;  %v2588_v28 = vsel %vm2516_vm13, %v2503_v26, %v9884_v8  ;;  %v4793_v4 = vld [vmem:[%s9064_s0 + $0x130] sm:$0xff]  }
 0x31d   :  { %4582 = vmatprep.mubr.msk.bf16.mxu1 %vm4849_vm5, %v9698_v31  ;;  %v2673_v24 = vsel %vm2601_vm14, %v2588_v28, %v8093_v47  ;;  %v2164_v22 = vsel %vm2089_vm8, %v4793_v4, %v9885_v1  ;;  %v3518_v1 = vld [vmem:[%s9066_s2 + $0x248] sm:$0xff] }
 0x31e   :  { %v2758_v58 = vsel %vm2686_vm15, %v2673_v24, %v2076_v10  ;;  %v2881_v10 = vunpack.c.h.b16 %v2756_v19  ;;  %v9896_v24 = vld [vmem:[#allocation51_spill] sm:$0xff] }
 0x31f   :  { %3819 = vperm.xlu1 %4638, %v3503_v25   ;;  %v9886_v25 = vld [vmem:[#allocation151_spill] sm:$0xff]  ;;  %v2882_v50 = vunpack.c.l.b16 %v2758_v58  ;;  %v2883_v3 = vunpack.c.h.b16 %v2758_v58 }
 0x320   :  { %3824 = vperm.xlu0 %4637, %v3504_v48   ;;  %v2250_v47 = vsel %vm2176_vm9, %v2164_v22, %v9886_v25 }
 0x321   :  { %v2335_v52 = vsel %vm2261_vm10, %v2250_v47, %v9887_v39  ;;  %v2934_v54 = vpack.c.b16 %v2882_v50, %v2881_v10  ;;  %v4795_v39 = vld [vmem:[%s9064_s0 + $0x140] sm:$0xff]  }
 0x322   :  { %v2420_v48 = vsel %vm2346_vm11, %v2335_v52, %v9888_v45  ;;  %v9897_v52 = vld [vmem:[#allocation123_spill] sm:$0xff] }
 0x323   :  { %3829 = vperm.xlu1 %4638, %v3505_v49   ;;  %v2505_v12 = vsel %vm2431_vm12, %v2420_v48, %v9889_v38  ;;  %v2168_v50 = vsel %vm2089_vm8, %v4795_v39, %v9897_v52 }
 0x324   :  { %3834 = vperm.xlu0 %4637, %v3506_v37   ;;  %4583 = vmatmul.mubr.msk.bf16.gmra.mxu1 %vm2956_vm0, %v2932_v17  ;;  %v2590_v49 = vsel %vm2516_vm13, %v2505_v12, %v9890_v7  ;;  %v4794_v37 = vld [vmem:[%s9064_s0 + $0x138] sm:$0xff]   ;;  %v9899_v7 = vld [vmem:[#allocation204_spill] sm:$0xff] }
 0x325   :  { %4586 = vmatprep.mubr.msk.bf16.mxu1 %vm4849_vm5, %v9698_v31  ;;  %v2675_v61 = vsel %vm2601_vm14, %v2590_v49, %v8120_v13  ;;  %v2166_v17 = vsel %vm2089_vm8, %v4794_v37, %v9891_v32  ;;  %v9900_v37 = vld [vmem:[#allocation251_spill] sm:$0xff] }
 0x326   :  { %v3535_v36 = vpop.permute.xlu1 %3534  ;;  %v2252_v13 = vsel %vm2176_vm9, %v2166_v17, %v9892_v9 }
 0x327   :  { %3839 = vperm.xlu1 %4638, %v3507_v27   ;;  %v8576_v27 = vsel %vm2686_vm15, %v2675_v61, %v2078_v56  ;;  %v3530_v19 = vpop.permute.xlu0 %3529  ;;  %v2337_v23 = vsel %vm2261_vm10, %v2252_v13, %v9893_v51  ;;  %v9894_v56 = vld [vmem:[#allocation248_spill] sm:$0xff]  ;;  %v9902_v51 = vld [vmem:[#allocation59_spill] sm:$0xff] }
 0x328   :  { %3844 = vperm.xlu0 %4637, %v3508_v57   ;;  %v2422_v14 = vsel %vm2346_vm11, %v2337_v23, %v9894_v56  ;;  %v2884_v5 = vunpack.c.l.b16 %v8576_v27  ;;  %v2885_v61 = vunpack.c.h.b16 %v8576_v27 }
 0x329   :  { %v2507_v41 = vsel %vm2431_vm12, %v2422_v14, %v9895_v63 }
 0x32a   :  { %v2935_v25 = vpack.c.b16 %v2884_v5, %v2883_v3  ;;  %v9903_v3 = vld [vmem:[#allocation122_spill] sm:$0xff] }
 0x32b   :  { %3849 = vperm.xlu1 %4638, %v3509_v11   ;;  %v3545_v48 = vpop.permute.xlu0 %3544 }
 0x32c   :  { %3854 = vperm.xlu0 %4637, %v3510_v18   ;;  %4587 = vmatmul.mubr.msk.bf16.gmra.mxu1 %vm2956_vm0, %v2933_v2  ;;  %v2592_v2 = vsel %vm2516_vm13, %v2507_v41, %v9896_v24 }
 0x32d   :  { %4590 = vmatprep.mubr.msk.bf16.mxu1 %vm4849_vm5, %v9698_v31  ;;  %v2677_v22 = vsel %vm2601_vm14, %v2592_v2, %v8153_v62  ;;  %v9898_v62 = vld [vmem:[#allocation153_spill] sm:$0xff] }
 0x32e   :  { %v8613_v10 = vsel %vm2686_vm15, %v2677_v22, %v8491_v35  ;;  %v2254_v45 = vsel %vm2176_vm9, %v2168_v50, %v9898_v62  ;;  %v3520_v35 = vld [vmem:[%s9066_s2 + $0x258] sm:$0xff]  ;;  %v9907_v50 = vld [vmem:[#allocation34_spill] sm:$0xff] }
 0x32f   :  { %3859 = vperm.xlu1 %4638, %v3511_v33   ;;  %v3540_v33 = vpop.permute.xlu1 %3539  ;;  %v2339_v49 = vsel %vm2261_vm10, %v2254_v45, %v9899_v7  ;;  %v3555_v14 = vpop.permute.xlu0 %3554  ;;  %v2887_v62 = vunpack.c.h.b16 %v8613_v10 }
 0x330   :  { %3864 = vperm.xlu0 %4637, %v3512_v21   ;;  %v3519_v21 = vld [vmem:[%s9066_s2 + $0x250] sm:$0xff]  ;;  %v2424_v32 = vsel %vm2346_vm11, %v2339_v49, %v9900_v37 }
 0x331   :  { %v3118_v34 = vpop.f32.mrf.mxu0 }
 0x332   :  { %v3937_v30 = vmul.f32 %v3530_v19, %v3118_v34 }
 0x333   :  { %3869 = vperm.xlu1 %4638, %v3513_v46   ;;  %v4456_v40 = vpop.f32.mrf.mxu0  ;;  %v3550_v17 = vpop.permute.xlu1 %3549 }
 0x334   :  { %3874 = vperm.xlu0 %4637, %v3514_v15   ;;  %4591 = vmatmul.mubr.msk.bf16.gmra.mxu1 %vm2956_vm0, %v2934_v54  ;;  %v4101_v8 = vmul.f32 %v3937_v30, %v3118_v34  ;;  %v2886_v15 = vunpack.c.l.b16 %v8613_v10  ;;  %v9901_v40 = vld [vmem:[#allocation28_spill] sm:$0xff]  ;;  %v3565_v45 = vpop.permute.xlu0 %3564 }
 0x335   :  { %v3121_v57 = vpop.f32.mrf.mxu0  ;;  %4594 = vmatprep.mubr.msk.bf16.mxu1 %vm4849_vm5, %v9698_v31  ;;  %v2509_v9 = vsel %vm2431_vm12, %v2424_v32, %v9901_v40  ;;  %v4797_v10 = vld [vmem:[%s9064_s0 + $0x150] sm:$0xff]  }
 0x336   :  { %v3938_v11 = vmul.f32 %v3535_v36, %v3121_v57  ;;  %v2594_v27 = vsel %vm2516_vm13, %v2509_v9, %v9902_v51  ;;  %v2936_v56 = vpack.c.b16 %v2886_v15, %v2885_v61 }
 0x337   :  { %3879 = vperm.xlu1 %4638, %v3515_v44   ;;  %v4457_v26 = vpop.f32.mrf.mxu0  ;;  %v3521_v44 = vld [vmem:[%s9066_s2 + $0x260] sm:$0xff]  ;;  %v3560_v2 = vpop.permute.xlu1 %3559 }
 0x338   :  { %v4019_v28 = vadd.f32 %v3938_v11, %v3937_v30  ;;  %v4102_v18 = vmul.f32 %v3938_v11, %v3121_v57  ;;  %3884 = vperm.xlu0 %4637, %v3516_v55   ;;  %v3522_v57 = vld [vmem:[%s9066_s2 + $0x268] sm:$0xff]  ;;  %v2679_v55 = vsel %vm2601_vm14, %v2594_v27, %v8182_v53 }
 0x339   :  { %v3126_v4 = vpop.f32.mrf.mxu0  ;;  %v8646_v63 = vsel %vm2686_vm15, %v2679_v55, %v8523_v29  ;;  %v4796_v26 = vld [vmem:[%s9064_s0 + $0x148] sm:$0xff]   ;;  %v3524_v29 = vld [vmem:[%s9066_s2 + $0x278] sm:$0xff]  ;;  %s4853_s0 = smov [#allocation2]  }
 0x33a   :  { %v4183_v47 = vadd.f32 %v4102_v18, %v4101_v8  ;;  %v3939_v58 = vmul.f32 %v3540_v33, %v3126_v4  ;;  %v2170_v53 = vsel %vm2089_vm8, %v4796_v26, %v9903_v3  ;;  %v9904_v18 = vld [vmem:[#allocation152_spill] sm:$0xff]  ;;  %v2888_v22 = vunpack.c.l.b16 %v8646_v63 }
 0x33b   :  { %3889 = vperm.xlu1 %4638, %v3517_v6   ;;  %v4460_v46 = vpop.f32.mrf.mxu0  ;;  %v3523_v6 = vld [vmem:[%s9066_s2 + $0x270] sm:$0xff]  ;;  %v2256_v24 = vsel %vm2176_vm9, %v2170_v53, %v9904_v18  ;;  %v3570_v32 = vpop.permute.xlu1 %3569 }
 0x33c   :  { %v4020_v38 = vadd.f32 %v4019_v28, %v3939_v58  ;;  %v4103_v12 = vmul.f32 %v3939_v58, %v3126_v4  ;;  %3894 = vperm.xlu0 %4637, %v3518_v1   ;;  %4595 = vmatmul.mubr.msk.bf16.gmra.mxu1 %vm2956_vm0, %v2935_v25  ;;  %v9905_v4 = vld [vmem:[#allocation203_spill] sm:$0xff]  ;;  %v3525_v58 = vld [vmem:[%s9066_s2 + $0x280] sm:$0xff]  ;;  %v2937_v15 = vpack.c.b16 %v2888_v22, %v2887_v62 }
 0x33d   :  { %v3129_v34 = vpop.f32.mrf.mxu0  ;;  %4598 = vmatprep.mubr.msk.bf16.mxu1 %vm4849_vm5, %v9698_v31  ;;  %v2341_v1 = vsel %vm2261_vm10, %v2256_v24, %v9905_v4 }
 0x33e   :  { %v4184_v54 = vadd.f32 %v4183_v47, %v4103_v12  ;;  %v3940_v36 = vmul.f32 %v3545_v48, %v3129_v34  ;;  %v9908_v12 = vld [vmem:[#allocation195_spill] sm:$0xff] }
 0x33f   :  { %3899 = vperm.xlu1 %4638, %v3519_v21   ;;  %v4461_v19 = vpop.f32.mrf.mxu0  ;;  %v9906_v21 = vld [vmem:[#allocation250_spill] sm:$0xff]  ;;  %v3580_v53 = vpop.permute.xlu1 %3579 }
 0x340   :  { %v4021_v13 = vadd.f32 %v4020_v38, %v3940_v36  ;;  %v4104_v30 = vmul.f32 %v3940_v36, %v3129_v34  ;;  %3904 = vperm.xlu0 %4637, %v3520_v35   ;;  %v2426_v39 = vsel %vm2346_vm11, %v2341_v1, %v9906_v21  ;;  %v3526_v34 = vld [vmem:[%s9066_s2 + $0x288] sm:$0xff]  ;;  %v9909_v36 = vld [vmem:[#allocation125_spill] sm:$0xff]  ;;  %s4271_s2 = sshll.u32 %s4853_s0, 4  ;;  %s4272_s2 = int_to_ptr.vmem [resolvable:$true] %s4271_s2 }
 0x341   :  { %v3134_v23 = vpop.f32.mrf.mxu0  ;;  %v2511_v46 = vsel %vm2431_vm12, %v2426_v39, %v9907_v50  ;;  %v9910_v19 = vld [vmem:[#allocation155_spill] sm:$0xff]  ;;  %s4798_s28 = scalar_lea.vmem %s4272_s2, 128  ;;  %p4803_p1 = scmp.lt.s32.totalorder %s4272_s2, %s4272_s2 }
 0x342   :  { %v4185_v5 = vadd.f32 %v4184_v54, %v4104_v30  ;;  %v3941_v11 = vmul.f32 %v3550_v17, %v3134_v23  ;;  %v2596_v7 = vsel %vm2516_vm13, %v2511_v46, %v9908_v12  ;;  %p4799_p0 = scmp.ne.s32.totalorder %s4272_s2, %s4798_s28  ;;  %p4804_p2 = scmp.lt.s32.totalorder %s4798_s28, %s4798_s28 }
 0x343   :  { %3909 = vperm.xlu1 %4638, %v3521_v44   ;;  %v4464_v41 = vpop.f32.mrf.mxu0  ;;  %v2681_v35 = vsel %vm2601_vm14, %v2596_v7, %v8218_v0  ;;  %v2172_v44 = vsel %vm2089_vm8, %v4797_v10, %v9909_v36 }
 0x344   :  { %v4022_v8 = vadd.f32 %v4021_v13, %v3941_v11  ;;  %v4105_v28 = vmul.f32 %v3941_v11, %v3134_v23  ;;  %3914 = vperm.xlu0 %4637, %v3522_v57   ;;  %4599 = vmatmul.mubr.msk.bf16.gmra.mxu1 %vm2956_vm0, %v2936_v56  ;;  %v2766_v37 = vsel %vm2686_vm15, %v2681_v35, %v8519_v20  ;;  %v9911_v13 = vld [vmem:[#allocation206_spill] sm:$0xff]  ;;  %v2889_v20 = vunpack.c.h.b16 %v8646_v63  ;;  %v3575_v23 = vpop.permute.xlu0 %3574  ;;  %v9912_v56 = vld [vmem:[#allocation253_spill] sm:$0xff]  ;;  %p4805_p3 = por %p4804_p2, %p4803_p1 }
 0x345   :  { %v3137_v33 = vpop.f32.mrf.mxu0  ;;  %4602 = vmatprep.mubr.msk.bf16.mxu1 %vm4849_vm5, %v9698_v31  ;;  %v2258_v40 = vsel %vm2176_vm9, %v2172_v44, %v9910_v19  ;;  %v2890_v27 = vunpack.c.l.b16 %v2766_v37  ;;  %v9913_v11 = vld [vmem:[#allocation29_spill] sm:$0xff]  ;;  %v2891_v21 = vunpack.c.h.b16 %v2766_v37 }
 0x346   :  { %v4186_v25 = vadd.f32 %v4185_v5, %v4105_v28  ;;  %v3942_v47 = vmul.f32 %v3555_v14, %v3137_v33  ;;  %v2343_v30 = vsel %vm2261_vm10, %v2258_v40, %v9911_v13  ;;  %p4806_p4 = pnand %p4805_p3, %p4799_p0 }
 0x347   :  { %3919 = vperm.xlu1 %4638, %v3523_v6   ;;  %v4465_v52 = vpop.f32.mrf.mxu0  ;;  %v2428_v14 = vsel %vm2346_vm11, %v2343_v30, %v9912_v56  ;;  %v2938_v28 = vpack.c.b16 %v2890_v27, %v2889_v20 }
 0x348   :  { %v4023_v48 = vadd.f32 %v4022_v8, %v3942_v47  ;;  %v4106_v38 = vmul.f32 %v3942_v47, %v3137_v33  ;;  %3924 = vperm.xlu0 %4637, %v3524_v29   ;;  %v2513_v6 = vsel %vm2431_vm12, %v2428_v14, %v9913_v11  ;;  %v3585_v29 = vpop.permute.xlu0 %3584 }
 0x349   :  { %v3142_v49 = vpop.f32.mrf.mxu0  ;;  %v2598_v3 = vsel %vm2516_vm13, %v2513_v6, %v7442_v59 }
 0x34a   :  { %v4187_v61 = vadd.f32 %v4186_v25, %v4106_v38  ;;  %v3943_v54 = vmul.f32 %v3560_v2, %v3142_v49  ;;  %v2683_v63 = vsel %vm2601_vm14, %v2598_v3, %v8251_v42  ;;  %v8707_v42 = vpop.permute.xlu1 %3589 }
 0x34b   :  { %3929 = vperm.xlu1 %4638, %v3525_v58   ;;  %v4468_v17 = vpop.f32.mrf.mxu0  ;;  %v2768_v2 = vsel %vm2686_vm15, %v2683_v63, %v8556_v43 }
 0x34c   :  { %v4024_v9 = vadd.f32 %v4023_v48, %v3943_v54  ;;  %v4107_v0 = vmul.f32 %v3943_v54, %v3142_v49  ;;  %3934 = vperm.xlu0 %4637, %v3526_v34   ;;  %4603 = vmatmul.mubr.msk.bf16.gmra.mxu1 %vm2956_vm0, %v2937_v15  ;;  %v2892_v59 = vunpack.c.l.b16 %v2768_v2  ;;  %v8709_v46 = vpop.permute.xlu0 %3594  ;;  %v2770_v48 = vsel %vm2686_vm15, %v8298_v60, %v8549_v16 }
 0x34d   :  { %v3145_v51 = vpop.f32.mrf.mxu0  ;;  %4606 = vmatprep.mubr.msk.bf16.mxu1 %vm4849_vm5, %v9698_v31  ;;  %v2894_v35 = vunpack.c.l.b16 %v2770_v48  ;;  %v2893_v15 = vunpack.c.h.b16 %v2768_v2 }
 0x34e   :  { %v4188_v57 = vadd.f32 %v4187_v61, %v4107_v0  ;;  %v3944_v55 = vmul.f32 %v3565_v45, %v3145_v51  ;;  %v2939_v50 = vpack.c.b16 %v2892_v59, %v2891_v21  ;;  %v8717_v49 = vpop.permute.xlu1 %3599 }
 0x34f   :  { %v4469_v5 = vpop.f32.mrf.mxu0  ;;  %v2940_v44 = vpack.c.b16 %v2894_v35, %v2893_v15 }
 0x350   :  { %v4025_v41 = vadd.f32 %v4024_v9, %v3944_v55  ;;  %v4108_v26 = vmul.f32 %v3944_v55, %v3145_v51  ;;  %v8723_v36 = vpop.permute.xlu0 %3604 }
 0x351   :  { %v3150_v8 = vpop.f32.mrf.mxu0 }
 0x352   :  { %v4189_v18 = vadd.f32 %v4188_v57, %v4108_v26  ;;  %v3945_v24 = vmul.f32 %v3570_v32, %v3150_v8  ;;  %v8730_v32 = vpop.permute.xlu1 %3609 }
 0x353   :  { %v4472_v33 = vpop.f32.mrf.mxu0 }
 0x354   :  { %v4026_v4 = vadd.f32 %v4025_v41, %v3945_v24  ;;  %v4109_v1 = vmul.f32 %v3945_v24, %v3150_v8  ;;  %4607 = vmatmul.mubr.msk.bf16.gmra.mxu1 %vm2956_vm0, %v2938_v28  ;;  %v8735_v19 = vpop.permute.xlu0 %3614 }
 0x355   :  { %v3153_v22 = vpop.f32.mrf.mxu0  ;;  %4610 = vmatprep.mubr.msk.bf16.mxu1 %vm4849_vm5, %v9698_v31 }
 0x356   :  { %v4190_v25 = vadd.f32 %v4189_v18, %v4109_v1  ;;  %v3946_v47 = vmul.f32 %v3575_v23, %v3153_v22  ;;  %v8737_v9 = vpop.permute.xlu1 %3619 }
 0x357   :  { %v4473_v58 = vpop.f32.mrf.mxu0 }
 0x358   :  { %v4027_v39 = vadd.f32 %v4026_v4, %v3946_v47  ;;  %v4110_v52 = vmul.f32 %v3946_v47, %v3153_v22  ;;  %v8741_v30 = vpop.permute.xlu0 %3624 }
 0x359   :  { %v3158_v43 = vpop.f32.mrf.mxu0 }
 0x35a   :  { %v4191_v62 = vadd.f32 %v4190_v25, %v4110_v52  ;;  %v3947_v45 = vmul.f32 %v3580_v53, %v3158_v43  ;;  %v8745_v27 = vpop.permute.xlu1 %3629 }
 0x35b   :  { %v4476_v38 = vpop.f32.mrf.mxu0 }
 0x35c   :  { %v8714_v12 = vadd.f32 %v4027_v39, %v3947_v45  ;;  %v4111_v7 = vmul.f32 %v3947_v45, %v3158_v43  ;;  %4611 = vmatmul.mubr.msk.bf16.gmra.mxu1 %vm2956_vm0, %v2939_v50  ;;  %v8749_v57 = vpop.permute.xlu0 %3634 }
 0x35d   :  { %v3161_v34 = vpop.f32.mrf.mxu0  ;;  %4614 = vmatprep.mubr.msk.bf16.mxu1 %vm4849_vm5, %v9698_v31 }
 0x35e   :  { %v4192_v61 = vadd.f32 %v4191_v62, %v4111_v7  ;;  %v8721_v54 = vmul.f32 %v3585_v29, %v3161_v34  ;;  %v8751_v56 = vpop.permute.xlu1 %3639 }
 0x35f   :  { %v4477_v10 = vpop.f32.mrf.mxu0 }
 0x360   :  { %v4112_v60 = vmul.f32 %v8721_v54, %v3161_v34  ;;  %v8755_v11 = vpop.permute.xlu0 %3644 }
 0x361   :  { %v8726_v16 = vpop.f32.mrf.mxu0 }
 0x362   :  { %v8728_v37 = vadd.f32 %v4192_v61, %v4112_v60  ;;  %v8759_v41 = vpop.permute.xlu1 %3649  ;;  %v3949_v15 = vmul.f32 %v8707_v42, %v8726_v16 }
 0x363   :  { %v4480_v17 = vpop.f32.mrf.mxu0 }
 0x364   :  { %4615 = vmatmul.mubr.msk.bf16.gmra.mxu1 %vm2956_vm0, %v2940_v44  ;;  %v8763_v53 = vpop.permute.xlu0 %3654 }
 0x365   :  { %v8733_v31 = vpop.f32.mrf.mxu0 }
 0x366   :  { %v8765_v63 = vpop.permute.xlu1 %3659  ;;  %v3950_v44 = vmul.f32 %v8709_v46, %v8733_v31 }
 0x367   :  { %v4481_v40 = vpop.f32.mrf.mxu0 }
 0x368   :  { %v8769_v24 = vpop.permute.xlu0 %3664 }
 0x369   :  { %v8739_v0 = vpop.f32.mrf.mxu0 }
 0x36a   :  { %v8773_v33 = vpop.permute.xlu1 %3669 }
 0x36b   :  { %v4484_v13 = vpop.f32.mrf.mxu0 }
 0x36c   :  { %v8777_v1 = vpop.permute.xlu0 %3674  ;;  %v4029_v13 = vadd.f32 %v8714_v12, %v8721_v54 }
 0x36d   :  { %v8743_v51 = vpop.f32.mrf.mxu0 }
 0x36e   :  { %v8781_v25 = vpop.permute.xlu1 %3679  ;;  %v3952_v46 = vmul.f32 %v8723_v36, %v8743_v51 }
 0x36f   :  { %v4485_v20 = vpop.f32.mrf.mxu0 }
 0x370   :  { %v8785_v39 = vpop.permute.xlu0 %3684  ;;  %v4113_v20 = vmul.f32 %v3949_v15, %v8726_v16  ;;  %v4116_v36 = vmul.f32 %v3952_v46, %v8743_v51 }
 0x371   :  { %v8747_v23 = vpop.f32.mrf.mxu0 }
 0x372   :  { %v8791_v62 = vpop.permute.xlu1 %3689  ;;  %v4194_v54 = vadd.f32 %v8728_v37, %v4113_v20 }
 0x373   :  { %v4488_v55 = vpop.f32.mrf.mxu0 }
 0x374   :  { %v8797_v7 = vpop.permute.xlu0 %3694  ;;  %v3951_v55 = vmul.f32 %v8717_v49, %v8739_v0 }
 0x375   :  { %v8753_v14 = vpop.f32.mrf.mxu0 }
 0x376   :  { %v8803_v10 = vpop.permute.xlu1 %3699  ;;  %v4115_v49 = vmul.f32 %v3951_v55, %v8739_v0 }
 0x377   :  { %v4489_v5 = vpop.f32.mrf.mxu0 }
 0x378   :  { %v8814_v42 = vpop.permute.xlu0 %3704 }
 0x379   :  { %v8757_v6 = vpop.f32.mrf.mxu0 }
 0x37b   :  { %v4492_v26 = vpop.f32.mrf.mxu0 }
 0x37d   :  { %v8761_v3 = vpop.f32.mrf.mxu0 }
 0x37f   :  { %v4493_v8 = vpop.f32.mrf.mxu0 }
 0x380   :  { %v4030_v8 = vadd.f32 %v4029_v13, %v3949_v15 }
 0x381   :  { %v8767_v28 = vpop.f32.mrf.mxu0 }
 0x382   :  { %v4031_v16 = vadd.f32 %v4030_v8, %v3950_v44 }
 0x383   :  { %v4496_v18 = vpop.f32.mrf.mxu0 }
 0x384   :  { %v4114_v18 = vmul.f32 %v3950_v44, %v8733_v31 }
 0x385   :  { %v8771_v2 = vpop.f32.mrf.mxu0 }
 0x386   :  { %v4195_v31 = vadd.f32 %v4194_v54, %v4114_v18  ;;  %v3957_v54 = vmul.f32 %v8745_v27, %v8767_v28 }
 0x387   :  { %v4497_v29 = vpop.f32.mrf.mxu0 }
 0x388   :  { %v4196_v44 = vadd.f32 %v4195_v31, %v4115_v49 }
 0x389   :  { %v8775_v4 = vpop.f32.mrf.mxu0 }
 0x38a   :  { %v4197_v51 = vadd.f32 %v4196_v44, %v4116_v36  ;;  %v3959_v27 = vmul.f32 %v8751_v56, %v8775_v4 }
 0x38b   :  { %v4500_v22 = vpop.f32.mrf.mxu0 }
 0x38c   :  { %v8779_v59 = vpop.f32.mrf.mxu1  ;;  %v8823_v22 = vpop.permute.xlu1 %3709 }
 0x38d   :  { %v8783_v47 = vpop.f32.mrf.mxu0 }
 0x38e   :  { %v4540_v58 = vpop.f32.mrf.mxu1 }
 0x38f   :  { %v4501_v21 = vpop.f32.mrf.mxu0  ;;  %v3953_v58 = vmul.f32 %v8730_v32, %v8747_v23  ;;  %v3955_v32 = vmul.f32 %v8737_v9, %v8757_v6 }
 0x390   :  { %v8787_v52 = vpop.f32.mrf.mxu1  ;;  %v8843_v13 = vpop.permute.xlu1 %3719 }
 0x391   :  { %v8789_v43 = vpop.f32.mrf.mxu0  ;;  %v4119_v9 = vmul.f32 %v3955_v32, %v8757_v6 }
 0x392   :  { %v4541_v50 = vpop.f32.mrf.mxu1  ;;  %v3961_v56 = vmul.f32 %v8759_v41, %v8789_v43 }
 0x393   :  { %v4504_v45 = vpop.f32.mrf.mxu0 }
 0x394   :  { %v8793_v48 = vpop.f32.mrf.mxu1  ;;  %v4032_v45 = vadd.f32 %v4031_v16, %v3951_v55  ;;  %v8862_v36 = vpop.permute.xlu1 %3729  ;;  %v4125_v41 = vmul.f32 %v3961_v56, %v8789_v43 }
 0x395   :  { %v8795_v38 = vpop.f32.mrf.mxu0 }
 0x396   :  { %v4544_v34 = vpop.f32.mrf.mxu1  ;;  %v4033_v0 = vadd.f32 %v4032_v45, %v3952_v46 }
 0x397   :  { %v4505_v35 = vpop.f32.mrf.mxu0  ;;  %v8834_v34 = vpop.permute.xlu0 %3714 }
 0x398   :  { %v8801_v61 = vpop.f32.mrf.mxu1  ;;  %v3954_v35 = vmul.f32 %v8735_v19, %v8753_v14  ;;  %v4034_v55 = vadd.f32 %v4033_v0, %v3953_v58  ;;  %v3956_v19 = vmul.f32 %v8741_v30, %v8761_v3  ;;  %v3958_v30 = vmul.f32 %v8749_v57, %v8771_v2 }
 0x399   :  { %v8805_v60 = vpop.f32.mrf.mxu0 }
 0x39a   :  { %v4545_v17 = vpop.f32.mrf.mxu1  ;;  %v4118_v8 = vmul.f32 %v3954_v35, %v8753_v14  ;;  %v4120_v31 = vmul.f32 %v3956_v19, %v8761_v3  ;;  %v4122_v57 = vmul.f32 %v3958_v30, %v8771_v2 }
 0x39b   :  { %v4508_v40 = vpop.f32.mrf.mxu0  ;;  %v4117_v17 = vmul.f32 %v3953_v58, %v8747_v23  ;;  %v8850_v23 = vpop.permute.xlu0 %3724 }
 0x39c   :  { %v8816_v5 = vpop.f32.mrf.mxu1 }
 0x39d   :  { %v8818_v26 = vpop.f32.mrf.mxu0 }
 0x39e   :  { %v4548_v29 = vpop.f32.mrf.mxu1 }
 0x39f   :  { %v4509_v12 = vpop.f32.mrf.mxu0  ;;  %v4198_v29 = vadd.f32 %v4197_v51, %v4117_v17  ;;  %v8871_v17 = vpop.permute.xlu0 %3734  ;;  %v3960_v51 = vmul.f32 %v8755_v11, %v8783_v47  ;;  %v3962_v11 = vmul.f32 %v8763_v53, %v8795_v38  ;;  %v3964_v53 = vmul.f32 %v8769_v24, %v8818_v26 }
 0x3a0   :  { %v8829_v21 = vpop.f32.mrf.mxu1  ;;  %v4035_v12 = vadd.f32 %v4034_v55, %v3954_v35 }
 0x3a1   :  { %v8831_v50 = vpop.f32.mrf.mxu0  ;;  %v4199_v58 = vadd.f32 %v4198_v29, %v4118_v8  ;;  %v8881_v29 = vpop.permute.xlu1 %3739  ;;  %v4128_v24 = vmul.f32 %v3964_v53, %v8818_v26 }
 0x3a2   :  { %v4549_v37 = vpop.f32.mrf.mxu1  ;;  %v4036_v14 = vadd.f32 %v4035_v12, %v3955_v32 }
 0x3a3   :  { %v4512_v15 = vpop.f32.mrf.mxu0  ;;  %v4200_v37 = vadd.f32 %v4199_v58, %v4119_v9 }
 0x3a4   :  { %v8841_v40 = vpop.f32.mrf.mxu1  ;;  %v4037_v6 = vadd.f32 %v4036_v14, %v3956_v19  ;;  %v4121_v15 = vmul.f32 %v3957_v54, %v8767_v28 }
 0x3a5   :  { %v8845_v20 = vpop.f32.mrf.mxu0  ;;  %v4201_v3 = vadd.f32 %v4200_v37, %v4120_v31  ;;  %v8888_v31 = vpop.permute.xlu0 %3744 }
 0x3a6   :  { %v4552_v18 = vpop.f32.mrf.mxu1  ;;  %v4038_v32 = vadd.f32 %v4037_v6, %v3957_v54  ;;  %v4124_v54 = vmul.f32 %v3960_v51, %v8783_v47  ;;  %v4126_v47 = vmul.f32 %v3962_v11, %v8795_v38 }
 0x3a7   :  { %v4513_v46 = vpop.f32.mrf.mxu0  ;;  %v4202_v19 = vadd.f32 %v4201_v3, %v4121_v15  ;;  %v4123_v18 = vmul.f32 %v3959_v27, %v8775_v4  ;;  %v8898_v3 = vpop.permute.xlu1 %3749 }
 0x3a8   :  { %v8855_v16 = vpop.f32.mrf.mxu1  ;;  %v4039_v28 = vadd.f32 %v4038_v32, %v3958_v30 }
 0x3a9   :  { %v8857_v49 = vpop.f32.mrf.mxu0  ;;  %v4203_v9 = vadd.f32 %v4202_v19, %v4122_v57  ;;  %v8905_v19 = vpop.permute.xlu0 %3754 }
 0x3aa   :  { %v4553_v45 = vpop.f32.mrf.mxu1  ;;  %v4040_v2 = vadd.f32 %v4039_v28, %v3959_v27 }
 0x3ab   :  { %v4516_v35 = vpop.f32.mrf.mxu0  ;;  %v4204_v4 = vadd.f32 %v4203_v9, %v4123_v18  ;;  %v3963_v45 = vmul.f32 %v8765_v63, %v8805_v60  ;;  %v3965_v63 = vmul.f32 %v8773_v33, %v8831_v50  ;;  %v3966_v18 = vmul.f32 %v8777_v1, %v8845_v20 }
 0x3ac   :  { %v8867_v44 = vpop.f32.mrf.mxu1  ;;  %v4041_v30 = vadd.f32 %v4040_v2, %v3960_v51  ;;  %v3967_v33 = vmul.f32 %v8781_v25, %v8857_v49 }
 0x3ad   :  { %v8869_v0 = vpop.f32.mrf.mxu0  ;;  %v4205_v6 = vadd.f32 %v4204_v4, %v4124_v54  ;;  %v4127_v43 = vmul.f32 %v3963_v45, %v8805_v60  ;;  %v4129_v60 = vmul.f32 %v3965_v63, %v8831_v50  ;;  %v4130_v26 = vmul.f32 %v3966_v18, %v8845_v20 }
 0x3ae   :  { %v4556_v55 = vpop.f32.mrf.mxu1  ;;  %v4042_v15 = vadd.f32 %v4041_v30, %v3961_v56  ;;  %v3968_v1 = vmul.f32 %v8785_v39, %v8869_v0  ;;  %v4131_v25 = vmul.f32 %v3967_v33, %v8857_v49 }
 0x3af   :  { %v4517_v8 = vpop.f32.mrf.mxu0  ;;  %v4206_v57 = vadd.f32 %v4205_v6, %v4125_v41  ;;  %v8920_v6 = vpop.permute.xlu0 %3764 }
 0x3b0   :  { %v8879_v46 = vpop.f32.mrf.mxu1  ;;  %v4043_v51 = vadd.f32 %v4042_v15, %v3962_v11  ;;  %v4132_v20 = vmul.f32 %v3968_v1, %v8869_v0 }
 0x3b1   :  { %v8883_v12 = vpop.f32.mrf.mxu0  ;;  %v4207_v38 = vadd.f32 %v4206_v57, %v4126_v47 }
 0x3b2   :  { %v4557_v58 = vpop.f32.mrf.mxu1  ;;  %v4044_v28 = vadd.f32 %v4043_v51, %v3963_v45  ;;  %v3969_v47 = vmul.f32 %v8791_v62, %v8883_v12 }
 0x3b3   :  { %v4520_v14 = vpop.f32.mrf.mxu0  ;;  %v4208_v2 = vadd.f32 %v4207_v38, %v4127_v43  ;;  %v8915_v58 = vpop.permute.xlu1 %3759 }
 0x3b4   :  { %v8893_v35 = vpop.f32.mrf.mxu1  ;;  %v4045_v54 = vadd.f32 %v4044_v28, %v3964_v53  ;;  %v4133_v49 = vmul.f32 %v3969_v47, %v8883_v12 }
 0x3b5   :  { %v3249_v37 = vpop.f32.mrf.mxu0  ;;  %v4209_v4 = vadd.f32 %v4208_v2, %v4128_v24 }
 0x3b6   :  { %v4560_v27 = vpop.f32.mrf.mxu1  ;;  %v4046_v30 = vadd.f32 %v4045_v54, %v3965_v63  ;;  %v3970_v39 = vmul.f32 %v8797_v7, %v3249_v37 }
 0x3b7   :  { %v4521_v32 = vpop.f32.mrf.mxu0  ;;  %v4210_v50 = vadd.f32 %v4209_v4, %v4129_v60  ;;  %v8929_v43 = vpop.permute.xlu1 %3769 }
 0x3b8   :  { %v8903_v55 = vpop.f32.mrf.mxu1  ;;  %v4047_v15 = vadd.f32 %v4046_v30, %v3966_v18  ;;  %v4134_v0 = vmul.f32 %v3970_v39, %v3249_v37 }
 0x3b9   :  { %v3254_v8 = vpop.f32.mrf.mxu0  ;;  %v4211_v32 = vadd.f32 %v4210_v50, %v4130_v26 }
 0x3ba   :  { %v4561_v56 = vpop.f32.mrf.mxu1  ;;  %v4048_v57 = vadd.f32 %v4047_v15, %v3967_v33  ;;  %v3971_v24 = vmul.f32 %v8803_v10, %v3254_v8 }
 0x3bb   :  { %v4524_v9 = vpop.f32.mrf.mxu0  ;;  %v4212_v38 = vadd.f32 %v4211_v32, %v4131_v25  ;;  %v8935_v56 = vpop.permute.xlu0 %3774 }
 0x3bc   :  { %v8913_v11 = vpop.f32.mrf.mxu1  ;;  %v4049_v28 = vadd.f32 %v4048_v57, %v3968_v1  ;;  %v4135_v30 = vmul.f32 %v3971_v24, %v3254_v8  ;;  %v8941_v10 = vpop.permute.xlu1 %3779 }
 0x3bd   :  { %v3257_v14 = vpop.f32.mrf.mxu0  ;;  %v4213_v9 = vadd.f32 %v4212_v38, %v4132_v20 }
 0x3be   :  { %v4564_v41 = vpop.f32.mrf.mxu1  ;;  %v4050_v2 = vadd.f32 %v4049_v28, %v3969_v47  ;;  %v3972_v7 = vmul.f32 %v8814_v42, %v3257_v14 }
 0x3bf   :  { %v4525_v45 = vpop.f32.mrf.mxu0  ;;  %v4214_v33 = vadd.f32 %v4213_v9, %v4133_v49  ;;  %v8944_v42 = vpop.permute.xlu0 %3784 }
 0x3c0   :  { %v8925_v53 = vpop.f32.mrf.mxu1  ;;  %v4051_v4 = vadd.f32 %v4050_v2, %v3970_v39  ;;  %v4136_v50 = vmul.f32 %v3972_v7, %v3257_v14  ;;  %v8950_v28 = vpop.permute.xlu1 %3789 }
 0x3c1   :  { %v3262_v27 = vpop.f32.mrf.mxu0  ;;  %v4215_v41 = vadd.f32 %v4214_v33, %v4134_v0 }
 0x3c2   :  { %v4565_v51 = vpop.f32.mrf.mxu1  ;;  %v3973_v26 = vmul.f32 %v8823_v22, %v3262_v27  ;;  %v4052_v45 = vadd.f32 %v4051_v4, %v3971_v24 }
 0x3c3   :  { %v4528_v63 = vpop.f32.mrf.mxu0  ;;  %v4216_v47 = vadd.f32 %v4215_v41, %v4135_v30  ;;  %v8954_v0 = vpop.permute.xlu0 %3794 }
 0x3c4   :  { %v8933_v62 = vpop.f32.mrf.mxu1  ;;  %v4053_v32 = vadd.f32 %v4052_v45, %v3972_v7  ;;  %v4137_v57 = vmul.f32 %v3973_v26, %v3262_v27  ;;  %v8959_v41 = vpop.permute.xlu1 %3799  ;;  %v3979_v45 = vmul.f32 %v8881_v29, %v8779_v59  ;;  %v3981_v29 = vmul.f32 %v8898_v3, %v8793_v48 }
 0x3c5   :  { %v3265_v18 = vpop.f32.mrf.mxu0  ;;  %v4217_v39 = vadd.f32 %v4216_v47, %v4136_v50  ;;  %v3983_v3 = vmul.f32 %v8915_v58, %v8816_v5 }
 0x3c6   :  { %v4568_v54 = vpop.f32.mrf.mxu1  ;;  %v3974_v15 = vmul.f32 %v8834_v34, %v3265_v18  ;;  %v4054_v51 = vadd.f32 %v4053_v32, %v3973_v26 }
 0x3c7   :  { %v4529_v60 = vpop.f32.mrf.mxu0  ;;  %v4218_v49 = vadd.f32 %v4217_v39, %v4137_v57  ;;  %v8966_v32 = vpop.permute.xlu0 %3804 }
 0x3c8   :  { %v8939_v12 = vpop.f32.mrf.mxu1  ;;  %v4138_v63 = vmul.f32 %v3974_v15, %v3265_v18  ;;  %v4055_v24 = vadd.f32 %v4054_v51, %v3974_v15  ;;  %v4143_v51 = vmul.f32 %v3979_v45, %v8779_v59 }
 0x3c9   :  { %v3270_v1 = vpop.f32.mrf.mxu0 }
 0x3ca   :  { %v4569_v37 = vpop.f32.mrf.mxu1  ;;  %v3975_v8 = vmul.f32 %v8843_v13, %v3270_v1  ;;  %v4219_v13 = vadd.f32 %v4218_v49, %v4138_v63 }
 0x3cb   :  { %v4532_v25 = vpop.f32.mrf.mxu0  ;;  %v8981_v59 = vpop.permute.xlu0 %3814 }
 0x3cc   :  { %v8947_v22 = vpop.f32.mrf.mxu1  ;;  %v4139_v9 = vmul.f32 %v3975_v8, %v3270_v1  ;;  %v4056_v7 = vadd.f32 %v4055_v24, %v3975_v8 }
 0x3cd   :  { %v3273_v20 = vpop.f32.mrf.mxu0 }
 0x3ce   :  { %v3976_v38 = vmul.f32 %v8850_v23, %v3273_v20  ;;  %v4572_v14 = vpop.f32.mrf.mxu1  ;;  %v4220_v23 = vadd.f32 %v4219_v13, %v4139_v9 }
 0x3cf   :  { %v4533_v34 = vpop.f32.mrf.mxu0  ;;  %v8973_v14 = vpop.permute.xlu1 %3809 }
 0x3d0   :  { %v8952_v2 = vpop.f32.mrf.mxu1  ;;  %v4140_v54 = vmul.f32 %v3976_v38, %v3273_v20  ;;  %v4057_v4 = vadd.f32 %v4056_v7, %v3976_v38 }
 0x3d1   :  { %v3278_v27 = vpop.f32.mrf.mxu0 }
 0x3d2   :  { %v3977_v60 = vmul.f32 %v8862_v36, %v3278_v27  ;;  %v4573_v18 = vpop.f32.mrf.mxu1  ;;  %v4221_v50 = vadd.f32 %v4220_v23, %v4140_v54  ;;  %v3980_v36 = vmul.f32 %v8888_v31, %v8787_v52  ;;  %v3982_v31 = vmul.f32 %v8905_v19, %v8801_v61 }
 0x3d3   :  { %v4536_v33 = vpop.f32.mrf.mxu0  ;;  %v3820_v23 = vpop.permute.xlu1 %3819 }
 0x3d4   :  { %v4141_v30 = vmul.f32 %v3977_v60, %v3278_v27  ;;  %v8957_v26 = vpop.f32.mrf.mxu1  ;;  %v4058_v15 = vadd.f32 %v4057_v4, %v3977_v60  ;;  %v4144_v34 = vmul.f32 %v3980_v36, %v8787_v52  ;;  %v4145_v27 = vmul.f32 %v3981_v29, %v8793_v48 }
 0x3d5   :  { %v3281_v1 = vpop.f32.mrf.mxu0  ;;  %v4146_v60 = vmul.f32 %v3982_v31, %v8801_v61  ;;  %v3984_v52 = vmul.f32 %v8920_v6, %v8829_v21  ;;  %v4147_v48 = vmul.f32 %v3983_v3, %v8816_v5  ;;  %v3985_v4 = vmul.f32 %v8929_v43, %v8841_v40 }
 0x3d6   :  { %v3978_v37 = vmul.f32 %v8871_v17, %v3281_v1  ;;  %v4576_v25 = vpop.f32.mrf.mxu1  ;;  %v4222_v57 = vadd.f32 %v4221_v50, %v4141_v30  ;;  %v3986_v61 = vmul.f32 %v8935_v56, %v8855_v16  ;;  %v3987_v5 = vmul.f32 %v8941_v10, %v8867_v44 }
 0x3d7   :  { %v4537_v47 = vpop.f32.mrf.mxu0  ;;  %v4148_v50 = vmul.f32 %v3984_v52, %v8829_v21  ;;  %v4149_v25 = vmul.f32 %v3985_v4, %v8841_v40  ;;  %v3988_v21 = vmul.f32 %v8944_v42, %v8879_v46  ;;  %v3989_v40 = vmul.f32 %v8950_v28, %v8893_v35 }
 0x3d8   :  { %v4059_v8 = vadd.f32 %v4058_v15, %v3978_v37  ;;  %v4142_v20 = vmul.f32 %v3978_v37, %v3281_v1  ;;  %v8968_v39 = vpop.f32.mrf.mxu1 }
 0x3da   :  { %v4060_v63 = vadd.f32 %v4059_v8, %v3979_v45  ;;  %v4223_v38 = vadd.f32 %v4222_v57, %v4142_v20  ;;  %v4577_v17 = vpop.f32.mrf.mxu1  ;;  %v3825_v45 = vpop.permute.xlu0 %3824  ;;  %v4150_v8 = vmul.f32 %v3986_v61, %v8855_v16  ;;  %v3990_v16 = vmul.f32 %v8954_v0, %v8903_v55 }
 0x3db   :  { %v3830_v57 = vpop.permute.xlu1 %3829 }
 0x3dc   :  { %v4061_v49 = vadd.f32 %v4060_v63, %v3980_v36  ;;  %v4224_v24 = vadd.f32 %v4223_v38, %v4143_v51  ;;  %v8978_v9 = vpop.f32.mrf.mxu1  ;;  %v4151_v63 = vmul.f32 %v3987_v5, %v8867_v44  ;;  %v3991_v44 = vmul.f32 %v8959_v41, %v8913_v11 }
 0x3de   :  { %v4062_v13 = vadd.f32 %v4061_v49, %v3981_v29  ;;  %v4225_v7 = vadd.f32 %v4224_v24, %v4144_v34  ;;  %v4580_v54 = vpop.f32.mrf.mxu1  ;;  %v3835_v29 = vpop.permute.xlu0 %3834  ;;  %v4152_v34 = vmul.f32 %v3988_v21, %v8879_v46  ;;  %v3992_v46 = vmul.f32 %v8966_v32, %v8925_v53 }
 0x3df   :  { %v3840_v24 = vpop.permute.xlu1 %3839  ;;  %v4154_v54 = vmul.f32 %v3990_v16, %v8903_v55  ;;  %v3994_v55 = vmul.f32 %v8981_v59, %v8939_v12 }
 0x3e0   :  { %v4063_v19 = vadd.f32 %v4062_v13, %v3982_v31  ;;  %v4226_v18 = vadd.f32 %v4225_v7, %v4145_v27  ;;  %v8988_v33 = vpop.f32.mrf.mxu1  ;;  %v4153_v27 = vmul.f32 %v3989_v40, %v8893_v35  ;;  %v3993_v35 = vmul.f32 %v8973_v14, %v8933_v62 }
 0x3e2   :  { %v4064_v30 = vadd.f32 %v4063_v19, %v3983_v3  ;;  %v4227_v58 = vadd.f32 %v4226_v18, %v4146_v60  ;;  %v4581_v1 = vpop.f32.mrf.mxu1  ;;  %v3845_v7 = vpop.permute.xlu0 %3844  ;;  %v4155_v19 = vmul.f32 %v3991_v44, %v8913_v11  ;;  %v3995_v11 = vmul.f32 %v3820_v23, %v8947_v22 }
 0x3e4   :  { %v4065_v6 = vadd.f32 %v4064_v30, %v3984_v52  ;;  %v4228_v15 = vadd.f32 %v4227_v58, %v4147_v48  ;;  %v8996_v37 = vpop.f32.mrf.mxu1  ;;  %v4156_v30 = vmul.f32 %v3992_v46, %v8925_v53 }
 0x3e6   :  { %v4066_v47 = vadd.f32 %v4065_v6, %v3985_v4  ;;  %v4229_v43 = vadd.f32 %v4228_v15, %v4148_v50  ;;  %v4584_v36 = vpop.f32.mrf.mxu1  ;;  %v3850_v4 = vpop.permute.xlu1 %3849 }
 0x3e7   :  { %v3855_v50 = vpop.permute.xlu0 %3854  ;;  %v4159_v36 = vmul.f32 %v3995_v11, %v8947_v22 }
 0x3e8   :  { %v4067_v20 = vadd.f32 %v4066_v47, %v3986_v61  ;;  %v4230_v56 = vadd.f32 %v4229_v43, %v4149_v25  ;;  %v9004_v51 = vpop.f32.mrf.mxu1  ;;  %v4157_v61 = vmul.f32 %v3993_v35, %v8933_v62  ;;  %v4158_v25 = vmul.f32 %v3994_v55, %v8939_v12 }
 0x3ea   :  { %v4068_v10 = vadd.f32 %v4067_v20, %v3987_v5  ;;  %v4231_v38 = vadd.f32 %v4230_v56, %v4150_v8  ;;  %v4585_v17 = vpop.f32.mrf.mxu1  ;;  %v3996_v5 = vmul.f32 %v3825_v45, %v8952_v2  ;;  %v3860_v59 = vpop.permute.xlu1 %3859  ;;  %v3997_v8 = vmul.f32 %v3830_v57, %v8957_v26 }
 0x3eb   :  { %v3865_v23 = vpop.permute.xlu0 %3864 }
 0x3ec   :  { %v4232_v31 = vadd.f32 %v4231_v38, %v4151_v63  ;;  %v4069_v42 = vadd.f32 %v4068_v10, %v3988_v21  ;;  %v9012_v49 = vpop.f32.mrf.mxu1  ;;  %v4160_v56 = vmul.f32 %v3996_v5, %v8952_v2  ;;  %v3998_v63 = vmul.f32 %v3835_v29, %v8968_v39 }
 0x3ed   :  { %v4161_v10 = vmul.f32 %v3997_v8, %v8957_v26  ;;  %v4001_v26 = vmul.f32 %v3850_v4, %v8996_v37 }
 0x3ee   :  { %v4070_v3 = vadd.f32 %v4069_v42, %v3989_v40  ;;  %v4233_v28 = vadd.f32 %v4232_v31, %v4152_v34  ;;  %v4588_v13 = vpop.f32.mrf.mxu1  ;;  %v3999_v34 = vmul.f32 %v3840_v24, %v8978_v9  ;;  %v4162_v31 = vmul.f32 %v3998_v63, %v8968_v39 }
 0x3f0   :  { %v4071_v0 = vadd.f32 %v4070_v3, %v3990_v16  ;;  %v4234_v60 = vadd.f32 %v4233_v28, %v4153_v27  ;;  %v9020_v52 = vpop.f32.mrf.mxu1  ;;  %v3870_v16 = vpop.permute.xlu1 %3869  ;;  %v4000_v27 = vmul.f32 %v3845_v7, %v8988_v33  ;;  %v4163_v28 = vmul.f32 %v3999_v34, %v8978_v9 }
 0x3f1   :  { %v4165_v7 = vmul.f32 %v4001_v26, %v8996_v37 }
 0x3f2   :  { %v4072_v18 = vadd.f32 %v4071_v0, %v3991_v44  ;;  %v4235_v41 = vadd.f32 %v4234_v60, %v4154_v54  ;;  %v4589_v48 = vpop.f32.mrf.mxu1  ;;  %v3875_v44 = vpop.permute.xlu0 %3874  ;;  %v4164_v24 = vmul.f32 %v4000_v27, %v8988_v33  ;;  %v4002_v0 = vmul.f32 %v3855_v50, %v9004_v51 }
 0x3f4   :  { %v4073_v58 = vadd.f32 %v4072_v18, %v3992_v46  ;;  %v4236_v32 = vadd.f32 %v4235_v41, %v4155_v19  ;;  %v9028_v1 = vpop.f32.mrf.mxu1  ;;  %v3880_v39 = vpop.permute.xlu1 %3879  ;;  %v4003_v18 = vmul.f32 %v3860_v59, %v9012_v49  ;;  %v4166_v4 = vmul.f32 %v4002_v0, %v9004_v51 }
 0x3f6   :  { %v4074_v6 = vadd.f32 %v4073_v58, %v3993_v35  ;;  %v4237_v14 = vadd.f32 %v4236_v32, %v4156_v30  ;;  %v4592_v15 = vpop.f32.mrf.mxu1  ;;  %v3885_v48 = vpop.permute.xlu0 %3884  ;;  %v4167_v50 = vmul.f32 %v4003_v18, %v9012_v49 }
 0x3f8   :  { %v4075_v53 = vadd.f32 %v4074_v6, %v3994_v55  ;;  %v4238_v47 = vadd.f32 %v4237_v14, %v4157_v61  ;;  %v9034_v43 = vpop.f32.mrf.mxu1  ;;  %v4004_v55 = vmul.f32 %v3865_v23, %v9020_v52  ;;  %v4005_v61 = vmul.f32 %v3870_v16, %v9028_v1  ;;  %v3890_v6 = vpop.permute.xlu1 %3889 }
 0x3fa   :  { %v4076_v21 = vadd.f32 %v4075_v53, %v3995_v11  ;;  %v4239_v62 = vadd.f32 %v4238_v47, %v4158_v25  ;;  %v4593_v20 = vpop.f32.mrf.mxu1  ;;  %v4168_v15 = vmul.f32 %v4004_v55, %v9020_v52  ;;  %v4006_v25 = vmul.f32 %v3875_v44, %v9034_v43  ;;  %v3895_v53 = vpop.permute.xlu0 %3894 }
 0x3fb   :  { %v4169_v59 = vmul.f32 %v4005_v61, %v9028_v1 }
 0x3fc   :  { %v4077_v12 = vadd.f32 %v4076_v21, %v3996_v5  ;;  %v4240_v40 = vadd.f32 %v4239_v62, %v4159_v36  ;;  %v3398_v45 = vpop.f32.mrf.mxu1  ;;  %v4170_v62 = vmul.f32 %v4006_v25, %v9034_v43 }
 0x3fd   :  { %v4007_v36 = vmul.f32 %v3880_v39, %v3398_v45 }
 0x3fe   :  { %v4078_v38 = vadd.f32 %v4077_v12, %v3997_v8  ;;  %v4241_v17 = vadd.f32 %v4240_v40, %v4160_v56  ;;  %v4596_v22 = vpop.f32.mrf.mxu1  ;;  %v3900_v56 = vpop.permute.xlu1 %3899 }
 0x3ff   :  { %v4171_v52 = vmul.f32 %v4007_v36, %v3398_v45 }
 0x400   :  { %v4079_v57 = vadd.f32 %v4078_v38, %v3998_v63  ;;  %v4242_v42 = vadd.f32 %v4241_v17, %v4161_v10  ;;  %v3401_v2 = vpop.f32.mrf.mxu1  ;;  %v3905_v38 = vpop.permute.xlu0 %3904 }
 0x401   :  { %v4008_v20 = vmul.f32 %v3885_v48, %v3401_v2 }
 0x402   :  { %v4243_v29 = vadd.f32 %v4242_v42, %v4162_v31  ;;  %v4080_v3 = vadd.f32 %v4079_v57, %v3999_v34  ;;  %v4597_v13 = vpop.f32.mrf.mxu1  ;;  %v3910_v43 = vpop.permute.xlu1 %3909 }
 0x403   :  { %v4172_v22 = vmul.f32 %v4008_v20, %v3401_v2 }
 0x404   :  { %v4244_v54 = vadd.f32 %v4243_v29, %v4163_v28  ;;  %v4081_v46 = vadd.f32 %v4080_v3, %v4000_v27  ;;  %v3406_v60 = vpop.f32.mrf.mxu1  ;;  %v3915_v45 = vpop.permute.xlu0 %3914 }
 0x405   :  { %v4009_v40 = vmul.f32 %v3890_v6, %v3406_v60 }
 0x406   :  { %v4245_v19 = vadd.f32 %v4244_v54, %v4164_v24  ;;  %v4082_v35 = vadd.f32 %v4081_v46, %v4001_v26  ;;  %v4600_v41 = vpop.f32.mrf.mxu1 }
 0x407   :  { %v4173_v42 = vmul.f32 %v4009_v40, %v3406_v60  ;;  %v3920_v60 = vpop.permute.xlu1 %3919 }
 0x408   :  { %v4246_v9 = vadd.f32 %v4245_v19, %v4165_v7  ;;  %v4083_v30 = vadd.f32 %v4082_v35, %v4002_v0  ;;  %v3409_v58 = vpop.f32.mrf.mxu1 }
 0x409   :  { %v4010_v16 = vmul.f32 %v3895_v53, %v3409_v58 }
 0x40a   :  { %v4247_v33 = vadd.f32 %v4246_v9, %v4166_v4  ;;  %v4084_v32 = vadd.f32 %v4083_v30, %v4003_v18  ;;  %v4601_v11 = vpop.f32.mrf.mxu1 }
 0x40b   :  { %v4174_v28 = vmul.f32 %v4010_v16, %v3409_v58 }
 0x40c   :  { %v4248_v37 = vadd.f32 %v4247_v33, %v4167_v50  ;;  %v4085_v14 = vadd.f32 %v4084_v32, %v4004_v55  ;;  %v3414_v5 = vpop.f32.mrf.mxu1  ;;  %v3925_v55 = vpop.permute.xlu0 %3924 }
 0x40d   :  { %v4011_v27 = vmul.f32 %v3900_v56, %v3414_v5 }
 0x40e   :  { %v4249_v51 = vadd.f32 %v4248_v37, %v4168_v15  ;;  %v4086_v47 = vadd.f32 %v4085_v14, %v4005_v61  ;;  %v4604_v8 = vpop.f32.mrf.mxu1 }
 0x40f   :  { %v4175_v24 = vmul.f32 %v4011_v27, %v3414_v5 }
 0x410   :  { %v4250_v21 = vadd.f32 %v4249_v51, %v4169_v59  ;;  %v4087_v49 = vadd.f32 %v4086_v47, %v4006_v25  ;;  %v3417_v23 = vpop.f32.mrf.mxu1  ;;  %v3930_v25 = vpop.permute.xlu1 %3929 }
 0x411   :  { %v4012_v26 = vmul.f32 %v3905_v38, %v3417_v23 }
 0x412   :  { %v4251_v63 = vadd.f32 %v4250_v21, %v4170_v62  ;;  %v4088_v12 = vadd.f32 %v4087_v49, %v4007_v36  ;;  %v4605_v10 = vpop.f32.mrf.mxu1  ;;  %v3935_v21 = vpop.permute.xlu0 %3934 }
 0x413   :  { %v4176_v35 = vmul.f32 %v4012_v26, %v3417_v23 }
 0x414   :  { %v4252_v17 = vadd.f32 %v4251_v63, %v4171_v52  ;;  %v4089_v34 = vadd.f32 %v4088_v12, %v4008_v20  ;;  %v3422_v1 = vpop.f32.mrf.mxu1 }
 0x415   :  { %v4013_v0 = vmul.f32 %v3910_v43, %v3422_v1 }
 0x416   :  { %v4253_v57 = vadd.f32 %v4252_v17, %v4172_v22  ;;  %v4090_v31 = vadd.f32 %v4089_v34, %v4009_v40  ;;  %v4608_v44 = vpop.f32.mrf.mxu1 }
 0x417   :  { %v4177_v9 = vmul.f32 %v4013_v0, %v3422_v1 }
 0x418   :  { %v4254_v29 = vadd.f32 %v4253_v57, %v4173_v42  ;;  %v4091_v3 = vadd.f32 %v4090_v31, %v4010_v16  ;;  %v3425_v13 = vpop.f32.mrf.mxu1 }
 0x419   :  { %v4014_v7 = vmul.f32 %v3915_v45, %v3425_v13 }
 0x41a   :  { %v4255_v54 = vadd.f32 %v4254_v29, %v4174_v28  ;;  %v4092_v46 = vadd.f32 %v4091_v3, %v4011_v27  ;;  %v4609_v39 = vpop.f32.mrf.mxu1 }
 0x41b   :  { %v4178_v32 = vmul.f32 %v4014_v7, %v3425_v13 }
 0x41c   :  { %v4256_v2 = vadd.f32 %v4255_v54, %v4175_v24  ;;  %v4093_v19 = vadd.f32 %v4092_v46, %v4012_v26  ;;  %v3430_v18 = vpop.f32.mrf.mxu1 }
 0x41d   :  { %v4015_v30 = vmul.f32 %v3920_v60, %v3430_v18 }
 0x41e   :  { %v4257_v41 = vadd.f32 %v4256_v2, %v4176_v35  ;;  %v4094_v48 = vadd.f32 %v4093_v19, %v4013_v0  ;;  %v4612_v4 = vpop.f32.mrf.mxu1 }
 0x41f   :  { %v4179_v37 = vmul.f32 %v4015_v30, %v3430_v18 }
 0x420   :  { %v4258_v58 = vadd.f32 %v4257_v41, %v4177_v9  ;;  %v4095_v33 = vadd.f32 %v4094_v48, %v4014_v7  ;;  %v3433_v50 = vpop.f32.mrf.mxu1 }
 0x421   :  { %v4016_v61 = vmul.f32 %v3925_v55, %v3433_v50 }
 0x422   :  { %v4259_v11 = vadd.f32 %v4258_v58, %v4178_v32  ;;  %v4096_v6 = vadd.f32 %v4095_v33, %v4015_v30  ;;  %v4613_v14 = vpop.f32.mrf.mxu1 }
 0x423   :  { %v4180_v15 = vmul.f32 %v4016_v61, %v3433_v50 }
 0x424   :  { %v4260_v5 = vadd.f32 %v4259_v11, %v4179_v37  ;;  %v3438_v53 = vpop.f32.mrf.mxu1  ;;  %v4097_v51 = vadd.f32 %v4096_v6, %v4016_v61 }
 0x425   :  { %v4017_v47 = vmul.f32 %v3930_v25, %v3438_v53 }
 0x426   :  { %v4616_v59 = vpop.f32.mrf.mxu1  ;;  %v4261_v36 = vadd.f32 %v4260_v5, %v4180_v15 }
 0x427   :  { %v4181_v8 = vmul.f32 %v4017_v47, %v3438_v53  ;;  %v4098_v20 = vadd.f32 %v4097_v51, %v4017_v47 }
 0x428   :  { %v3441_v49 = vpop.f32.mrf.mxu1 }
 0x429   :  { %v4018_v62 = vmul.f32 %v3935_v21, %v3441_v49  ;;  %v4262_v56 = vadd.f32 %v4261_v36, %v4181_v8 }
 0x42a   :  { %v4617_v23 = vpop.f32.mrf.mxu1 }
 0x42b   :  { %v4182_v63 = vmul.f32 %v4018_v62, %v3441_v49  ;;  %v4099_v12 = vadd.f32 %v4098_v20, %v4018_v62 }
 0x42d   :  { %4100 = vst [vmem:[#allocation2] sm:$0xff] %v4099_v12  ;;  %v4263_v52 = vadd.f32 %v4262_v56, %v4182_v63 }
 0x42e   :  { %4809 = shalt.err (!%p4806_p4)
}
 0x42f   :  { %4274 = dma.vmem_to_hbm [thread:$0]  %s4272_s2, 128, %s9067_s3, [#allocation3]   ;;  %4264 = vst [vmem:[#allocation4] sm:$0xff] %v4263_v52 }
 0x430   :  { %s4818_s23 = scalar_lea.vmem %s4282_s27, 128  ;;  %p4823_p6 = scmp.lt.s32.totalorder %s4282_s27, %s4282_s27 }
 0x431   :  { %p4819_p5 = scmp.ne.s32.totalorder %s4282_s27, %s4818_s23  ;;  %p4824_p7 = scmp.lt.s32.totalorder %s4818_s23, %s4818_s23 }
 0x433   :  { %p4825_p8 = por %p4824_p7, %p4823_p6 }
 0x435   :  { %p4826_p9 = pnand %p4825_p8, %p4819_p5 }
 0x437   :  { %4829 = shalt.err (!%p4826_p9)
}
 0x438   :  { %4284 = dma.vmem_to_hbm [thread:$0]  %s4282_s27, 128, %s9068_s4, [#allocation5]  }
 0x439   :  { %4838 = dma.done.wait [#allocation3], 128  }
 0x43a   :  { %4839 = vsyncadd [#allocation3], 4294967168 }
 0x43b   :  { %4840 = dma.done.wait [#allocation5], 128  }
 0x43c   :  { %4841 = vsyncadd [#allocation5], 4294967168 }
 0x43d   :  { %4291 = vsyncpa [#allocation3], 1 }
 0x43e   :  { %4292 = vsyncpa [#allocation5], 1 }

</bundles_post_ra>
